<compile_context>
chip_gen: v6e
topology: v6e:2x2x1
jax: 0.10.0
libtpu: 0.0.40
codegen_flags: <defaults>
</compile_context>

<pallas_src>
import jax
import jax.numpy as jnp
import numpy as np
from jax.experimental import pallas as pl
from jax.experimental.pallas import tpu as pltpu

_BN_EPS = 1e-5
_LANES = 128
_SUBLANES = 8
_TM_DEFAULT = 512                      # max rows per M tile (multiple of 16 for bf16 tiles)
_VMEM_LIMIT = 32 * 1024 * 1024         # explicit scoped-VMEM budget (fits all gens)


def _round_up(x, m):
    return (x + m - 1) // m * m


def _choose_tm(M, K, Cp):
    """Largest M tile (multiple of 16, capped at _TM_DEFAULT) whose double-buffered
    working set fits comfortably inside the scoped VMEM limit."""
    per_row = 2 * (K * 2) + 2 * (Cp * 2)        # bf16 patch tile (db) + bf16 y tile (db)
    resident = 2 * (K * Cp * 2)                 # bf16 weight block (db, but index-invariant)
    budget = _VMEM_LIMIT // 2                   # headroom for pass-2 tiles / misc
    tm = (budget - resident) // per_row
    tm = max(16, min(_TM_DEFAULT, (tm // 16) * 16))
    return min(tm, _round_up(M, 16))


# ----------------------------- Pallas kernels ------------------------------ #

def _conv_stats_kernel(p_ref, w_ref, y_ref, sum_ref, ssq_ref):
    """One M tile of the folded im2col GEMM (f32 accumulate) plus per-tile
    per-channel sum and sum-of-squares for the BatchNorm batch statistics."""
    acc = jnp.dot(p_ref[...], w_ref[...], preferred_element_type=jnp.float32)
    y_ref[...] = acc.astype(y_ref.dtype)

    s = jnp.sum(acc, axis=0, keepdims=True)          # (1, Cp)
    q = jnp.sum(acc * acc, axis=0, keepdims=True)    # (1, Cp)
    # replicate across 8 sublanes so the stats block stays (8,128)-aligned
    sum_ref[...] = jnp.broadcast_to(s, (_SUBLANES, s.shape[1]))[None]
    ssq_ref[...] = jnp.broadcast_to(q, (_SUBLANES, q.shape[1]))[None]


def _affine_relu_kernel(y_ref, scale_ref, shift_ref, o_ref):
    """Fused BatchNorm-affine + ReLU, lane-dense epilogue (f32 math)."""
    y = y_ref[...].astype(jnp.float32)
    o_ref[...] = jnp.maximum(y * scale_ref[...] + shift_ref[...], 0.0).astype(o_ref.dtype)


# ------------------------------ conv+BN+ReLU stage ------------------------- #

def _conv_bn_relu_stage(x, w, gamma, beta, out_dtype):
    """x: (N, D, H, W, Ci) float; w: PyTorch Conv3d layout (Co, Ci, 3, 3, 3).
    The conv bias is intentionally omitted: it is exactly cancelled by the
    training-mode BatchNorm that follows."""
    N, D, H, W, Ci = x.shape
    Co = w.shape[0]
    M = N * D * H * W
    K = 27 * Ci
    Cp = _round_up(Co, _LANES)                     # lane-dense channel dim

    tm = _choose_tm(M, K, Cp)
    m_pad = _round_up(M, tm)
    n_tiles = m_pad // tm

    # ---- im2col in bf16, all 27 taps folded into the GEMM contraction dim ----
    xp = jnp.pad(x.astype(jnp.bfloat16), ((0, 0), (1, 1), (1, 1), (1, 1), (0, 0)))
    taps = [xp[:, kd:kd + D, kh:kh + H, kw:kw + W, :]
            for kd in range(3) for kh in range(3) for kw in range(3)]
    patches = jnp.stack(taps, axis=-2).reshape(M, K)      # tap-major, ci-minor
    if m_pad > M:
        patches = jnp.pad(patches, ((0, m_pad - M), (0, 0)))

    # weights / per-channel params, lane-padded to Cp
    w_t = jnp.transpose(w, (2, 3, 4, 1, 0)).reshape(K, Co)
    w_p = jnp.pad(w_t, ((0, 0), (0, Cp - Co))).astype(jnp.bfloat16)
    g_p = jnp.pad(gamma.astype(jnp.float32), (0, Cp - Co), constant_values=1.0)
    beta_p = jnp.pad(beta.astype(jnp.float32), (0, Cp - Co))

    cparams = pltpu.CompilerParams(
        dimension_semantics=("parallel",),        # M tiles independent -> megacore on v7x
        vmem_limit_bytes=_VMEM_LIMIT)

    # ---- pass 1: conv per M tile + per-tile channel sum / sumsq ----
    y, psum, pssq = pl.pallas_call(
        _conv_stats_kernel,
        out_shape=(jax.ShapeDtypeStruct((m_pad, Cp), jnp.bfloat16),
                   jax.ShapeDtypeStruct((n_tiles, _SUBLANES, Cp), jnp.float32),
                   jax.ShapeDtypeStruct((n_tiles, _SUBLANES, Cp), jnp.float32)),
        grid=(n_tiles,),
        in_specs=[pl.BlockSpec((tm, K), lambda i: (i, 0)),       # bf16 patch tile
                  pl.BlockSpec((K, Cp), lambda i: (0, 0))],      # bf16 weights (resident)
        out_specs=(pl.BlockSpec((tm, Cp), lambda i: (i, 0)),
                   pl.BlockSpec((1, _SUBLANES, Cp), lambda i: (i, 0, 0)),
                   pl.BlockSpec((1, _SUBLANES, Cp), lambda i: (i, 0, 0))),
        compiler_params=cparams,
    )(patches, w_p)

    # ---- tiny reduce for training-mode (biased) BatchNorm batch statistics ----
    # Zero-padded M rows contribute exactly 0 to both sums (no bias), divisor is M.
    sum_c = jnp.sum(psum[:, 0, :], axis=0)
    ssq_c = jnp.sum(pssq[:, 0, :], axis=0)
    mean = sum_c / M
    var = jnp.maximum(ssq_c / M - mean * mean, 0.0)     # E[y^2] - mean^2
    scale_row = g_p * jax.lax.rsqrt(var + _BN_EPS)
    shift_row = beta_p - mean * scale_row
    scale = scale_row.reshape(1, Cp)
    shift = shift_row.reshape(1, Cp)

    # ---- pass 2: fused normalize + ReLU per M tile ----
    out = pl.pallas_call(
        _affine_relu_kernel,
        out_shape=jax.ShapeDtypeStruct((m_pad, Cp), out_dtype),
        grid=(n_tiles,),
        in_specs=[pl.BlockSpec((tm, Cp), lambda i: (i, 0)),
                  pl.BlockSpec((1, Cp), lambda i: (0, 0)),
                  pl.BlockSpec((1, Cp), lambda i: (0, 0))],
        out_specs=pl.BlockSpec((tm, Cp), lambda i: (i, 0)),
        compiler_params=cparams,
    )(y, scale, shift)

    return out[:M, :Co].reshape(N, D, H, W, Co)


# ------------------------------ public forward ----------------------------- #

@jax.jit
def double_conv_forward(x_ncdhw, params):
    """PyTorch-equivalent DoubleConv forward. x: (N, C, D, H, W) float32."""
    x = jnp.transpose(x_ncdhw, (0, 2, 3, 4, 1))          # NCDHW -> NDHWC (boundary only)
    # stage 1 emits bf16 (directly consumed by stage 2's bf16 im2col)
    y = _conv_bn_relu_stage(x, params["w1"], params["g1"], params["beta1"],
                            out_dtype=jnp.bfloat16)
    y = _conv_bn_relu_stage(y, params["w2"], params["g2"], params["beta2"],
                            out_dtype=jnp.float32)
    return jnp.transpose(y, (0, 4, 1, 2, 3))             # NDHWC -> NCDHW


def init_params(key, in_ch, out_ch):
    ks = jax.random.split(key, 4)
    return dict(
        w1=jax.random.normal(ks[0], (out_ch, in_ch, 3, 3, 3), jnp.float32) * 0.1,
        b1=jax.random.normal(ks[1], (out_ch,), jnp.float32) * 0.05,
        g1=jnp.linspace(0.8, 1.2, out_ch).astype(jnp.float32),
        beta1=jnp.linspace(-0.1, 0.1, out_ch).astype(jnp.float32),
        w2=jax.random.normal(ks[2], (out_ch, out_ch, 3, 3, 3), jnp.float32) * 0.1,
        b2=jax.random.normal(ks[3], (out_ch,), jnp.float32) * 0.05,
        g2=jnp.linspace(1.2, 0.8, out_ch).astype(jnp.float32),
        beta2=jnp.linspace(0.1, -0.1, out_ch).astype(jnp.float32),
    )


# ------------------------------ pure-JAX reference ------------------------- #

def _reference_stage(x, w, b, gamma, beta):
    y = jax.lax.conv_general_dilated(
        x, jnp.transpose(w, (2, 3, 4, 1, 0)),
        window_strides=(1, 1, 1), padding="SAME",
        dimension_numbers=("NDHWC", "DHWIO", "NDHWC"))
    y = y + b
    mean = jnp.mean(y, axis=(0, 1, 2, 3), keepdims=True)
    var = jnp.mean((y - mean) ** 2, axis=(0, 1, 2, 3), keepdims=True)
    y = (y - mean) * jax.lax.rsqrt(var + _BN_EPS) * gamma + beta
    return jnp.maximum(y, 0.0)


def reference_forward(x_ncdhw, params):
    x = jnp.transpose(x_ncdhw, (0, 2, 3, 4, 1))
    y = _reference_stage(x, params["w1"], params["b1"], params["g1"], params["beta1"])
    y = _reference_stage(y, params["w2"], params["b2"], params["g2"], params["beta2"])
    return jnp.transpose(y, (0, 4, 1, 2, 3))


if __name__ == "__main__":
    key = jax.random.PRNGKey(0)
    kx, kp = jax.random.split(key)

    N, in_ch, out_ch, D, H, W = 2, 4, 8, 8, 8, 8
    x = jax.random.normal(kx, (N, in_ch, D, H, W), jnp.float32)   # NCDHW like PyTorch
    params = init_params(kp, in_ch, out_ch)

    out = jax.block_until_ready(double_conv_forward(x, params))
    assert out.shape == (N, out_ch, D, H, W), out.shape

    ref = reference_forward(x, params)
    # Tolerance accounts for bf16 MXU operands / bf16 intermediates (f32 accumulation
    # and f32 BatchNorm statistics) across two stages.
    np.testing.assert_allclose(np.asarray(out), np.asarray(ref), atol=3e-2, rtol=3e-2)

    print("KERNEL_OK")
</pallas_src>

<mosaic_0001>
module attributes {stable_mosaic.version = 11 : i64} {
  func.func @_conv_stats_kernel(%arg0: i32, %arg1: memref<512x108xbf16, #tpu.memory_space<vmem>>, %arg2: memref<108x128xbf16, #tpu.memory_space<vmem>>, %arg3: memref<512x128xbf16, #tpu.memory_space<vmem>>, %arg4: memref<1x8x128xf32, #tpu.memory_space<vmem>>, %arg5: memref<1x8x128xf32, #tpu.memory_space<vmem>>) attributes {dimension_semantics = [#tpu.dimension_semantics<parallel>], iteration_bounds = array<i64: 2>, scalar_prefetch = 0 : i64, scratch_operands = 0 : i64, tpu.core_type = #tpu.core_type<tc>, window_params = [{transform_indices = @transform_0, window_bounds = array<i64: 512, 108>}, {pipeline_mode = #tpu.pipeline_mode<synchronous>, transform_indices = @transform_1, window_bounds = array<i64: 108, 128>}, {transform_indices = @transform_2, window_bounds = array<i64: 512, 128>}, {transform_indices = @transform_3, window_bounds = array<i64: 1, 8, 128>}, {transform_indices = @transform_4, window_bounds = array<i64: 1, 8, 128>}]} {
    %c0 = arith.constant 0 : index
    %c0_0 = arith.constant 0 : index
    %0 = vector.load %arg1[%c0, %c0_0] : memref<512x108xbf16, #tpu.memory_space<vmem>>, vector<512x108xbf16>
    %c0_1 = arith.constant 0 : index
    %c0_2 = arith.constant 0 : index
    %1 = vector.load %arg2[%c0_1, %c0_2] : memref<108x128xbf16, #tpu.memory_space<vmem>>, vector<108x128xbf16>
    %cst = arith.constant dense<0.000000e+00> : vector<512x128xf32>
    %2 = tpu.matmul %0, %1, %cst {dimension_numbers = #tpu.dot_dimension_numbers<[1], [0], [0], [1], [0, 0, 1, 1], [], []>} : vector<512x108xbf16>, vector<108x128xbf16>, vector<512x128xf32> -> vector<512x128xf32>
    %3 = arith.truncf %2 : vector<512x128xf32> to vector<512x128xbf16>
    %c0_3 = arith.constant 0 : index
    %c0_4 = arith.constant 0 : index
    %4 = vector.load %arg3[%c0_3, %c0_4] : memref<512x128xbf16, #tpu.memory_space<vmem>>, vector<512x128xbf16>
    tpu.vector_store %arg3[%c0_3, %c0_4], %3 {strides = array<i32>} : memref<512x128xbf16, #tpu.memory_space<vmem>>, vector<512x128xbf16>,
    %cst_5 = arith.constant dense<0.000000e+00> : vector<128xf32>
    %5 = vector.multi_reduction <add>, %2, %cst_5 [0] : vector<512x128xf32> to vector<128xf32>
    %6 = vector.shape_cast %5 : vector<128xf32> to vector<1x128xf32>
    %7 = arith.mulf %2, %2 : vector<512x128xf32>
    %cst_6 = arith.constant dense<0.000000e+00> : vector<128xf32>
    %8 = vector.multi_reduction <add>, %7, %cst_6 [0] : vector<512x128xf32> to vector<128xf32>
    %9 = vector.shape_cast %8 : vector<128xf32> to vector<1x128xf32>
    %10 = vector.shape_cast %6 : vector<1x128xf32> to vector<1x128xf32>
    %11 = vector.broadcast %10 : vector<1x128xf32> to vector<8x128xf32>
    %12 = vector.shape_cast %11 : vector<8x128xf32> to vector<1x8x128xf32>
    %c0_7 = arith.constant 0 : index
    %c0_8 = arith.constant 0 : index
    %c0_9 = arith.constant 0 : index
    %13 = vector.load %arg4[%c0_7, %c0_8, %c0_9] : memref<1x8x128xf32, #tpu.memory_space<vmem>>, vector<1x8x128xf32>
    tpu.vector_store %arg4[%c0_7, %c0_8, %c0_9], %12 {strides = array<i32>} : memref<1x8x128xf32, #tpu.memory_space<vmem>>, vector<1x8x128xf32>,
    %14 = vector.shape_cast %9 : vector<1x128xf32> to vector<1x128xf32>
    %15 = vector.broadcast %14 : vector<1x128xf32> to vector<8x128xf32>
    %16 = vector.shape_cast %15 : vector<8x128xf32> to vector<1x8x128xf32>
    %c0_10 = arith.constant 0 : index
    %c0_11 = arith.constant 0 : index
    %c0_12 = arith.constant 0 : index
    %17 = vector.load %arg5[%c0_10, %c0_11, %c0_12] : memref<1x8x128xf32, #tpu.memory_space<vmem>>, vector<1x8x128xf32>
    tpu.vector_store %arg5[%c0_10, %c0_11, %c0_12], %16 {strides = array<i32>} : memref<1x8x128xf32, #tpu.memory_space<vmem>>, vector<1x8x128xf32>,
    return
  }
  func.func @transform_0(%arg0: i32) -> (i32, i32) {
    %c0_i32 = arith.constant 0 : i32
    %c0_i32_0 = arith.constant 0 : i32
    return %arg0, %c0_i32 : i32, i32
  }
  func.func @transform_1(%arg0: i32) -> (i32, i32) {
    %c0_i32 = arith.constant 0 : i32
    %c0_i32_0 = arith.constant 0 : i32
    %c0_i32_1 = arith.constant 0 : i32
    return %c0_i32, %c0_i32_0 : i32, i32
  }
  func.func @transform_2(%arg0: i32) -> (i32, i32) {
    %c0_i32 = arith.constant 0 : i32
    %c0_i32_0 = arith.constant 0 : i32
    return %arg0, %c0_i32 : i32, i32
  }
  func.func @transform_3(%arg0: i32) -> (i32, i32, i32) {
    %c0_i32 = arith.constant 0 : i32
    %c0_i32_0 = arith.constant 0 : i32
    %c0_i32_1 = arith.constant 0 : i32
    return %arg0, %c0_i32, %c0_i32_0 : i32, i32, i32
  }
  func.func @transform_4(%arg0: i32) -> (i32, i32, i32) {
    %c0_i32 = arith.constant 0 : i32
    %c0_i32_0 = arith.constant 0 : i32
    %c0_i32_1 = arith.constant 0 : i32
    return %arg0, %c0_i32, %c0_i32_0 : i32, i32, i32
  }
}

module attributes {stable_mosaic.version = 11 : i64} {
  func.func @_affine_relu_kernel(%arg0: i32, %arg1: memref<512x128xbf16, #tpu.memory_space<vmem>>, %arg2: memref<1x128xf32, #tpu.memory_space<vmem>>, %arg3: memref<1x128xf32, #tpu.memory_space<vmem>>, %arg4: memref<512x128xbf16, #tpu.memory_space<vmem>>) attributes {dimension_semantics = [#tpu.dimension_semantics<parallel>], iteration_bounds = array<i64: 2>, scalar_prefetch = 0 : i64, scratch_operands = 0 : i64, tpu.core_type = #tpu.core_type<tc>, window_params = [{transform_indices = @transform_0, window_bounds = array<i64: 512, 128>}, {pipeline_mode = #tpu.pipeline_mode<synchronous>, transform_indices = @transform_1, window_bounds = array<i64: 1, 128>}, {pipeline_mode = #tpu.pipeline_mode<synchronous>, transform_indices = @transform_2, window_bounds = array<i64: 1, 128>}, {transform_indices = @transform_3, window_bounds = array<i64: 512, 128>}]} {
    %c0 = arith.constant 0 : index
    %c0_0 = arith.constant 0 : index
    %0 = vector.load %arg1[%c0, %c0_0] : memref<512x128xbf16, #tpu.memory_space<vmem>>, vector<512x128xbf16>
    %1 = arith.extf %0 : vector<512x128xbf16> to vector<512x128xf32>
    %c0_1 = arith.constant 0 : index
    %c0_2 = arith.constant 0 : index
    %2 = vector.load %arg2[%c0_1, %c0_2] : memref<1x128xf32, #tpu.memory_space<vmem>>, vector<1x128xf32>
    %3 = vector.broadcast %2 : vector<1x128xf32> to vector<512x128xf32>
    %4 = arith.mulf %1, %3 : vector<512x128xf32>
    %c0_3 = arith.constant 0 : index
    %c0_4 = arith.constant 0 : index
    %5 = vector.load %arg3[%c0_3, %c0_4] : memref<1x128xf32, #tpu.memory_space<vmem>>, vector<1x128xf32>
    %6 = vector.broadcast %5 : vector<1x128xf32> to vector<512x128xf32>
    %7 = arith.addf %4, %6 : vector<512x128xf32>
    %cst = arith.constant 0.000000e+00 : f32
    %8 = vector.broadcast %cst : f32 to vector<512x128xf32>
    %9 = arith.maximumf %7, %8 : vector<512x128xf32>
    %10 = arith.truncf %9 : vector<512x128xf32> to vector<512x128xbf16>
    %c0_5 = arith.constant 0 : index
    %c0_6 = arith.constant 0 : index
    %11 = vector.load %arg4[%c0_5, %c0_6] : memref<512x128xbf16, #tpu.memory_space<vmem>>, vector<512x128xbf16>
    tpu.vector_store %arg4[%c0_5, %c0_6], %10 {strides = array<i32>} : memref<512x128xbf16, #tpu.memory_space<vmem>>, vector<512x128xbf16>,
    return
  }
  func.func @transform_0(%arg0: i32) -> (i32, i32) {
    %c0_i32 = arith.constant 0 : i32
    %c0_i32_0 = arith.constant 0 : i32
    return %arg0, %c0_i32 : i32, i32
  }
  func.func @transform_1(%arg0: i32) -> (i32, i32) {
    %c0_i32 = arith.constant 0 : i32
    %c0_i32_0 = arith.constant 0 : i32
    %c0_i32_1 = arith.constant 0 : i32
    return %c0_i32, %c0_i32_0 : i32, i32
  }
  func.func @transform_2(%arg0: i32) -> (i32, i32) {
    %c0_i32 = arith.constant 0 : i32
    %c0_i32_0 = arith.constant 0 : i32
    %c0_i32_1 = arith.constant 0 : i32
    return %c0_i32, %c0_i32_0 : i32, i32
  }
  func.func @transform_3(%arg0: i32) -> (i32, i32) {
    %c0_i32 = arith.constant 0 : i32
    %c0_i32_0 = arith.constant 0 : i32
    return %arg0, %c0_i32 : i32, i32
  }
}

module attributes {stable_mosaic.version = 11 : i64} {
  func.func @_conv_stats_kernel(%arg0: i32, %arg1: memref<512x216xbf16, #tpu.memory_space<vmem>>, %arg2: memref<216x128xbf16, #tpu.memory_space<vmem>>, %arg3: memref<512x128xbf16, #tpu.memory_space<vmem>>, %arg4: memref<1x8x128xf32, #tpu.memory_space<vmem>>, %arg5: memref<1x8x128xf32, #tpu.memory_space<vmem>>) attributes {dimension_semantics = [#tpu.dimension_semantics<parallel>], iteration_bounds = array<i64: 2>, scalar_prefetch = 0 : i64, scratch_operands = 0 : i64, tpu.core_type = #tpu.core_type<tc>, window_params = [{transform_indices = @transform_0, window_bounds = array<i64: 512, 216>}, {pipeline_mode = #tpu.pipeline_mode<synchronous>, transform_indices = @transform_1, window_bounds = array<i64: 216, 128>}, {transform_indices = @transform_2, window_bounds = array<i64: 512, 128>}, {transform_indices = @transform_3, window_bounds = array<i64: 1, 8, 128>}, {transform_indices = @transform_4, window_bounds = array<i64: 1, 8, 128>}]} {
    %c0 = arith.constant 0 : index
    %c0_0 = arith.constant 0 : index
    %0 = vector.load %arg1[%c0, %c0_0] : memref<512x216xbf16, #tpu.memory_space<vmem>>, vector<512x216xbf16>
    %c0_1 = arith.constant 0 : index
    %c0_2 = arith.constant 0 : index
    %1 = vector.load %arg2[%c0_1, %c0_2] : memref<216x128xbf16, #tpu.memory_space<vmem>>, vector<216x128xbf16>
    %cst = arith.constant dense<0.000000e+00> : vector<512x128xf32>
    %2 = tpu.matmul %0, %1, %cst {dimension_numbers = #tpu.dot_dimension_numbers<[1], [0], [0], [1], [0, 0, 1, 1], [], []>} : vector<512x216xbf16>, vector<216x128xbf16>, vector<512x128xf32> -> vector<512x128xf32>
    %3 = arith.truncf %2 : vector<512x128xf32> to vector<512x128xbf16>
    %c0_3 = arith.constant 0 : index
    %c0_4 = arith.constant 0 : index
    %4 = vector.load %arg3[%c0_3, %c0_4] : memref<512x128xbf16, #tpu.memory_space<vmem>>, vector<512x128xbf16>
    tpu.vector_store %arg3[%c0_3, %c0_4], %3 {strides = array<i32>} : memref<512x128xbf16, #tpu.memory_space<vmem>>, vector<512x128xbf16>,
    %cst_5 = arith.constant dense<0.000000e+00> : vector<128xf32>
    %5 = vector.multi_reduction <add>, %2, %cst_5 [0] : vector<512x128xf32> to vector<128xf32>
    %6 = vector.shape_cast %5 : vector<128xf32> to vector<1x128xf32>
    %7 = arith.mulf %2, %2 : vector<512x128xf32>
    %cst_6 = arith.constant dense<0.000000e+00> : vector<128xf32>
    %8 = vector.multi_reduction <add>, %7, %cst_6 [0] : vector<512x128xf32> to vector<128xf32>
    %9 = vector.shape_cast %8 : vector<128xf32> to vector<1x128xf32>
    %10 = vector.shape_cast %6 : vector<1x128xf32> to vector<1x128xf32>
    %11 = vector.broadcast %10 : vector<1x128xf32> to vector<8x128xf32>
    %12 = vector.shape_cast %11 : vector<8x128xf32> to vector<1x8x128xf32>
    %c0_7 = arith.constant 0 : index
    %c0_8 = arith.constant 0 : index
    %c0_9 = arith.constant 0 : index
    %13 = vector.load %arg4[%c0_7, %c0_8, %c0_9] : memref<1x8x128xf32, #tpu.memory_space<vmem>>, vector<1x8x128xf32>
    tpu.vector_store %arg4[%c0_7, %c0_8, %c0_9], %12 {strides = array<i32>} : memref<1x8x128xf32, #tpu.memory_space<vmem>>, vector<1x8x128xf32>,
    %14 = vector.shape_cast %9 : vector<1x128xf32> to vector<1x128xf32>
    %15 = vector.broadcast %14 : vector<1x128xf32> to vector<8x128xf32>
    %16 = vector.shape_cast %15 : vector<8x128xf32> to vector<1x8x128xf32>
    %c0_10 = arith.constant 0 : index
    %c0_11 = arith.constant 0 : index
    %c0_12 = arith.constant 0 : index
    %17 = vector.load %arg5[%c0_10, %c0_11, %c0_12] : memref<1x8x128xf32, #tpu.memory_space<vmem>>, vector<1x8x128xf32>
    tpu.vector_store %arg5[%c0_10, %c0_11, %c0_12], %16 {strides = array<i32>} : memref<1x8x128xf32, #tpu.memory_space<vmem>>, vector<1x8x128xf32>,
    return
  }
  func.func @transform_0(%arg0: i32) -> (i32, i32) {
    %c0_i32 = arith.constant 0 : i32
    %c0_i32_0 = arith.constant 0 : i32
    return %arg0, %c0_i32 : i32, i32
  }
  func.func @transform_1(%arg0: i32) -> (i32, i32) {
    %c0_i32 = arith.constant 0 : i32
    %c0_i32_0 = arith.constant 0 : i32
    %c0_i32_1 = arith.constant 0 : i32
    return %c0_i32, %c0_i32_0 : i32, i32
  }
  func.func @transform_2(%arg0: i32) -> (i32, i32) {
    %c0_i32 = arith.constant 0 : i32
    %c0_i32_0 = arith.constant 0 : i32
    return %arg0, %c0_i32 : i32, i32
  }
  func.func @transform_3(%arg0: i32) -> (i32, i32, i32) {
    %c0_i32 = arith.constant 0 : i32
    %c0_i32_0 = arith.constant 0 : i32
    %c0_i32_1 = arith.constant 0 : i32
    return %arg0, %c0_i32, %c0_i32_0 : i32, i32, i32
  }
  func.func @transform_4(%arg0: i32) -> (i32, i32, i32) {
    %c0_i32 = arith.constant 0 : i32
    %c0_i32_0 = arith.constant 0 : i32
    %c0_i32_1 = arith.constant 0 : i32
    return %arg0, %c0_i32, %c0_i32_0 : i32, i32, i32
  }
}

module attributes {stable_mosaic.version = 11 : i64} {
  func.func @_affine_relu_kernel(%arg0: i32, %arg1: memref<512x128xbf16, #tpu.memory_space<vmem>>, %arg2: memref<1x128xf32, #tpu.memory_space<vmem>>, %arg3: memref<1x128xf32, #tpu.memory_space<vmem>>, %arg4: memref<512x128xf32, #tpu.memory_space<vmem>>) attributes {dimension_semantics = [#tpu.dimension_semantics<parallel>], iteration_bounds = array<i64: 2>, scalar_prefetch = 0 : i64, scratch_operands = 0 : i64, tpu.core_type = #tpu.core_type<tc>, window_params = [{transform_indices = @transform_0, window_bounds = array<i64: 512, 128>}, {pipeline_mode = #tpu.pipeline_mode<synchronous>, transform_indices = @transform_1, window_bounds = array<i64: 1, 128>}, {pipeline_mode = #tpu.pipeline_mode<synchronous>, transform_indices = @transform_2, window_bounds = array<i64: 1, 128>}, {transform_indices = @transform_3, window_bounds = array<i64: 512, 128>}]} {
    %c0 = arith.constant 0 : index
    %c0_0 = arith.constant 0 : index
    %0 = vector.load %arg1[%c0, %c0_0] : memref<512x128xbf16, #tpu.memory_space<vmem>>, vector<512x128xbf16>
    %1 = arith.extf %0 : vector<512x128xbf16> to vector<512x128xf32>
    %c0_1 = arith.constant 0 : index
    %c0_2 = arith.constant 0 : index
    %2 = vector.load %arg2[%c0_1, %c0_2] : memref<1x128xf32, #tpu.memory_space<vmem>>, vector<1x128xf32>
    %3 = vector.broadcast %2 : vector<1x128xf32> to vector<512x128xf32>
    %4 = arith.mulf %1, %3 : vector<512x128xf32>
    %c0_3 = arith.constant 0 : index
    %c0_4 = arith.constant 0 : index
    %5 = vector.load %arg3[%c0_3, %c0_4] : memref<1x128xf32, #tpu.memory_space<vmem>>, vector<1x128xf32>
    %6 = vector.broadcast %5 : vector<1x128xf32> to vector<512x128xf32>
    %7 = arith.addf %4, %6 : vector<512x128xf32>
    %cst = arith.constant 0.000000e+00 : f32
    %8 = vector.broadcast %cst : f32 to vector<512x128xf32>
    %9 = arith.maximumf %7, %8 : vector<512x128xf32>
    %c0_5 = arith.constant 0 : index
    %c0_6 = arith.constant 0 : index
    %10 = vector.load %arg4[%c0_5, %c0_6] : memref<512x128xf32, #tpu.memory_space<vmem>>, vector<512x128xf32>
    tpu.vector_store %arg4[%c0_5, %c0_6], %9 {strides = array<i32>} : memref<512x128xf32, #tpu.memory_space<vmem>>, vector<512x128xf32>,
    return
  }
  func.func @transform_0(%arg0: i32) -> (i32, i32) {
    %c0_i32 = arith.constant 0 : i32
    %c0_i32_0 = arith.constant 0 : i32
    return %arg0, %c0_i32 : i32, i32
  }
  func.func @transform_1(%arg0: i32) -> (i32, i32) {
    %c0_i32 = arith.constant 0 : i32
    %c0_i32_0 = arith.constant 0 : i32
    %c0_i32_1 = arith.constant 0 : i32
    return %c0_i32, %c0_i32_0 : i32, i32
  }
  func.func @transform_2(%arg0: i32) -> (i32, i32) {
    %c0_i32 = arith.constant 0 : i32
    %c0_i32_0 = arith.constant 0 : i32
    %c0_i32_1 = arith.constant 0 : i32
    return %c0_i32, %c0_i32_0 : i32, i32
  }
  func.func @transform_3(%arg0: i32) -> (i32, i32) {
    %c0_i32 = arith.constant 0 : i32
    %c0_i32_0 = arith.constant 0 : i32
    return %arg0, %c0_i32 : i32, i32
  }
}

</mosaic_0001>

<bundles_post_ra>
// kernel: double_conv_forward.5
= control target key start
LH: loop header
LB: loop body
LE: loop exit
PB: predicated region body
PF: predicated region fallthrough
CT: control target
= control target key end

     0   :  { %s1411_s12 = smov 0   ;;  %s1641_s0 = inlined_call_operand.vmem [shape: bf16[1024,128], index: 0, kind: input, shape index: {}]   ;;  %s1642_s1 = inlined_call_operand.vmem [shape: f32[1,128], index: 1, kind: input, shape index: {}]   ;;  %s1643_s2 = inlined_call_operand.vmem [shape: f32[1,128], index: 2, kind: input, shape index: {}]   ;;  %s1644_s3 = inlined_call_operand.vmem [shape: bf16[1024,128], index: 3, kind: output, shape index: {}]  }
   0x1 LB: > { %s884_s13 = sadd.s32 4294967295, %s1389_s12   ;;  %p888_p0 = scmp.ge.s32.totalorder %s1389_s12, 1  ;;  %s1389_s12 = sphi %s1411_s12, %s13_s12  }
   0x2   : > { %p138_p1 = scmp.lt.s32.totalorder %s1389_s12, 3 }
   0x4   : > { %p139_p2 = pnand %p888_p0, %p138_p1 }
   0x5   : > { %s889_s14 = sshll.u32 (!%p139_p2), %s884_s13, 6 }
   0x6   : > { %142 = sbr.rel (%p139_p2) target bundleno = 93 (0x5d), region = 32  ;;  %p163_p3 = scmp.lt.s32.totalorder (!%p139_p2), %s889_s14, 127 }
   0xb   : > { %s1646_s14 = smov (!%p163_p3, %s889_s14), 127  ;;  %v1432_v0 = vld [vmem:[%s1642_s1] ss:$0 sm:$0xff] }
   0xc   : > { %s890_s15 = sshll.u32 %s1646_s14, 2  ;;  %v1441_v9 = vld [vmem:[%s1643_s2] ss:$0 sm:$0xff] }
   0xd   : > { %s1427_s18 = scalar_lea.vmem %s1641_s0, %s890_s15  ;;  %s1466_s25 = scalar_lea.vmem %s1644_s3, %s890_s15 }
   0xe   : > { %v1026_v1 = vld [vmem:[%s1427_s18] sm:$0xff]   ;;  %v1313_v2 = vld [vmem:[%s1427_s18 + $0x8] sm:$0xff]   ;;  %v1314_v3 = vld [vmem:[%s1427_s18 + $0x10] sm:$0xff]  }
   0xf   : > { %v1027_v4 = vunpack.c.l.bf16 %v1026_v1  ;;  %v1028_v5 = vunpack.c.h.bf16 %v1026_v1  ;;  %v1031_v6 = vunpack.c.l.bf16 %v1313_v2  ;;  %v1032_v7 = vunpack.c.h.bf16 %v1313_v2  ;;  %v1315_v8 = vld [vmem:[%s1427_s18 + $0x18] sm:$0xff]   ;;  %v1316_v30 = vld [vmem:[%s1427_s18 + $0x20] sm:$0xff]   ;;  %v1317_v35 = vld [vmem:[%s1427_s18 + $0x28] sm:$0xff]  }
  0x10   : > { %v1035_v10 = vunpack.c.l.bf16 %v1314_v3  ;;  %v1036_v11 = vunpack.c.h.bf16 %v1314_v3  ;;  %v1039_v12 = vunpack.c.l.bf16 %v1315_v8  ;;  %v1040_v13 = vunpack.c.h.bf16 %v1315_v8  ;;  %v1318_v40 = vld [vmem:[%s1427_s18 + $0x30] sm:$0xff]   ;;  %v1319_v45 = vld [vmem:[%s1427_s18 + $0x38] sm:$0xff]   ;;  %v1320_v3 = vld [vmem:[%s1427_s18 + $0x40] sm:$0xff]  }
  0x11   : > { %v309_v14 = vmul.f32 %v1027_v4, %v1432_v0  ;;  %v310_v15 = vmul.f32 %v1028_v5, %v1432_v0  ;;  %v311_v16 = vmul.f32 %v1031_v6, %v1432_v0  ;;  %v312_v17 = vmul.f32 %v1032_v7, %v1432_v0 }
  0x12   : > { %v313_v18 = vmul.f32 %v1035_v10, %v1432_v0  ;;  %v314_v19 = vmul.f32 %v1036_v11, %v1432_v0  ;;  %v315_v20 = vmul.f32 %v1039_v12, %v1432_v0  ;;  %v316_v21 = vmul.f32 %v1040_v13, %v1432_v0  ;;  %v1321_v13 = vld [vmem:[%s1427_s18 + $0x48] sm:$0xff]  }
  0x13   : > { %v380_v22 = vadd.f32 %v1441_v9, %v309_v14  ;;  %v381_v23 = vadd.f32 %v1441_v9, %v310_v15  ;;  %v382_v24 = vadd.f32 %v1441_v9, %v311_v16  ;;  %v383_v25 = vadd.f32 %v1441_v9, %v312_v17 }
  0x14   : > { %v384_v26 = vadd.f32 %v1441_v9, %v313_v18  ;;  %v385_v27 = vadd.f32 %v1441_v9, %v314_v19  ;;  %v386_v28 = vadd.f32 %v1441_v9, %v315_v20  ;;  %v387_v29 = vadd.f32 %v1441_v9, %v316_v21  ;;  %v1322_v18 = vld [vmem:[%s1427_s18 + $0x50] sm:$0xff]  }
  0x15   : > { %v444_v31 = vmax.f32 %v380_v22, 0.0  ;;  %v445_v32 = vmax.f32 %v381_v23, 0.0  ;;  %v446_v33 = vmax.f32 %v382_v24, 0.0  ;;  %v447_v34 = vmax.f32 %v383_v25, 0.0  ;;  %v1323_v23 = vld [vmem:[%s1427_s18 + $0x58] sm:$0xff]  }
  0x16   : > { %v448_v36 = vmax.f32 %v384_v26, 0.0  ;;  %v449_v37 = vmax.f32 %v385_v27, 0.0  ;;  %v450_v38 = vmax.f32 %v386_v28, 0.0  ;;  %v451_v39 = vmax.f32 %v387_v29, 0.0 }
  0x17   : > { %v1156_v41 = vpack.c.bf16 %v445_v32, %v444_v31  ;;  %v1161_v42 = vpack.c.bf16 %v447_v34, %v446_v33  ;;  %v1043_v43 = vunpack.c.l.bf16 %v1316_v30  ;;  %v1044_v44 = vunpack.c.h.bf16 %v1316_v30 }
  0x18   : > { %v1166_v46 = vpack.c.bf16 %v449_v37, %v448_v36  ;;  %v1171_v47 = vpack.c.bf16 %v451_v39, %v450_v38  ;;  %v1047_v48 = vunpack.c.l.bf16 %v1317_v35  ;;  %v1048_v49 = vunpack.c.h.bf16 %v1317_v35 }
  0x19   : > { %1157 = vst [vmem:[%s1466_s25] sm:$0xff] %v1156_v41   ;;  %1344 = vst [vmem:[%s1466_s25 + $0x8] sm:$0xff] %v1161_v42   ;;  %v317_v50 = vmul.f32 %v1043_v43, %v1432_v0  ;;  %v318_v51 = vmul.f32 %v1044_v44, %v1432_v0  ;;  %v1051_v52 = vunpack.c.l.bf16 %v1318_v40  ;;  %v1052_v53 = vunpack.c.h.bf16 %v1318_v40  ;;  %v1324_v40 = vld [vmem:[%s1427_s18 + $0x60] sm:$0xff]  }
  0x1a   : > { %1345 = vst [vmem:[%s1466_s25 + $0x10] sm:$0xff] %v1166_v46   ;;  %1346 = vst [vmem:[%s1466_s25 + $0x18] sm:$0xff] %v1171_v47   ;;  %v319_v54 = vmul.f32 %v1047_v48, %v1432_v0  ;;  %v320_v55 = vmul.f32 %v1048_v49, %v1432_v0  ;;  %v1055_v56 = vunpack.c.l.bf16 %v1319_v45  ;;  %v1056_v57 = vunpack.c.h.bf16 %v1319_v45 }
  0x1b   : > { %v388_v58 = vadd.f32 %v1441_v9, %v317_v50  ;;  %v389_v59 = vadd.f32 %v1441_v9, %v318_v51  ;;  %v321_v60 = vmul.f32 %v1051_v52, %v1432_v0  ;;  %v322_v61 = vmul.f32 %v1052_v53, %v1432_v0  ;;  %v1325_v53 = vld [vmem:[%s1427_s18 + $0x68] sm:$0xff]  }
  0x1c   : > { %v390_v62 = vadd.f32 %v1441_v9, %v319_v54  ;;  %v391_v63 = vadd.f32 %v1441_v9, %v320_v55  ;;  %v323_v1 = vmul.f32 %v1055_v56, %v1432_v0  ;;  %v324_v2 = vmul.f32 %v1056_v57, %v1432_v0 }
  0x1d   : > { %v452_v4 = vmax.f32 %v388_v58, 0.0  ;;  %v453_v5 = vmax.f32 %v389_v59, 0.0  ;;  %v392_v6 = vadd.f32 %v1441_v9, %v321_v60  ;;  %v393_v7 = vadd.f32 %v1441_v9, %v322_v61  ;;  %v1326_v58 = vld [vmem:[%s1427_s18 + $0x70] sm:$0xff]  }
  0x1e   : > { %v454_v8 = vmax.f32 %v390_v62, 0.0  ;;  %v455_v10 = vmax.f32 %v391_v63, 0.0  ;;  %v394_v11 = vadd.f32 %v1441_v9, %v323_v1  ;;  %v395_v12 = vadd.f32 %v1441_v9, %v324_v2  ;;  %v1327_v63 = vld [vmem:[%s1427_s18 + $0x78] sm:$0xff]  }
  0x1f   : > { %v1176_v14 = vpack.c.bf16 %v453_v5, %v452_v4  ;;  %v456_v15 = vmax.f32 %v392_v6, 0.0  ;;  %v457_v16 = vmax.f32 %v393_v7, 0.0  ;;  %v1059_v17 = vunpack.c.l.bf16 %v1320_v3 }
  0x20   : > { %v1181_v19 = vpack.c.bf16 %v455_v10, %v454_v8  ;;  %v458_v20 = vmax.f32 %v394_v11, 0.0  ;;  %v459_v21 = vmax.f32 %v395_v12, 0.0  ;;  %v1060_v22 = vunpack.c.h.bf16 %v1320_v3 }
  0x21   : > { %1347 = vst [vmem:[%s1466_s25 + $0x20] sm:$0xff] %v1176_v14   ;;  %v1186_v24 = vpack.c.bf16 %v457_v16, %v456_v15  ;;  %v325_v25 = vmul.f32 %v1059_v17, %v1432_v0  ;;  %v1063_v26 = vunpack.c.l.bf16 %v1321_v13  ;;  %v1064_v27 = vunpack.c.h.bf16 %v1321_v13  ;;  %v1328_v14 = vld [vmem:[%s1427_s18 + $0x80] sm:$0xff]  }
  0x22   : > { %1348 = vst [vmem:[%s1466_s25 + $0x28] sm:$0xff] %v1181_v19   ;;  %v1191_v28 = vpack.c.bf16 %v459_v21, %v458_v20  ;;  %v326_v29 = vmul.f32 %v1060_v22, %v1432_v0  ;;  %v1067_v30 = vunpack.c.l.bf16 %v1322_v18  ;;  %v1068_v31 = vunpack.c.h.bf16 %v1322_v18 }
  0x23   : > { %1349 = vst [vmem:[%s1466_s25 + $0x30] sm:$0xff] %v1186_v24   ;;  %v396_v32 = vadd.f32 %v1441_v9, %v325_v25  ;;  %v327_v33 = vmul.f32 %v1063_v26, %v1432_v0  ;;  %v328_v34 = vmul.f32 %v1064_v27, %v1432_v0  ;;  %v1071_v35 = vunpack.c.l.bf16 %v1323_v23 }
  0x24   : > { %1350 = vst [vmem:[%s1466_s25 + $0x38] sm:$0xff] %v1191_v28   ;;  %v397_v36 = vadd.f32 %v1441_v9, %v326_v29  ;;  %v329_v37 = vmul.f32 %v1067_v30, %v1432_v0  ;;  %v330_v38 = vmul.f32 %v1068_v31, %v1432_v0  ;;  %v1072_v39 = vunpack.c.h.bf16 %v1323_v23  ;;  %v1329_v31 = vld [vmem:[%s1427_s18 + $0x88] sm:$0xff]  }
  0x25   : > { %v460_v41 = vmax.f32 %v396_v32, 0.0  ;;  %v398_v42 = vadd.f32 %v1441_v9, %v327_v33  ;;  %v399_v43 = vadd.f32 %v1441_v9, %v328_v34  ;;  %v331_v44 = vmul.f32 %v1071_v35, %v1432_v0 }
  0x26   : > { %v461_v45 = vmax.f32 %v397_v36, 0.0  ;;  %v400_v46 = vadd.f32 %v1441_v9, %v329_v37  ;;  %v401_v47 = vadd.f32 %v1441_v9, %v330_v38  ;;  %v332_v48 = vmul.f32 %v1072_v39, %v1432_v0  ;;  %v1330_v36 = vld [vmem:[%s1427_s18 + $0x90] sm:$0xff]  }
  0x27   : > { %v462_v49 = vmax.f32 %v398_v42, 0.0  ;;  %v463_v50 = vmax.f32 %v399_v43, 0.0  ;;  %v402_v51 = vadd.f32 %v1441_v9, %v331_v44  ;;  %v1075_v52 = vunpack.c.l.bf16 %v1324_v40 }
  0x28   : > { %v1196_v54 = vpack.c.bf16 %v461_v45, %v460_v41  ;;  %v464_v55 = vmax.f32 %v400_v46, 0.0  ;;  %v465_v56 = vmax.f32 %v401_v47, 0.0  ;;  %v403_v57 = vadd.f32 %v1441_v9, %v332_v48  ;;  %v1331_v41 = vld [vmem:[%s1427_s18 + $0x98] sm:$0xff]  }
  0x29   : > { %v1201_v59 = vpack.c.bf16 %v463_v50, %v462_v49  ;;  %v466_v60 = vmax.f32 %v402_v51, 0.0  ;;  %v1076_v61 = vunpack.c.h.bf16 %v1324_v40  ;;  %v333_v62 = vmul.f32 %v1075_v52, %v1432_v0 }
  0x2a   : > { %1351 = vst [vmem:[%s1466_s25 + $0x40] sm:$0xff] %v1196_v54   ;;  %v1206_v1 = vpack.c.bf16 %v465_v56, %v464_v55  ;;  %v467_v2 = vmax.f32 %v403_v57, 0.0  ;;  %v1079_v3 = vunpack.c.l.bf16 %v1325_v53  ;;  %v1080_v4 = vunpack.c.h.bf16 %v1325_v53  ;;  %v1332_v54 = vld [vmem:[%s1427_s18 + $0xa0] sm:$0xff]  }
  0x2b   : > { %1352 = vst [vmem:[%s1466_s25 + $0x48] sm:$0xff] %v1201_v59   ;;  %v334_v5 = vmul.f32 %v1076_v61, %v1432_v0  ;;  %v404_v6 = vadd.f32 %v1441_v9, %v333_v62  ;;  %v1083_v7 = vunpack.c.l.bf16 %v1326_v58  ;;  %v1084_v8 = vunpack.c.h.bf16 %v1326_v58 }
  0x2c   : > { %1353 = vst [vmem:[%s1466_s25 + $0x50] sm:$0xff] %v1206_v1   ;;  %v1211_v10 = vpack.c.bf16 %v467_v2, %v466_v60  ;;  %v335_v11 = vmul.f32 %v1079_v3, %v1432_v0  ;;  %v336_v12 = vmul.f32 %v1080_v4, %v1432_v0  ;;  %v1087_v13 = vunpack.c.l.bf16 %v1327_v63  ;;  %v1333_v4 = vld [vmem:[%s1427_s18 + $0xa8] sm:$0xff]  }
  0x2d   : > { %v405_v15 = vadd.f32 %v1441_v9, %v334_v5  ;;  %v468_v16 = vmax.f32 %v404_v6, 0.0  ;;  %v337_v17 = vmul.f32 %v1083_v7, %v1432_v0  ;;  %v338_v18 = vmul.f32 %v1084_v8, %v1432_v0 }
  0x2e   : > { %1354 = vst [vmem:[%s1466_s25 + $0x58] sm:$0xff] %v1211_v10   ;;  %v406_v19 = vadd.f32 %v1441_v9, %v335_v11  ;;  %v407_v20 = vadd.f32 %v1441_v9, %v336_v12  ;;  %v1088_v21 = vunpack.c.h.bf16 %v1327_v63  ;;  %v339_v22 = vmul.f32 %v1087_v13, %v1432_v0 }
  0x2f   : > { %v469_v23 = vmax.f32 %v405_v15, 0.0  ;;  %v408_v24 = vadd.f32 %v1441_v9, %v337_v17  ;;  %v409_v25 = vadd.f32 %v1441_v9, %v338_v18  ;;  %v1091_v26 = vunpack.c.l.bf16 %v1328_v14 }
  0x30   : > { %v470_v27 = vmax.f32 %v406_v19, 0.0  ;;  %v471_v28 = vmax.f32 %v407_v20, 0.0  ;;  %v340_v29 = vmul.f32 %v1088_v21, %v1432_v0  ;;  %v410_v30 = vadd.f32 %v1441_v9, %v339_v22  ;;  %v1335_v19 = vld [vmem:[%s1427_s18 + $0xb8] sm:$0xff]  }
  0x31   : > { %v1216_v32 = vpack.c.bf16 %v469_v23, %v468_v16  ;;  %v472_v33 = vmax.f32 %v408_v24, 0.0  ;;  %v473_v34 = vmax.f32 %v409_v25, 0.0  ;;  %v1092_v35 = vunpack.c.h.bf16 %v1328_v14  ;;  %v1334_v14 = vld [vmem:[%s1427_s18 + $0xb0] sm:$0xff]  }
  0x32   : > { %v1221_v37 = vpack.c.bf16 %v471_v28, %v470_v27  ;;  %v411_v38 = vadd.f32 %v1441_v9, %v340_v29  ;;  %v474_v39 = vmax.f32 %v410_v30, 0.0  ;;  %v341_v40 = vmul.f32 %v1091_v26, %v1432_v0 }
  0x33   : > { %1355 = vst [vmem:[%s1466_s25 + $0x60] sm:$0xff] %v1216_v32   ;;  %v1226_v42 = vpack.c.bf16 %v473_v34, %v472_v33  ;;  %v342_v43 = vmul.f32 %v1092_v35, %v1432_v0  ;;  %v1095_v44 = vunpack.c.l.bf16 %v1329_v31  ;;  %v1096_v45 = vunpack.c.h.bf16 %v1329_v31  ;;  %v1336_v32 = vld [vmem:[%s1427_s18 + $0xc0] sm:$0xff]  }
  0x34   : > { %1356 = vst [vmem:[%s1466_s25 + $0x68] sm:$0xff] %v1221_v37   ;;  %v475_v46 = vmax.f32 %v411_v38, 0.0  ;;  %v412_v47 = vadd.f32 %v1441_v9, %v341_v40  ;;  %v1099_v48 = vunpack.c.l.bf16 %v1330_v36  ;;  %v1100_v49 = vunpack.c.h.bf16 %v1330_v36 }
  0x35   : > { %1357 = vst [vmem:[%s1466_s25 + $0x70] sm:$0xff] %v1226_v42   ;;  %v413_v50 = vadd.f32 %v1441_v9, %v342_v43  ;;  %v343_v51 = vmul.f32 %v1095_v44, %v1432_v0  ;;  %v344_v52 = vmul.f32 %v1096_v45, %v1432_v0  ;;  %v1103_v53 = vunpack.c.l.bf16 %v1331_v41  ;;  %v1337_v45 = vld [vmem:[%s1427_s18 + $0xc8] sm:$0xff]  }
  0x36   : > { %v1231_v55 = vpack.c.bf16 %v475_v46, %v474_v39  ;;  %v476_v56 = vmax.f32 %v412_v47, 0.0  ;;  %v345_v57 = vmul.f32 %v1099_v48, %v1432_v0  ;;  %v346_v58 = vmul.f32 %v1100_v49, %v1432_v0 }
  0x37   : > { %v477_v59 = vmax.f32 %v413_v50, 0.0  ;;  %v414_v60 = vadd.f32 %v1441_v9, %v343_v51  ;;  %v415_v61 = vadd.f32 %v1441_v9, %v344_v52  ;;  %v1104_v62 = vunpack.c.h.bf16 %v1331_v41 }
  0x38   : > { %1358 = vst [vmem:[%s1466_s25 + $0x78] sm:$0xff] %v1231_v55   ;;  %v416_v63 = vadd.f32 %v1441_v9, %v345_v57  ;;  %v417_v1 = vadd.f32 %v1441_v9, %v346_v58  ;;  %v347_v2 = vmul.f32 %v1103_v53, %v1432_v0  ;;  %v1107_v3 = vunpack.c.l.bf16 %v1332_v54 }
  0x39   : > { %v1236_v5 = vpack.c.bf16 %v477_v59, %v476_v56  ;;  %v478_v6 = vmax.f32 %v414_v60, 0.0  ;;  %v479_v7 = vmax.f32 %v415_v61, 0.0  ;;  %v348_v8 = vmul.f32 %v1104_v62, %v1432_v0 }
  0x3a   : > { %v480_v10 = vmax.f32 %v416_v63, 0.0  ;;  %v481_v11 = vmax.f32 %v417_v1, 0.0  ;;  %v418_v12 = vadd.f32 %v1441_v9, %v347_v2  ;;  %v1108_v13 = vunpack.c.h.bf16 %v1332_v54  ;;  %v1338_v54 = vld [vmem:[%s1427_s18 + $0xd0] sm:$0xff]   ;;  %v1339_v63 = vld [vmem:[%s1427_s18 + $0xd8] sm:$0xff]  }
  0x3b   : > { %1359 = vst [vmem:[%s1466_s25 + $0x80] sm:$0xff] %v1236_v5   ;;  %v1241_v15 = vpack.c.bf16 %v479_v7, %v478_v6  ;;  %v419_v16 = vadd.f32 %v1441_v9, %v348_v8  ;;  %v349_v17 = vmul.f32 %v1107_v3, %v1432_v0  ;;  %v1111_v18 = vunpack.c.l.bf16 %v1333_v4 }
  0x3c   : > { %v1246_v20 = vpack.c.bf16 %v481_v11, %v480_v10  ;;  %v482_v21 = vmax.f32 %v418_v12, 0.0  ;;  %v350_v22 = vmul.f32 %v1108_v13, %v1432_v0  ;;  %v1112_v23 = vunpack.c.h.bf16 %v1333_v4  ;;  %v1340_v10 = vld [vmem:[%s1427_s18 + $0xe0] sm:$0xff]  }
  0x3d   : > { %1360 = vst [vmem:[%s1466_s25 + $0x88] sm:$0xff] %v1241_v15   ;;  %v483_v24 = vmax.f32 %v419_v16, 0.0  ;;  %v420_v25 = vadd.f32 %v1441_v9, %v349_v17  ;;  %v351_v26 = vmul.f32 %v1111_v18, %v1432_v0  ;;  %v1115_v27 = vunpack.c.l.bf16 %v1334_v14 }
  0x3e   : > { %1361 = vst [vmem:[%s1466_s25 + $0x90] sm:$0xff] %v1246_v20   ;;  %v421_v28 = vadd.f32 %v1441_v9, %v350_v22  ;;  %v352_v29 = vmul.f32 %v1112_v23, %v1432_v0  ;;  %v1116_v30 = vunpack.c.h.bf16 %v1334_v14  ;;  %v1119_v31 = vunpack.c.l.bf16 %v1335_v19  ;;  %v1341_v23 = vld [vmem:[%s1427_s18 + $0xe8] sm:$0xff]  }
  0x3f   : > { %v1251_v33 = vpack.c.bf16 %v483_v24, %v482_v21  ;;  %v484_v34 = vmax.f32 %v420_v25, 0.0  ;;  %v422_v35 = vadd.f32 %v1441_v9, %v351_v26  ;;  %v353_v36 = vmul.f32 %v1115_v27, %v1432_v0 }
  0x40   : > { %v485_v37 = vmax.f32 %v421_v28, 0.0  ;;  %v423_v38 = vadd.f32 %v1441_v9, %v352_v29  ;;  %v354_v39 = vmul.f32 %v1116_v30, %v1432_v0  ;;  %v1120_v40 = vunpack.c.h.bf16 %v1335_v19 }
  0x41   : > { %1362 = vst [vmem:[%s1466_s25 + $0x98] sm:$0xff] %v1251_v33   ;;  %v486_v41 = vmax.f32 %v422_v35, 0.0  ;;  %v424_v42 = vadd.f32 %v1441_v9, %v353_v36  ;;  %v355_v43 = vmul.f32 %v1119_v31, %v1432_v0  ;;  %v1123_v44 = vunpack.c.l.bf16 %v1336_v32 }
  0x42   : > { %v1256_v46 = vpack.c.bf16 %v485_v37, %v484_v34  ;;  %v487_v47 = vmax.f32 %v423_v38, 0.0  ;;  %v425_v48 = vadd.f32 %v1441_v9, %v354_v39  ;;  %v356_v49 = vmul.f32 %v1120_v40, %v1432_v0 }
  0x43   : > { %v488_v50 = vmax.f32 %v424_v42, 0.0  ;;  %v426_v51 = vadd.f32 %v1441_v9, %v355_v43  ;;  %v1124_v52 = vunpack.c.h.bf16 %v1336_v32  ;;  %v357_v53 = vmul.f32 %v1123_v44, %v1432_v0  ;;  %v1342_v32 = vld [vmem:[%s1427_s18 + $0xf0] sm:$0xff]  }
  0x44   : > { %1363 = vst [vmem:[%s1466_s25 + $0xa0] sm:$0xff] %v1256_v46   ;;  %v1261_v55 = vpack.c.bf16 %v487_v47, %v486_v41  ;;  %v489_v56 = vmax.f32 %v425_v48, 0.0  ;;  %v427_v57 = vadd.f32 %v1441_v9, %v356_v49  ;;  %v1127_v58 = vunpack.c.l.bf16 %v1337_v45  ;;  %v1343_v41 = vld [vmem:[%s1427_s18 + $0xf8] sm:$0xff]  }
  0x45   : > { %v490_v59 = vmax.f32 %v426_v51, 0.0  ;;  %v358_v60 = vmul.f32 %v1124_v52, %v1432_v0  ;;  %v428_v61 = vadd.f32 %v1441_v9, %v357_v53  ;;  %v1128_v62 = vunpack.c.h.bf16 %v1337_v45 }
  0x46   : > { %1364 = vst [vmem:[%s1466_s25 + $0xa8] sm:$0xff] %v1261_v55   ;;  %v1266_v1 = vpack.c.bf16 %v489_v56, %v488_v50  ;;  %v491_v2 = vmax.f32 %v427_v57, 0.0  ;;  %v359_v3 = vmul.f32 %v1127_v58, %v1432_v0  ;;  %v1131_v4 = vunpack.c.l.bf16 %v1338_v54 }
  0x47   : > { %v429_v5 = vadd.f32 %v1441_v9, %v358_v60  ;;  %v492_v6 = vmax.f32 %v428_v61, 0.0  ;;  %v360_v7 = vmul.f32 %v1128_v62, %v1432_v0  ;;  %v1132_v8 = vunpack.c.h.bf16 %v1338_v54 }
  0x48   : > { %1365 = vst [vmem:[%s1466_s25 + $0xb0] sm:$0xff] %v1266_v1   ;;  %v1271_v11 = vpack.c.bf16 %v491_v2, %v490_v59  ;;  %v430_v12 = vadd.f32 %v1441_v9, %v359_v3  ;;  %v361_v13 = vmul.f32 %v1131_v4, %v1432_v0  ;;  %v1135_v14 = vunpack.c.l.bf16 %v1339_v63 }
  0x49   : > { %v493_v15 = vmax.f32 %v429_v5, 0.0  ;;  %v431_v16 = vadd.f32 %v1441_v9, %v360_v7  ;;  %v362_v17 = vmul.f32 %v1132_v8, %v1432_v0  ;;  %v1136_v18 = vunpack.c.h.bf16 %v1339_v63 }
  0x4a   : > { %1366 = vst [vmem:[%s1466_s25 + $0xb8] sm:$0xff] %v1271_v11   ;;  %v494_v19 = vmax.f32 %v430_v12, 0.0  ;;  %v432_v20 = vadd.f32 %v1441_v9, %v361_v13  ;;  %v363_v21 = vmul.f32 %v1135_v14, %v1432_v0  ;;  %v1139_v22 = vunpack.c.l.bf16 %v1340_v10 }
  0x4b   : > { %v1276_v24 = vpack.c.bf16 %v493_v15, %v492_v6  ;;  %v495_v25 = vmax.f32 %v431_v16, 0.0  ;;  %v433_v26 = vadd.f32 %v1441_v9, %v362_v17  ;;  %v364_v27 = vmul.f32 %v1136_v18, %v1432_v0 }
  0x4c   : > { %v496_v28 = vmax.f32 %v432_v20, 0.0  ;;  %v434_v29 = vadd.f32 %v1441_v9, %v363_v21  ;;  %v1140_v30 = vunpack.c.h.bf16 %v1340_v10  ;;  %v365_v31 = vmul.f32 %v1139_v22, %v1432_v0 }
  0x4d   : > { %1367 = vst [vmem:[%s1466_s25 + $0xc0] sm:$0xff] %v1276_v24   ;;  %v1281_v33 = vpack.c.bf16 %v495_v25, %v494_v19  ;;  %v497_v34 = vmax.f32 %v433_v26, 0.0  ;;  %v435_v35 = vadd.f32 %v1441_v9, %v364_v27  ;;  %v1143_v36 = vunpack.c.l.bf16 %v1341_v23 }
  0x4e   : > { %v498_v37 = vmax.f32 %v434_v29, 0.0  ;;  %v366_v38 = vmul.f32 %v1140_v30, %v1432_v0  ;;  %v436_v39 = vadd.f32 %v1441_v9, %v365_v31  ;;  %v1144_v40 = vunpack.c.h.bf16 %v1341_v23 }
  0x4f   : > { %1368 = vst [vmem:[%s1466_s25 + $0xc8] sm:$0xff] %v1281_v33   ;;  %v1286_v42 = vpack.c.bf16 %v497_v34, %v496_v28  ;;  %v499_v43 = vmax.f32 %v435_v35, 0.0  ;;  %v367_v44 = vmul.f32 %v1143_v36, %v1432_v0  ;;  %v1147_v45 = vunpack.c.l.bf16 %v1342_v32 }
  0x50   : > { %v437_v46 = vadd.f32 %v1441_v9, %v366_v38  ;;  %v500_v47 = vmax.f32 %v436_v39, 0.0  ;;  %v368_v48 = vmul.f32 %v1144_v40, %v1432_v0  ;;  %v1148_v49 = vunpack.c.h.bf16 %v1342_v32 }
  0x51   : > { %1369 = vst [vmem:[%s1466_s25 + $0xd0] sm:$0xff] %v1286_v42   ;;  %v1291_v50 = vpack.c.bf16 %v499_v43, %v498_v37  ;;  %v438_v51 = vadd.f32 %v1441_v9, %v367_v44  ;;  %v369_v52 = vmul.f32 %v1147_v45, %v1432_v0  ;;  %v1151_v53 = vunpack.c.l.bf16 %v1343_v41 }
  0x52   : > { %v501_v54 = vmax.f32 %v437_v46, 0.0  ;;  %v439_v55 = vadd.f32 %v1441_v9, %v368_v48  ;;  %v370_v56 = vmul.f32 %v1148_v49, %v1432_v0  ;;  %v1152_v57 = vunpack.c.h.bf16 %v1343_v41 }
  0x53   : > { %1370 = vst [vmem:[%s1466_s25 + $0xd8] sm:$0xff] %v1291_v50   ;;  %v502_v58 = vmax.f32 %v438_v51, 0.0  ;;  %v440_v59 = vadd.f32 %v1441_v9, %v369_v52  ;;  %v371_v60 = vmul.f32 %v1151_v53, %v1432_v0 }
  0x54   : > { %v1296_v61 = vpack.c.bf16 %v501_v54, %v500_v47  ;;  %v503_v62 = vmax.f32 %v439_v55, 0.0  ;;  %v441_v63 = vadd.f32 %v1441_v9, %v370_v56  ;;  %v372_v1 = vmul.f32 %v1152_v57, %v1432_v0 }
  0x55   : > { %v504_v2 = vmax.f32 %v440_v59, 0.0  ;;  %v442_v3 = vadd.f32 %v1441_v9, %v371_v60 }
  0x56   : > { %1371 = vst [vmem:[%s1466_s25 + $0xe0] sm:$0xff] %v1296_v61   ;;  %v1301_v4 = vpack.c.bf16 %v503_v62, %v502_v58  ;;  %v505_v5 = vmax.f32 %v441_v63, 0.0  ;;  %v443_v6 = vadd.f32 %v1441_v9, %v372_v1 }
  0x57   : > { %v506_v7 = vmax.f32 %v442_v3, 0.0 }
  0x58   : > { %1372 = vst [vmem:[%s1466_s25 + $0xe8] sm:$0xff] %v1301_v4   ;;  %v1306_v8 = vpack.c.bf16 %v505_v5, %v504_v2  ;;  %v507_v10 = vmax.f32 %v443_v6, 0.0 }
  0x5a   : > { %1373 = vst [vmem:[%s1466_s25 + $0xf0] sm:$0xff] %v1306_v8   ;;  %v1311_v11 = vpack.c.bf16 %v507_v10, %v506_v7 }
  0x5c   : > { %1374 = vst [vmem:[%s1466_s25 + $0xf8] sm:$0xff] %v1311_v11  }
  0x5d PF: > { %s13_s12 = sadd.s32 1, %s1389_s12  }
  0x5e   : > { %p10_p4 = scmp.ge.s32.totalorder %s13_s12, 4  }
  0x60   :  { %12 = sbr.rel (!%p10_p4) target bundleno = 1 (0x1), region = 62 }

// kernel: double_conv_forward.4
= control target key start
LH: loop header
LB: loop body
LE: loop exit
PB: predicated region body
PF: predicated region fallthrough
CT: control target
= control target key end

     0   :  { %s2150_s15 = smov 0   ;;  %s2498_s0 = inlined_call_operand.vmem [shape: bf16[1024,108], index: 0, kind: input, shape index: {}]   ;;  %s2499_s1 = inlined_call_operand.vmem [shape: bf16[108,128], index: 1, kind: input, shape index: {}]   ;;  %s2500_s2 = inlined_call_operand.vmem [shape: bf16[1024,128], index: 2, kind: output, shape index: {0}]   ;;  %s2501_s3 = inlined_call_operand.vmem [shape: f32[2,8,128], index: 3, kind: output, shape index: {1}]   ;;  %s2502_s4 = inlined_call_operand.vmem [shape: f32[2,8,128], index: 4, kind: output, shape index: {2}]  }
   0x1 LB: > { %s2156_s16 = sadd.s32 4294967295, %s2123_s15   ;;  %p1538_p0 = scmp.ge.s32.totalorder %s2123_s15, 1  ;;  %s2123_s15 = sphi %s2150_s15, %s15_s15  }
   0x2   : > { %p168_p1 = scmp.lt.s32.totalorder %s2123_s15, 3 }
   0x4   : > { %p169_p2 = pnand %p1538_p0, %p168_p1 }
   0x5   : > { %s1539_s21 = sshll.u32 (!%p169_p2), %s2156_s16, 6  ;;  %p214_p4 = scmp.lt.s32.totalorder (!%p169_p2), %s2156_s16, 1 }
   0x6   : > { %172 = sbr.rel (%p169_p2) target bundleno = 380 (0x17c), region = 28  ;;  %p203_p3 = scmp.lt.s32.totalorder (!%p169_p2), %s1539_s21, 127 }
   0xb   : > { %v2078_v0 = vld [vmem:[%s2499_s1 + $0x30] sm:$0x3f]   ;;  %vm599_vm0 = vcmask 1045504   ;;  %v2079_v1 = vld [vmem:[%s2499_s1 + $0x28] sm:$0xff]   ;;  %v2080_v3 = vld [vmem:[%s2499_s1 + $0x20] sm:$0xff]   ;;  %s2504_s21 = smov (!%p203_p3, %s1539_s21), 127 }
   0xc   : > { %2068 = vmatprep.subr.msk.bf16.mxu0 %vm599_vm0, %v2078_v0  ;;  %v601_v2 = vsel %vm599_vm0, %v2078_v0, 0  ;;  %2069 = vmatprep.subr.msk.bf16.mxu1 %vm599_vm0, %v2078_v0  ;;  %v2081_v4 = vld [vmem:[%s2499_s1 + $0x18] sm:$0xff]   ;;  %s1540_s26 = sshll.u32 %s2504_s21, 2  ;;  %vm502_vm1 = vcmask 883712   ;;  %v2082_v6 = vld [vmem:[%s2499_s1 + $0x10] sm:$0xff]   ;;  %v2083_v7 = vld [vmem:[%s2499_s1 + $0x8] sm:$0xff]  }
   0xd   : > { %1977 = vmatpush3.bf16.msra.mxu0 %v601_v2  ;;  %2061 = vmatpush3.bf16.msra.mxu1 %v601_v2  ;;  %s2181_s29 = scalar_lea.vmem %s2498_s0, %s1540_s26  ;;  %v2084_v8 = vld [vmem:[%s2499_s1] sm:$0xff]   ;;  %s2265_s12 = scalar_lea.vmem %s2500_s2, %s1540_s26 }
   0xe   : > { %1978 = vmatprep.subr.bf16.mxu0 %v2079_v1  ;;  %2055 = vmatprep.subr.bf16.mxu1 %v2079_v1  ;;  %v2085_v5 = vld [vmem:[%s2181_s29] sm:$0xff]   ;;  %v2086_v9 = vld [vmem:[%s2181_s29 + $0x8] sm:$0xff]   ;;  %v2087_v10 = vld [vmem:[%s2181_s29 + $0x10] sm:$0xff]   ;;  %s2506_s16 = smov (!%p214_p4, %s2156_s16), 1 }
   0xf   : > { %1990 = vmatprep.mubr.msk.bf16.mxu0 %vm502_vm1, %v2085_v5  ;;  %v2101_v11 = vld [vmem:[%s2181_s29 + $0x80] sm:$0xff]   ;;  %v2102_v12 = vld [vmem:[%s2181_s29 + $0x88] sm:$0xff]   ;;  %v2103_v13 = vld [vmem:[%s2181_s29 + $0x90] sm:$0xff]   ;;  %s1543_s13 = sshll.u32 %s2506_s16, 3 }
  0x10   : > { %2022 = vmatprep.mubr.msk.bf16.mxu1 %vm502_vm1, %v2101_v11  ;;  %v2088_v14 = vld [vmem:[%s2181_s29 + $0x18] sm:$0xff]   ;;  %v2089_v15 = vld [vmem:[%s2181_s29 + $0x20] sm:$0xff]   ;;  %v2090_v18 = vld [vmem:[%s2181_s29 + $0x28] sm:$0xff]   ;;  %s217_s18 = scalar_lea.vmem %s2501_s3, %s1543_s13  ;;  %s221_s21 = scalar_lea.vmem %s2502_s4, %s1543_s13 }
  0x11   : > { %1979 = vmatpush3.bf16.msra.mxu0 %v2079_v1  ;;  %2062 = vmatpush3.bf16.msra.mxu1 %v2079_v1  ;;  %v2104_v16 = vld [vmem:[%s2181_s29 + $0x98] sm:$0xff]   ;;  %v2105_v17 = vld [vmem:[%s2181_s29 + $0xa0] sm:$0xff]   ;;  %v2106_v19 = vld [vmem:[%s2181_s29 + $0xa8] sm:$0xff]  }
  0x12   : > { %1980 = vmatprep.subr.bf16.mxu0 %v2080_v3  ;;  %2056 = vmatprep.subr.bf16.mxu1 %v2080_v3  ;;  %v2091_v20 = vld [vmem:[%s2181_s29 + $0x30] sm:$0xff]   ;;  %v2092_v22 = vld [vmem:[%s2181_s29 + $0x38] sm:$0xff]   ;;  %v2093_v24 = vld [vmem:[%s2181_s29 + $0x40] sm:$0xff]  }
  0x13   : > { %v2107_v21 = vld [vmem:[%s2181_s29 + $0xb0] sm:$0xff]   ;;  %v2108_v23 = vld [vmem:[%s2181_s29 + $0xb8] sm:$0xff]   ;;  %v2109_v25 = vld [vmem:[%s2181_s29 + $0xc0] sm:$0xff]  }
  0x14   : > { %v2094_v26 = vld [vmem:[%s2181_s29 + $0x48] sm:$0xff]   ;;  %v2095_v28 = vld [vmem:[%s2181_s29 + $0x50] sm:$0xff]   ;;  %v2096_v30 = vld [vmem:[%s2181_s29 + $0x58] sm:$0xff]  }
  0x15   : > { %1981 = vmatpush3.bf16.msra.mxu0 %v2080_v3  ;;  %2063 = vmatpush3.bf16.msra.mxu1 %v2080_v3  ;;  %v2110_v27 = vld [vmem:[%s2181_s29 + $0xc8] sm:$0xff]   ;;  %v2111_v29 = vld [vmem:[%s2181_s29 + $0xd0] sm:$0xff]   ;;  %v2112_v31 = vld [vmem:[%s2181_s29 + $0xd8] sm:$0xff]  }
  0x16   : > { %1982 = vmatprep.subr.bf16.mxu0 %v2081_v4  ;;  %2057 = vmatprep.subr.bf16.mxu1 %v2081_v4  ;;  %v2097_v32 = vld [vmem:[%s2181_s29 + $0x60] sm:$0xff]   ;;  %v2098_v34 = vld [vmem:[%s2181_s29 + $0x68] sm:$0xff]   ;;  %v2099_v36 = vld [vmem:[%s2181_s29 + $0x70] sm:$0xff]  }
  0x17   : > { %v2113_v33 = vld [vmem:[%s2181_s29 + $0xe0] sm:$0xff]   ;;  %v2114_v35 = vld [vmem:[%s2181_s29 + $0xe8] sm:$0xff]   ;;  %v2115_v37 = vld [vmem:[%s2181_s29 + $0xf0] sm:$0xff]  }
  0x18   : > { %v2100_v38 = vld [vmem:[%s2181_s29 + $0x78] sm:$0xff]  }
  0x19   : > { %1983 = vmatpush3.bf16.msra.mxu0 %v2081_v4  ;;  %2064 = vmatpush3.bf16.msra.mxu1 %v2081_v4  ;;  %v2116_v39 = vld [vmem:[%s2181_s29 + $0xf8] sm:$0xff]  }
  0x1a   : > { %1984 = vmatprep.subr.bf16.mxu0 %v2082_v6  ;;  %2058 = vmatprep.subr.bf16.mxu1 %v2082_v6 }
  0x1d   : > { %1985 = vmatpush3.bf16.msra.mxu0 %v2082_v6  ;;  %2065 = vmatpush3.bf16.msra.mxu1 %v2082_v6 }
  0x1e   : > { %1986 = vmatprep.subr.bf16.mxu0 %v2083_v7  ;;  %2059 = vmatprep.subr.bf16.mxu1 %v2083_v7 }
  0x21   : > { %1987 = vmatpush3.bf16.msra.mxu0 %v2083_v7  ;;  %2066 = vmatpush3.bf16.msra.mxu1 %v2083_v7 }
  0x22   : > { %1988 = vmatprep.subr.bf16.mxu0 %v2084_v8  ;;  %2060 = vmatprep.subr.bf16.mxu1 %v2084_v8 }
  0x25   : > { %1989 = vmatpush3.bf16.msra.mxu0 %v2084_v8  ;;  %2067 = vmatpush3.bf16.msra.mxu1 %v2084_v8 }
  0x28   : > { %1991 = vmatmul.mubr.msk.bf16.vlgmr.msra.gmra.mxu0 %vm502_vm1, %v2086_v9  ;;  %2023 = vmatmul.mubr.msk.bf16.vlgmr.msra.gmra.mxu1 %vm502_vm1, %v2102_v12 }
  0x29   : > { %1994 = vmatprep.mubr.msk.bf16.mxu0 %vm502_vm1, %v2087_v10  ;;  %2026 = vmatprep.mubr.msk.bf16.mxu1 %vm502_vm1, %v2103_v13 }
  0x30   : > { %1995 = vmatmul.mubr.msk.bf16.gmra.mxu0 %vm502_vm1, %v2088_v14  ;;  %2027 = vmatmul.mubr.msk.bf16.gmra.mxu1 %vm502_vm1, %v2104_v16 }
  0x31   : > { %1998 = vmatprep.mubr.msk.bf16.mxu0 %vm502_vm1, %v2089_v15  ;;  %2030 = vmatprep.mubr.msk.bf16.mxu1 %vm502_vm1, %v2105_v17 }
  0x38   : > { %1999 = vmatmul.mubr.msk.bf16.gmra.mxu0 %vm502_vm1, %v2090_v18  ;;  %2031 = vmatmul.mubr.msk.bf16.gmra.mxu1 %vm502_vm1, %v2106_v19 }
  0x39   : > { %2002 = vmatprep.mubr.msk.bf16.mxu0 %vm502_vm1, %v2091_v20  ;;  %2034 = vmatprep.mubr.msk.bf16.mxu1 %vm502_vm1, %v2107_v21 }
  0x40   : > { %2003 = vmatmul.mubr.msk.bf16.gmra.mxu0 %vm502_vm1, %v2092_v22  ;;  %2035 = vmatmul.mubr.msk.bf16.gmra.mxu1 %vm502_vm1, %v2108_v23 }
  0x41   : > { %2006 = vmatprep.mubr.msk.bf16.mxu0 %vm502_vm1, %v2093_v24  ;;  %2038 = vmatprep.mubr.msk.bf16.mxu1 %vm502_vm1, %v2109_v25 }
  0x48   : > { %2007 = vmatmul.mubr.msk.bf16.gmra.mxu0 %vm502_vm1, %v2094_v26  ;;  %2039 = vmatmul.mubr.msk.bf16.gmra.mxu1 %vm502_vm1, %v2110_v27 }
  0x49   : > { %2010 = vmatprep.mubr.msk.bf16.mxu0 %vm502_vm1, %v2095_v28  ;;  %2042 = vmatprep.mubr.msk.bf16.mxu1 %vm502_vm1, %v2111_v29 }
  0x50   : > { %2011 = vmatmul.mubr.msk.bf16.gmra.mxu0 %vm502_vm1, %v2096_v30  ;;  %2043 = vmatmul.mubr.msk.bf16.gmra.mxu1 %vm502_vm1, %v2112_v31 }
  0x51   : > { %2014 = vmatprep.mubr.msk.bf16.mxu0 %vm502_vm1, %v2097_v32  ;;  %2046 = vmatprep.mubr.msk.bf16.mxu1 %vm502_vm1, %v2113_v33 }
  0x58   : > { %2015 = vmatmul.mubr.msk.bf16.gmra.mxu0 %vm502_vm1, %v2098_v34  ;;  %2047 = vmatmul.mubr.msk.bf16.gmra.mxu1 %vm502_vm1, %v2114_v35 }
  0x59   : > { %2018 = vmatprep.mubr.msk.bf16.mxu0 %vm502_vm1, %v2099_v36  ;;  %2050 = vmatprep.mubr.msk.bf16.mxu1 %vm502_vm1, %v2115_v37 }
  0x60   : > { %2019 = vmatmul.mubr.msk.bf16.gmra.mxu0 %vm502_vm1, %v2100_v38  ;;  %2051 = vmatmul.mubr.msk.bf16.gmra.mxu1 %vm502_vm1, %v2116_v39 }
  0xe8   : > { %v1992_v40 = vpop.f32.mrf.mxu0  ;;  %v2256_v41 = vpop.f32.mrf.mxu1 }
  0xe9   : > { %v1283_v57 = vmul.f32 %v1992_v40, %v1992_v40 }
  0xea   : > { %v637_v42 = vpop.f32.mrf.mxu0  ;;  %v2258_v43 = vpop.f32.mrf.mxu1 }
  0xeb   : > { %v1281_v48 = vmul.f32 %v637_v42, %v637_v42 }
  0xec   : > { %v1993_v44 = vpop.f32.mrf.mxu0  ;;  %v2267_v45 = vpop.f32.mrf.mxu1 }
  0xed   : > { %v1754_v46 = vpack.c.bf16 %v1993_v44, %v1992_v40  ;;  %v1834_v47 = vpack.c.bf16 %v2267_v45, %v2256_v41  ;;  %v1284_v62 = vmul.f32 %v1993_v44, %v1993_v44 }
  0xee   : > { %v640_v49 = vpop.f32.mrf.mxu0  ;;  %v2271_v50 = vpop.f32.mrf.mxu1 }
  0xef   : > { %1906 = vst [vmem:[%s2265_s12 + $0x8] sm:$0xff] %v1754_v46   ;;  %v1749_v51 = vpack.c.bf16 %v640_v49, %v637_v42  ;;  %v1212_v52 = vadd.f32 %v640_v49, %v637_v42  ;;  %v1282_v53 = vmul.f32 %v640_v49, %v640_v49  ;;  %1922 = vst [vmem:[%s2265_s12 + $0x88] sm:$0xff] %v1834_v47  }
  0xf0   : > { %v1829_v54 = vpack.c.bf16 %v2271_v50, %v2258_v43  ;;  %v1996_v55 = vpop.f32.mrf.mxu0  ;;  %v2277_v56 = vpop.f32.mrf.mxu1 }
  0xf1   : > { %1750 = vst [vmem:[%s2265_s12] sm:$0xff] %v1749_v51   ;;  %v1213_v58 = vadd.f32 %v1992_v40, %v1212_v52  ;;  %v1345_v59 = vadd.f32 %v1282_v53, %v1281_v48  ;;  %v1287_v17 = vmul.f32 %v1996_v55, %v1996_v55 }
  0xf2   : > { %1921 = vst [vmem:[%s2265_s12 + $0x80] sm:$0xff] %v1829_v54   ;;  %v653_v60 = vpop.f32.mrf.mxu0  ;;  %v2281_v61 = vpop.f32.mrf.mxu1 }
  0xf3   : > { %v1346_v63 = vadd.f32 %v1345_v59, %v1283_v57  ;;  %v1214_v0 = vadd.f32 %v1993_v44, %v1213_v58  ;;  %v1285_v4 = vmul.f32 %v653_v60, %v653_v60 }
  0xf4   : > { %v1997_v1 = vpop.f32.mrf.mxu0  ;;  %v2283_v2 = vpop.f32.mrf.mxu1 }
  0xf5   : > { %v1215_v3 = vadd.f32 %v1214_v0, %v653_v60  ;;  %v1347_v5 = vadd.f32 %v1346_v63, %v1284_v62  ;;  %v1764_v6 = vpack.c.bf16 %v1997_v1, %v1996_v55  ;;  %v1844_v8 = vpack.c.bf16 %v2283_v2, %v2277_v56 }
  0xf6   : > { %v656_v7 = vpop.f32.mrf.mxu0  ;;  %v2287_v9 = vpop.f32.mrf.mxu1  ;;  %v1288_v22 = vmul.f32 %v1997_v1, %v1997_v1 }
  0xf7   : > { %v1348_v10 = vadd.f32 %v1347_v5, %v1285_v4  ;;  %1908 = vst [vmem:[%s2265_s12 + $0x18] sm:$0xff] %v1764_v6   ;;  %v1759_v11 = vpack.c.bf16 %v656_v7, %v653_v60  ;;  %v1216_v12 = vadd.f32 %v1215_v3, %v656_v7  ;;  %v1286_v13 = vmul.f32 %v656_v7, %v656_v7 }
  0xf8   : > { %v2000_v14 = vpop.f32.mrf.mxu0  ;;  %1924 = vst [vmem:[%s2265_s12 + $0x98] sm:$0xff] %v1844_v8   ;;  %v1839_v15 = vpack.c.bf16 %v2287_v9, %v2281_v61  ;;  %v2293_v16 = vpop.f32.mrf.mxu1 }
  0xf9   : > { %1907 = vst [vmem:[%s2265_s12 + $0x10] sm:$0xff] %v1759_v11   ;;  %v1217_v18 = vadd.f32 %v1996_v55, %v1216_v12  ;;  %v1349_v19 = vadd.f32 %v1348_v10, %v1286_v13  ;;  %v1291_v42 = vmul.f32 %v2000_v14, %v2000_v14 }
  0xfa   : > { %v669_v20 = vpop.f32.mrf.mxu0  ;;  %1923 = vst [vmem:[%s2265_s12 + $0x90] sm:$0xff] %v1839_v15   ;;  %v2297_v21 = vpop.f32.mrf.mxu1 }
  0xfb   : > { %v1350_v23 = vadd.f32 %v1349_v19, %v1287_v17  ;;  %v1218_v24 = vadd.f32 %v1997_v1, %v1217_v18  ;;  %v1289_v28 = vmul.f32 %v669_v20, %v669_v20 }
  0xfc   : > { %v2001_v25 = vpop.f32.mrf.mxu0  ;;  %v2299_v26 = vpop.f32.mrf.mxu1 }
  0xfd   : > { %v1219_v27 = vadd.f32 %v1218_v24, %v669_v20  ;;  %v1351_v29 = vadd.f32 %v1350_v23, %v1288_v22  ;;  %v1774_v30 = vpack.c.bf16 %v2001_v25, %v2000_v14  ;;  %v1854_v32 = vpack.c.bf16 %v2299_v26, %v2293_v16 }
  0xfe   : > { %v672_v31 = vpop.f32.mrf.mxu0  ;;  %v2303_v33 = vpop.f32.mrf.mxu1  ;;  %v1292_v49 = vmul.f32 %v2001_v25, %v2001_v25 }
  0xff   : > { %v1352_v34 = vadd.f32 %v1351_v29, %v1289_v28  ;;  %1910 = vst [vmem:[%s2265_s12 + $0x28] sm:$0xff] %v1774_v30   ;;  %v1769_v35 = vpack.c.bf16 %v672_v31, %v669_v20  ;;  %v1220_v36 = vadd.f32 %v1219_v27, %v672_v31  ;;  %v1290_v37 = vmul.f32 %v672_v31, %v672_v31 }
 0x100   : > { %v2004_v38 = vpop.f32.mrf.mxu0  ;;  %1926 = vst [vmem:[%s2265_s12 + $0xa8] sm:$0xff] %v1854_v32   ;;  %v1849_v39 = vpack.c.bf16 %v2303_v33, %v2297_v21  ;;  %v2309_v40 = vpop.f32.mrf.mxu1 }
 0x101   : > { %1909 = vst [vmem:[%s2265_s12 + $0x20] sm:$0xff] %v1769_v35   ;;  %v1221_v44 = vadd.f32 %v2000_v14, %v1220_v36  ;;  %v1353_v46 = vadd.f32 %v1352_v34, %v1290_v37  ;;  %v1295_v8 = vmul.f32 %v2004_v38, %v2004_v38 }
 0x102   : > { %v685_v47 = vpop.f32.mrf.mxu0  ;;  %1925 = vst [vmem:[%s2265_s12 + $0xa0] sm:$0xff] %v1849_v39   ;;  %v2313_v48 = vpop.f32.mrf.mxu1 }
 0x103   : > { %v1354_v51 = vadd.f32 %v1353_v46, %v1291_v42  ;;  %v1222_v52 = vadd.f32 %v2001_v25, %v1221_v44  ;;  %v1293_v57 = vmul.f32 %v685_v47, %v685_v47 }
 0x104   : > { %v2005_v53 = vpop.f32.mrf.mxu0  ;;  %v2315_v54 = vpop.f32.mrf.mxu1 }
 0x105   : > { %v1223_v55 = vadd.f32 %v1222_v52, %v685_v47  ;;  %v1355_v58 = vadd.f32 %v1354_v51, %v1292_v49  ;;  %v1784_v59 = vpack.c.bf16 %v2005_v53, %v2004_v38  ;;  %v1864_v62 = vpack.c.bf16 %v2315_v54, %v2309_v40 }
 0x106   : > { %v688_v60 = vpop.f32.mrf.mxu0  ;;  %v2319_v63 = vpop.f32.mrf.mxu1  ;;  %v1296_v14 = vmul.f32 %v2005_v53, %v2005_v53 }
 0x107   : > { %v1356_v0 = vadd.f32 %v1355_v58, %v1293_v57  ;;  %1912 = vst [vmem:[%s2265_s12 + $0x38] sm:$0xff] %v1784_v59   ;;  %v1779_v1 = vpack.c.bf16 %v688_v60, %v685_v47  ;;  %v1224_v3 = vadd.f32 %v1223_v55, %v688_v60  ;;  %v1294_v4 = vmul.f32 %v688_v60, %v688_v60 }
 0x108   : > { %v2008_v5 = vpop.f32.mrf.mxu0  ;;  %1928 = vst [vmem:[%s2265_s12 + $0xb8] sm:$0xff] %v1864_v62   ;;  %v1859_v6 = vpack.c.bf16 %v2319_v63, %v2313_v48  ;;  %v2325_v7 = vpop.f32.mrf.mxu1 }
 0x109   : > { %1911 = vst [vmem:[%s2265_s12 + $0x30] sm:$0xff] %v1779_v1   ;;  %v1225_v10 = vadd.f32 %v2004_v38, %v1224_v3  ;;  %v1357_v11 = vadd.f32 %v1356_v0, %v1294_v4  ;;  %v1299_v37 = vmul.f32 %v2008_v5, %v2008_v5 }
 0x10a   : > { %v701_v12 = vpop.f32.mrf.mxu0  ;;  %1927 = vst [vmem:[%s2265_s12 + $0xb0] sm:$0xff] %v1859_v6   ;;  %v2329_v13 = vpop.f32.mrf.mxu1 }
 0x10b   : > { %v1358_v15 = vadd.f32 %v1357_v11, %v1295_v8  ;;  %v1226_v17 = vadd.f32 %v2005_v53, %v1225_v10  ;;  %v1297_v22 = vmul.f32 %v701_v12, %v701_v12 }
 0x10c   : > { %v2009_v18 = vpop.f32.mrf.mxu0  ;;  %v2331_v19 = vpop.f32.mrf.mxu1 }
 0x10d   : > { %v1227_v20 = vadd.f32 %v1226_v17, %v701_v12  ;;  %v1359_v23 = vadd.f32 %v1358_v15, %v1296_v14  ;;  %v1794_v24 = vpack.c.bf16 %v2009_v18, %v2008_v5  ;;  %v1874_v27 = vpack.c.bf16 %v2331_v19, %v2325_v7 }
 0x10e   : > { %v704_v25 = vpop.f32.mrf.mxu0  ;;  %v2335_v28 = vpop.f32.mrf.mxu1  ;;  %v1300_v46 = vmul.f32 %v2009_v18, %v2009_v18 }
 0x10f   : > { %v1360_v29 = vadd.f32 %v1359_v23, %v1297_v22  ;;  %1914 = vst [vmem:[%s2265_s12 + $0x48] sm:$0xff] %v1794_v24   ;;  %v1789_v30 = vpack.c.bf16 %v704_v25, %v701_v12  ;;  %v1228_v31 = vadd.f32 %v1227_v20, %v704_v25  ;;  %v1298_v32 = vmul.f32 %v704_v25, %v704_v25 }
 0x110   : > { %v2012_v34 = vpop.f32.mrf.mxu0  ;;  %1930 = vst [vmem:[%s2265_s12 + $0xc8] sm:$0xff] %v1874_v27   ;;  %v1869_v35 = vpack.c.bf16 %v2335_v28, %v2329_v13  ;;  %v2341_v36 = vpop.f32.mrf.mxu1 }
 0x111   : > { %1913 = vst [vmem:[%s2265_s12 + $0x40] sm:$0xff] %v1789_v30   ;;  %v1229_v38 = vadd.f32 %v2008_v5, %v1228_v31  ;;  %v1361_v39 = vadd.f32 %v1360_v29, %v1298_v32  ;;  %v1303_v10 = vmul.f32 %v2012_v34, %v2012_v34 }
 0x112   : > { %v717_v42 = vpop.f32.mrf.mxu0  ;;  %1929 = vst [vmem:[%s2265_s12 + $0xc0] sm:$0xff] %v1869_v35   ;;  %v2345_v44 = vpop.f32.mrf.mxu1 }
 0x113   : > { %v1362_v47 = vadd.f32 %v1361_v39, %v1299_v37  ;;  %v1230_v49 = vadd.f32 %v2009_v18, %v1229_v38  ;;  %v1301_v55 = vmul.f32 %v717_v42, %v717_v42 }
 0x114   : > { %v2013_v51 = vpop.f32.mrf.mxu0  ;;  %v2347_v52 = vpop.f32.mrf.mxu1 }
 0x115   : > { %v1231_v53 = vadd.f32 %v1230_v49, %v717_v42  ;;  %v1363_v57 = vadd.f32 %v1362_v47, %v1300_v46  ;;  %v1804_v58 = vpack.c.bf16 %v2013_v51, %v2012_v34  ;;  %v1884_v60 = vpack.c.bf16 %v2347_v52, %v2341_v36 }
 0x116   : > { %v720_v59 = vpop.f32.mrf.mxu0  ;;  %v2351_v62 = vpop.f32.mrf.mxu1  ;;  %v1304_v17 = vmul.f32 %v2013_v51, %v2013_v51 }
 0x117   : > { %v1364_v0 = vadd.f32 %v1363_v57, %v1301_v55  ;;  %1916 = vst [vmem:[%s2265_s12 + $0x58] sm:$0xff] %v1804_v58   ;;  %v1799_v1 = vpack.c.bf16 %v720_v59, %v717_v42  ;;  %v1232_v3 = vadd.f32 %v1231_v53, %v720_v59  ;;  %v1302_v4 = vmul.f32 %v720_v59, %v720_v59 }
 0x118   : > { %v2016_v5 = vpop.f32.mrf.mxu0  ;;  %1932 = vst [vmem:[%s2265_s12 + $0xd8] sm:$0xff] %v1884_v60   ;;  %v1879_v6 = vpack.c.bf16 %v2351_v62, %v2345_v44  ;;  %v2357_v8 = vpop.f32.mrf.mxu1 }
 0x119   : > { %1915 = vst [vmem:[%s2265_s12 + $0x50] sm:$0xff] %v1799_v1   ;;  %v1233_v11 = vadd.f32 %v2012_v34, %v1232_v3  ;;  %v1365_v12 = vadd.f32 %v1364_v0, %v1302_v4  ;;  %v1307_v47 = vmul.f32 %v2016_v5, %v2016_v5 }
 0x11a   : > { %v733_v14 = vpop.f32.mrf.mxu0  ;;  %1931 = vst [vmem:[%s2265_s12 + $0xd0] sm:$0xff] %v1879_v6   ;;  %v2361_v15 = vpop.f32.mrf.mxu1 }
 0x11b   : > { %v1366_v18 = vadd.f32 %v1365_v12, %v1303_v10  ;;  %v1234_v20 = vadd.f32 %v2013_v51, %v1233_v11  ;;  %v1305_v25 = vmul.f32 %v733_v14, %v733_v14 }
 0x11c   : > { %v2017_v22 = vpop.f32.mrf.mxu0  ;;  %v2363_v23 = vpop.f32.mrf.mxu1 }
 0x11d   : > { %v1235_v24 = vadd.f32 %v1234_v20, %v733_v14  ;;  %v1367_v27 = vadd.f32 %v1366_v18, %v1304_v17  ;;  %v1814_v29 = vpack.c.bf16 %v2017_v22, %v2016_v5  ;;  %v1894_v31 = vpack.c.bf16 %v2363_v23, %v2357_v8 }
 0x11e   : > { %v736_v30 = vpop.f32.mrf.mxu0  ;;  %v2367_v32 = vpop.f32.mrf.mxu1  ;;  %v1308_v57 = vmul.f32 %v2017_v22, %v2017_v22 }
 0x11f   : > { %v1368_v34 = vadd.f32 %v1367_v27, %v1305_v25  ;;  %1918 = vst [vmem:[%s2265_s12 + $0x68] sm:$0xff] %v1814_v29   ;;  %v1809_v35 = vpack.c.bf16 %v736_v30, %v733_v14  ;;  %v1236_v37 = vadd.f32 %v1235_v24, %v736_v30  ;;  %v1306_v38 = vmul.f32 %v736_v30, %v736_v30 }
 0x120   : > { %v2020_v39 = vpop.f32.mrf.mxu0  ;;  %1934 = vst [vmem:[%s2265_s12 + $0xe8] sm:$0xff] %v1894_v31   ;;  %v1889_v42 = vpack.c.bf16 %v2367_v32, %v2361_v15  ;;  %v2373_v46 = vpop.f32.mrf.mxu1  ;;  %v1313_v31 = vmul.f32 %v2258_v43, %v2258_v43 }
 0x121   : > { %1917 = vst [vmem:[%s2265_s12 + $0x60] sm:$0xff] %v1809_v35   ;;  %v1237_v49 = vadd.f32 %v2016_v5, %v1236_v37  ;;  %v1369_v51 = vadd.f32 %v1368_v34, %v1306_v38  ;;  %v1314_v38 = vmul.f32 %v2271_v50, %v2271_v50 }
 0x122   : > { %v749_v53 = vpop.f32.mrf.mxu0  ;;  %1933 = vst [vmem:[%s2265_s12 + $0xe0] sm:$0xff] %v1889_v42   ;;  %v2377_v55 = vpop.f32.mrf.mxu1 }
 0x123   : > { %v1370_v58 = vadd.f32 %v1369_v51, %v1307_v47  ;;  %v1238_v59 = vadd.f32 %v2017_v22, %v1237_v49  ;;  %v1309_v3 = vmul.f32 %v749_v53, %v749_v53  ;;  %v1311_v22 = vmul.f32 %v2020_v39, %v2020_v39 }
 0x124   : > { %v2021_v60 = vpop.f32.mrf.mxu0  ;;  %v2379_v0 = vpop.f32.mrf.mxu1  ;;  %v1316_v51 = vmul.f32 %v2267_v45, %v2267_v45 }
 0x125   : > { %v1239_v1 = vadd.f32 %v1238_v59, %v749_v53  ;;  %v1371_v4 = vadd.f32 %v1370_v58, %v1308_v57  ;;  %v1824_v6 = vpack.c.bf16 %v2021_v60, %v2020_v39  ;;  %v1904_v10 = vpack.c.bf16 %v2379_v0, %v2373_v46 }
 0x126   : > { %v752_v5 = vpop.f32.mrf.mxu0  ;;  %v2383_v11 = vpop.f32.mrf.mxu1  ;;  %v1312_v27 = vmul.f32 %v2021_v60, %v2021_v60  ;;  %v1317_v58 = vmul.f32 %v2281_v61, %v2281_v61 }
 0x127   : > { %v1372_v12 = vadd.f32 %v1371_v4, %v1309_v3  ;;  %1920 = vst [vmem:[%s2265_s12 + $0x78] sm:$0xff] %v1824_v6   ;;  %v1819_v14 = vpack.c.bf16 %v752_v5, %v749_v53  ;;  %v1240_v17 = vadd.f32 %v1239_v1, %v752_v5  ;;  %v1310_v18 = vmul.f32 %v752_v5, %v752_v5 }
 0x128   : > { %1936 = vst [vmem:[%s2265_s12 + $0xf8] sm:$0xff] %v1904_v10   ;;  %v1899_v20 = vpack.c.bf16 %v2383_v11, %v2377_v55  ;;  %v1318_v1 = vmul.f32 %v2287_v9, %v2287_v9  ;;  %v1321_v10 = vmul.f32 %v2297_v21, %v2297_v21 }
 0x129   : > { %1919 = vst [vmem:[%s2265_s12 + $0x70] sm:$0xff] %v1819_v14   ;;  %v1241_v24 = vadd.f32 %v2020_v39, %v1240_v17  ;;  %v1373_v25 = vadd.f32 %v1372_v12, %v1310_v18  ;;  %v1315_v39 = vmul.f32 %v2256_v41, %v2256_v41  ;;  %v1322_v17 = vmul.f32 %v2303_v33, %v2303_v33 }
 0x12a   : > { %1935 = vst [vmem:[%s2265_s12 + $0xf0] sm:$0xff] %v1899_v20  }
 0x12b   : > { %v1242_v29 = vadd.f32 %v2021_v60, %v1241_v24  ;;  %v1374_v30 = vadd.f32 %v1373_v25, %v1311_v22  ;;  %v1325_v25 = vmul.f32 %v2313_v48, %v2313_v48 }
 0x12d   : > { %v1375_v34 = vadd.f32 %v1374_v30, %v1312_v27  ;;  %v1243_v35 = vadd.f32 %v1242_v29, %v2258_v43  ;;  %v1326_v30 = vmul.f32 %v2319_v63, %v2319_v63 }
 0x12f   : > { %v1244_v37 = vadd.f32 %v1243_v35, %v2271_v50  ;;  %v1376_v42 = vadd.f32 %v1375_v34, %v1313_v31 }
 0x131   : > { %v1245_v47 = vadd.f32 %v2256_v41, %v1244_v37  ;;  %v1377_v49 = vadd.f32 %v1376_v42, %v1314_v38  ;;  %v1319_v41 = vmul.f32 %v2277_v56, %v2277_v56  ;;  %v1329_v38 = vmul.f32 %v2329_v13, %v2329_v13 }
 0x133   : > { %v1378_v53 = vadd.f32 %v1377_v49, %v1315_v39  ;;  %v1246_v57 = vadd.f32 %v2267_v45, %v1245_v47  ;;  %v1320_v45 = vmul.f32 %v2283_v2, %v2283_v2  ;;  %v1330_v47 = vmul.f32 %v2335_v28, %v2335_v28 }
 0x135   : > { %v1247_v43 = vadd.f32 %v1246_v57, %v2281_v61  ;;  %v1379_v59 = vadd.f32 %v1378_v53, %v1316_v51 }
 0x137   : > { %v1380_v50 = vadd.f32 %v1379_v59, %v1317_v58  ;;  %v1248_v60 = vadd.f32 %v1247_v43, %v2287_v9  ;;  %v1333_v43 = vmul.f32 %v2345_v44, %v2345_v44 }
 0x139   : > { %v1249_v3 = vadd.f32 %v2277_v56, %v1248_v60  ;;  %v1381_v4 = vadd.f32 %v1380_v50, %v1318_v1  ;;  %v1323_v56 = vmul.f32 %v2293_v16, %v2293_v16  ;;  %v1334_v50 = vmul.f32 %v2351_v62, %v2351_v62 }
 0x13b   : > { %v1382_v6 = vadd.f32 %v1381_v4, %v1319_v41  ;;  %v1250_v5 = vadd.f32 %v2283_v2, %v1249_v3  ;;  %v1324_v2 = vmul.f32 %v2299_v26, %v2299_v26  ;;  %v1337_v4 = vmul.f32 %v2361_v15, %v2361_v15 }
 0x13d   : > { %v1251_v61 = vadd.f32 %v1250_v5, %v2297_v21  ;;  %v1383_v12 = vadd.f32 %v1382_v6, %v1320_v45  ;;  %v1338_v5 = vmul.f32 %v2367_v32, %v2367_v32 }
 0x13f   : > { %v1384_v14 = vadd.f32 %v1383_v12, %v1321_v10  ;;  %v1252_v9 = vadd.f32 %v1251_v61, %v2303_v33 }
 0x141   : > { %v1253_v18 = vadd.f32 %v2293_v16, %v1252_v9  ;;  %v1385_v20 = vadd.f32 %v1384_v14, %v1322_v17  ;;  %v1327_v16 = vmul.f32 %v2309_v40, %v2309_v40  ;;  %v1341_v9 = vmul.f32 %v2377_v55, %v2377_v55 }
 0x143   : > { %v1386_v22 = vadd.f32 %v1385_v20, %v1323_v56  ;;  %v1254_v24 = vadd.f32 %v2299_v26, %v1253_v18  ;;  %v1328_v26 = vmul.f32 %v2315_v54, %v2315_v54  ;;  %v1343_v18 = vmul.f32 %v2373_v46, %v2373_v46 }
 0x145   : > { %v1255_v21 = vadd.f32 %v1254_v24, %v2313_v48  ;;  %v1387_v27 = vadd.f32 %v1386_v22, %v1324_v2 }
 0x147   : > { %v1388_v29 = vadd.f32 %v1387_v27, %v1325_v25  ;;  %v1256_v33 = vadd.f32 %v1255_v21, %v2319_v63 }
 0x149   : > { %v1257_v31 = vadd.f32 %v2309_v40, %v1256_v33  ;;  %v1389_v34 = vadd.f32 %v1388_v29, %v1326_v30  ;;  %v1331_v40 = vmul.f32 %v2325_v7, %v2325_v7 }
 0x14b   : > { %v1390_v35 = vadd.f32 %v1389_v34, %v1327_v16  ;;  %v1258_v37 = vadd.f32 %v2315_v54, %v1257_v31  ;;  %v1332_v54 = vmul.f32 %v2331_v19, %v2331_v19 }
 0x14d   : > { %v1259_v48 = vadd.f32 %v1258_v37, %v2329_v13  ;;  %v1391_v42 = vadd.f32 %v1390_v35, %v1328_v26 }
 0x14f   : > { %v1392_v39 = vadd.f32 %v1391_v42, %v1329_v38  ;;  %v1260_v63 = vadd.f32 %v1259_v48, %v2335_v28 }
 0x151   : > { %v1261_v49 = vadd.f32 %v2325_v7, %v1260_v63  ;;  %v1393_v51 = vadd.f32 %v1392_v39, %v1330_v47  ;;  %v1335_v7 = vmul.f32 %v2341_v36, %v2341_v36 }
 0x153   : > { %v1394_v53 = vadd.f32 %v1393_v51, %v1331_v40  ;;  %v1262_v57 = vadd.f32 %v2331_v19, %v1261_v49  ;;  %v1336_v19 = vmul.f32 %v2347_v52, %v2347_v52 }
 0x155   : > { %v1263_v13 = vadd.f32 %v1262_v57, %v2345_v44  ;;  %v1395_v58 = vadd.f32 %v1394_v53, %v1332_v54 }
 0x157   : > { %v1396_v59 = vadd.f32 %v1395_v58, %v1333_v43  ;;  %v1264_v28 = vadd.f32 %v1263_v13, %v2351_v62 }
 0x159   : > { %v1265_v60 = vadd.f32 %v2341_v36, %v1264_v28  ;;  %v1397_v1 = vadd.f32 %v1396_v59, %v1334_v50  ;;  %v1339_v36 = vmul.f32 %v2357_v8, %v2357_v8 }
 0x15b   : > { %v1398_v41 = vadd.f32 %v1397_v1, %v1335_v7  ;;  %v1266_v3 = vadd.f32 %v2347_v52, %v1265_v60  ;;  %v1340_v52 = vmul.f32 %v2363_v23, %v2363_v23 }
 0x15d   : > { %v1267_v44 = vadd.f32 %v1266_v3, %v2361_v15  ;;  %v1399_v45 = vadd.f32 %v1398_v41, %v1336_v19 }
 0x15f   : > { %v1400_v6 = vadd.f32 %v1399_v45, %v1337_v4  ;;  %v1268_v62 = vadd.f32 %v1267_v44, %v2367_v32 }
 0x161   : > { %v1269_v61 = vadd.f32 %v2357_v8, %v1268_v62  ;;  %v1401_v10 = vadd.f32 %v1400_v6, %v1338_v5  ;;  %v1342_v8 = vmul.f32 %v2383_v11, %v2383_v11 }
 0x163   : > { %v1402_v12 = vadd.f32 %v1401_v10, %v1339_v36  ;;  %v1270_v15 = vadd.f32 %v2363_v23, %v1269_v61  ;;  %v1344_v23 = vmul.f32 %v2379_v0, %v2379_v0 }
 0x165   : > { %v1271_v14 = vadd.f32 %v1270_v15, %v2377_v55  ;;  %v1403_v32 = vadd.f32 %v1402_v12, %v1340_v52 }
 0x167   : > { %v1404_v17 = vadd.f32 %v1403_v32, %v1341_v9  ;;  %v1272_v56 = vadd.f32 %v1271_v14, %v2383_v11 }
 0x169   : > { %v1273_v20 = vadd.f32 %v2373_v46, %v1272_v56  ;;  %v1405_v2 = vadd.f32 %v1404_v17, %v1342_v8 }
 0x16b   : > { %v1274_v22 = vadd.f32 %v2379_v0, %v1273_v20  ;;  %v1406_v55 = vadd.f32 %v1405_v2, %v1343_v18 }
 0x16d   : > { %v1275_v24 = vrot.slane %v1274_v22, 4  ;;  %v1407_v21 = vadd.f32 %v1406_v55, %v1344_v23 }
 0x16f   : > { %v1276_v25 = vadd.f32 %v1275_v24, %v1274_v22  ;;  %v1408_v27 = vrot.slane %v1407_v21, 4 }
 0x171   : > { %v1277_v29 = vrot.slane %v1276_v25, 2  ;;  %v1409_v11 = vadd.f32 %v1408_v27, %v1407_v21 }
 0x173   : > { %v1278_v33 = vadd.f32 %v1277_v29, %v1276_v25  ;;  %v1410_v30 = vrot.slane %v1409_v11, 2 }
 0x175   : > { %v1279_v16 = vrot.slane %v1278_v33, 1  ;;  %v1411_v46 = vadd.f32 %v1410_v30, %v1409_v11 }
 0x177   : > { %v1280_v31 = vadd.f32 %v1279_v16, %v1278_v33  ;;  %v1412_v34 = vrot.slane %v1411_v46, 1 }
 0x179   : > { %v1413_v0 = vadd.f32 %v1412_v34, %v1411_v46  ;;  %1414 = vst [vmem:[%s217_s18] sm:$0xff] %v1280_v31 }
 0x17b   : > { %1415 = vst [vmem:[%s221_s21] sm:$0xff] %v1413_v0 }
 0x17c PF: > { %s15_s15 = sadd.s32 1, %s2123_s15  }
 0x17d   : > { %p12_p5 = scmp.ge.s32.totalorder %s15_s15, 4  }
 0x17f   :  { %14 = sbr.rel (!%p12_p5) target bundleno = 1 (0x1), region = 82 }

// kernel: double_conv_forward.6
= control target key start
LH: loop header
LB: loop body
LE: loop exit
PB: predicated region body
PF: predicated region fallthrough
CT: control target
= control target key end

     0   :  { %s2343_s15 = smov 0   ;;  %s2901_s0 = inlined_call_operand.vmem [shape: bf16[1024,216], index: 0, kind: input, shape index: {}]   ;;  %s2902_s1 = inlined_call_operand.vmem [shape: bf16[216,128], index: 1, kind: input, shape index: {}]   ;;  %s2903_s2 = inlined_call_operand.vmem [shape: bf16[1024,128], index: 2, kind: output, shape index: {0}]   ;;  %s2904_s3 = inlined_call_operand.vmem [shape: f32[2,8,128], index: 3, kind: output, shape index: {1}]   ;;  %s2905_s4 = inlined_call_operand.vmem [shape: f32[2,8,128], index: 4, kind: output, shape index: {2}]  }
   0x1 LB: > { %s2349_s16 = sadd.s32 4294967295, %s2315_s15   ;;  %p1722_p0 = scmp.ge.s32.totalorder %s2315_s15, 1  ;;  %s2315_s15 = sphi %s2343_s15, %s15_s15  }
   0x2   : > { %p169_p1 = scmp.lt.s32.totalorder %s2315_s15, 3 }
   0x4   : > { %p170_p2 = pnand %p1722_p0, %p169_p1 }
   0x5   : > { %s1723_s21 = sshll.u32 (!%p170_p2), %s2349_s16, 6  ;;  %p217_p4 = scmp.lt.s32.totalorder (!%p170_p2), %s2349_s16, 1 }
   0x6   : > { %173 = sbr.rel (%p170_p2) target bundleno = 466 (0x1d2), region = 28  ;;  %p205_p3 = scmp.lt.s32.totalorder (!%p170_p2), %s1723_s21, 127 }
   0xb   : > { %v2199_v0 = vld [vmem:[%s2902_s1 + $0x38] sm:$0xff]   ;;  %v2317_v1 = vmov 0   ;;  %v2200_v2 = vld [vmem:[%s2902_s1 + $0x30] sm:$0xff]   ;;  %s2907_s21 = smov (!%p205_p3, %s1723_s21), 127  ;;  %v2201_v3 = vld [vmem:[%s2902_s1 + $0x28] sm:$0xff]   ;;  %vm686_vm0 = vcmask 719872  }
   0xc   : > { %787 = vmatprep.subr.bf16.mxu0 %v2317_v1  ;;  %2162 = vmatprep.subr.bf16.mxu1 %v2317_v1  ;;  %s1906_s24 = sshll.u32 %s2907_s21, 3  ;;  %v2202_v4 = vld [vmem:[%s2902_s1 + $0x20] sm:$0xff]   ;;  %v2203_v5 = vld [vmem:[%s2902_s1 + $0x18] sm:$0xff]   ;;  %v2204_v7 = vld [vmem:[%s2902_s1 + $0x10] sm:$0xff]   ;;  %vm783_vm1 = vcmask 1043456   ;;  %s1727_s27 = sshll.u32 %s2907_s21, 2 }
   0xd   : > { %788 = vmatpush1.bf16.msra.mxu0 %v2199_v0  ;;  %2176 = vmatpush1.bf16.msra.mxu1 %v2199_v0  ;;  %s2379_s29 = scalar_lea.vmem %s2901_s0, %s1906_s24  ;;  %v2205_v8 = vld [vmem:[%s2902_s1 + $0x8] sm:$0xff]   ;;  %v2206_v10 = vld [vmem:[%s2902_s1] sm:$0xff]   ;;  %v2209_v14 = vld [vmem:[%s2902_s1 + $0x58] sm:$0xff]   ;;  %s2536_s5 = scalar_lea.vmem %s2903_s2, %s1727_s27 }
   0xe   : > { %789 = vmatprep.subr.bf16.mxu0 %v2317_v1  ;;  %2163 = vmatprep.subr.bf16.mxu1 %v2317_v1  ;;  %v2215_v6 = vld [vmem:[%s2379_s29 + $0x4] ss:$8 sps:$4 sm:$0xff]   ;;  %v2207_v11 = vld [vmem:[%s2902_s1 + $0x68] ss:$0 sps:$4 sm:$0xff]   ;;  %v2210_v15 = vld [vmem:[%s2902_s1 + $0x50] sm:$0xff]   ;;  %s2909_s16 = smov (!%p217_p4, %s2349_s16), 1 }
   0xf   : > { %1808 = vmatprep.mubr.msk.bf16.mxu0 %vm686_vm0, %v2215_v6  ;;  %v2239_v9 = vld [vmem:[%s2379_s29 + $0x104] ss:$8 sps:$4 sm:$0xff]   ;;  %v785_v12 = vsel %vm783_vm1, %v2207_v11, 0  ;;  %v2213_v18 = vld [vmem:[%s2379_s29] ss:$8 sps:$4 sm:$0xff]   ;;  %s1728_s21 = sshll.u32 %s2909_s16, 3 }
  0x10   : > { %1824 = vmatprep.mubr.msk.bf16.mxu1 %vm686_vm0, %v2239_v9  ;;  %v2208_v13 = vld [vmem:[%s2902_s1 + $0x60] sm:$0xff]   ;;  %v2211_v16 = vld [vmem:[%s2902_s1 + $0x48] sm:$0xff]   ;;  %v2216_v20 = vld [vmem:[%s2379_s29 + $0x14] ss:$8 sps:$4 sm:$0xff]   ;;  %s220_s7 = scalar_lea.vmem %s2904_s3, %s1728_s21  ;;  %s224_s10 = scalar_lea.vmem %s2905_s4, %s1728_s21 }
  0x11   : > { %790 = vmatpush1.bf16.msra.mxu0 %v2200_v2  ;;  %2177 = vmatpush1.bf16.msra.mxu1 %v2200_v2  ;;  %v2212_v17 = vld [vmem:[%s2902_s1 + $0x40] sm:$0xff]   ;;  %v2243_v21 = vld [vmem:[%s2379_s29 + $0x114] ss:$8 sps:$4 sm:$0xff]   ;;  %v2218_v22 = vld [vmem:[%s2379_s29 + $0x10] ss:$8 sps:$4 sm:$0xff]  }
  0x12   : > { %791 = vmatprep.subr.bf16.mxu0 %v2317_v1  ;;  %2164 = vmatprep.subr.bf16.mxu1 %v2317_v1  ;;  %v2237_v19 = vld [vmem:[%s2379_s29 + $0x100] ss:$8 sps:$4 sm:$0xff]   ;;  %v2245_v23 = vld [vmem:[%s2379_s29 + $0x110] ss:$8 sps:$4 sm:$0xff]   ;;  %v2219_v24 = vld [vmem:[%s2379_s29 + $0x24] ss:$8 sps:$4 sm:$0xff]  }
  0x13   : > { %v2249_v25 = vld [vmem:[%s2379_s29 + $0x124] ss:$8 sps:$4 sm:$0xff]   ;;  %v2221_v26 = vld [vmem:[%s2379_s29 + $0x20] ss:$8 sps:$4 sm:$0xff]   ;;  %v2222_v28 = vld [vmem:[%s2379_s29 + $0x34] ss:$8 sps:$4 sm:$0xff]  }
  0x14   : > { %v2251_v27 = vld [vmem:[%s2379_s29 + $0x120] ss:$8 sps:$4 sm:$0xff]   ;;  %v2255_v29 = vld [vmem:[%s2379_s29 + $0x134] ss:$8 sps:$4 sm:$0xff]   ;;  %v2224_v30 = vld [vmem:[%s2379_s29 + $0x30] ss:$8 sps:$4 sm:$0xff]  }
  0x15   : > { %792 = vmatpush1.bf16.msra.mxu0 %v2201_v3  ;;  %2178 = vmatpush1.bf16.msra.mxu1 %v2201_v3  ;;  %v2257_v31 = vld [vmem:[%s2379_s29 + $0x130] ss:$8 sps:$4 sm:$0xff]   ;;  %v2225_v32 = vld [vmem:[%s2379_s29 + $0x44] ss:$8 sps:$4 sm:$0xff]   ;;  %v2227_v34 = vld [vmem:[%s2379_s29 + $0x40] ss:$8 sps:$4 sm:$0xff]  }
  0x16   : > { %793 = vmatprep.subr.bf16.mxu0 %v2317_v1  ;;  %2165 = vmatprep.subr.bf16.mxu1 %v2317_v1  ;;  %v2261_v33 = vld [vmem:[%s2379_s29 + $0x144] ss:$8 sps:$4 sm:$0xff]   ;;  %v2263_v35 = vld [vmem:[%s2379_s29 + $0x140] ss:$8 sps:$4 sm:$0xff]   ;;  %v2228_v36 = vld [vmem:[%s2379_s29 + $0x54] ss:$8 sps:$4 sm:$0xff]  }
  0x17   : > { %v2267_v37 = vld [vmem:[%s2379_s29 + $0x154] ss:$8 sps:$4 sm:$0xff]   ;;  %v2230_v38 = vld [vmem:[%s2379_s29 + $0x50] ss:$8 sps:$4 sm:$0xff]   ;;  %v2231_v40 = vld [vmem:[%s2379_s29 + $0x64] ss:$8 sps:$4 sm:$0xff]  }
  0x18   : > { %v2269_v39 = vld [vmem:[%s2379_s29 + $0x150] ss:$8 sps:$4 sm:$0xff]   ;;  %v2273_v41 = vld [vmem:[%s2379_s29 + $0x164] ss:$8 sps:$4 sm:$0xff]   ;;  %v2233_v42 = vld [vmem:[%s2379_s29 + $0x60] ss:$8 sps:$4 sm:$0xff]  }
  0x19   : > { %794 = vmatpush1.bf16.msra.mxu0 %v2202_v4  ;;  %2179 = vmatpush1.bf16.msra.mxu1 %v2202_v4  ;;  %v2275_v43 = vld [vmem:[%s2379_s29 + $0x160] ss:$8 sps:$4 sm:$0xff]   ;;  %v2234_v44 = vld [vmem:[%s2379_s29 + $0x74] ss:$8 sps:$4 sm:$0xff]   ;;  %v2236_v46 = vld [vmem:[%s2379_s29 + $0x70] ss:$8 sps:$4 sm:$0xff]  }
  0x1a   : > { %795 = vmatprep.subr.bf16.mxu0 %v2317_v1  ;;  %2166 = vmatprep.subr.bf16.mxu1 %v2317_v1  ;;  %v2279_v45 = vld [vmem:[%s2379_s29 + $0x174] ss:$8 sps:$4 sm:$0xff]   ;;  %v2281_v47 = vld [vmem:[%s2379_s29 + $0x170] ss:$8 sps:$4 sm:$0xff]   ;;  %v2240_v48 = vld [vmem:[%s2379_s29 + $0x84] ss:$8 sps:$4 sm:$0xff]  }
  0x1b   : > { %v2285_v49 = vld [vmem:[%s2379_s29 + $0x184] ss:$8 sps:$4 sm:$0xff]   ;;  %v2242_v50 = vld [vmem:[%s2379_s29 + $0x80] ss:$8 sps:$4 sm:$0xff]   ;;  %v2246_v52 = vld [vmem:[%s2379_s29 + $0x94] ss:$8 sps:$4 sm:$0xff]  }
  0x1c   : > { %v2287_v51 = vld [vmem:[%s2379_s29 + $0x180] ss:$8 sps:$4 sm:$0xff]   ;;  %v2288_v53 = vld [vmem:[%s2379_s29 + $0x194] ss:$8 sps:$4 sm:$0xff]   ;;  %v2248_v54 = vld [vmem:[%s2379_s29 + $0x90] ss:$8 sps:$4 sm:$0xff]  }
  0x1d   : > { %796 = vmatpush1.bf16.msra.mxu0 %v2203_v5  ;;  %2180 = vmatpush1.bf16.msra.mxu1 %v2203_v5  ;;  %v2290_v55 = vld [vmem:[%s2379_s29 + $0x190] ss:$8 sps:$4 sm:$0xff]   ;;  %v2252_v56 = vld [vmem:[%s2379_s29 + $0xa4] ss:$8 sps:$4 sm:$0xff]   ;;  %v2254_v58 = vld [vmem:[%s2379_s29 + $0xa0] ss:$8 sps:$4 sm:$0xff]  }
  0x1e   : > { %797 = vmatprep.subr.bf16.mxu0 %v2317_v1  ;;  %2167 = vmatprep.subr.bf16.mxu1 %v2317_v1  ;;  %v2291_v57 = vld [vmem:[%s2379_s29 + $0x1a4] ss:$8 sps:$4 sm:$0xff]   ;;  %v2293_v59 = vld [vmem:[%s2379_s29 + $0x1a0] ss:$8 sps:$4 sm:$0xff]   ;;  %v2258_v60 = vld [vmem:[%s2379_s29 + $0xb4] ss:$8 sps:$4 sm:$0xff]  }
  0x1f   : > { %v2294_v61 = vld [vmem:[%s2379_s29 + $0x1b4] ss:$8 sps:$4 sm:$0xff]   ;;  %v2260_v62 = vld [vmem:[%s2379_s29 + $0xb0] ss:$8 sps:$4 sm:$0xff]   ;;  %v2264_v0 = vld [vmem:[%s2379_s29 + $0xc4] ss:$8 sps:$4 sm:$0xff]  }
  0x20   : > { %v2296_v63 = vld [vmem:[%s2379_s29 + $0x1b0] ss:$8 sps:$4 sm:$0xff]   ;;  %v2266_v2 = vld [vmem:[%s2379_s29 + $0xc0] ss:$8 sps:$4 sm:$0xff]   ;;  %v2270_v4 = vld [vmem:[%s2379_s29 + $0xd4] ss:$8 sps:$4 sm:$0xff]  }
  0x21   : > { %798 = vmatpush1.bf16.msra.mxu0 %v2204_v7  ;;  %2181 = vmatpush1.bf16.msra.mxu1 %v2204_v7  ;;  %v2299_v3 = vld [vmem:[%s2379_s29 + $0x1c0] ss:$8 sps:$4 sm:$0xff]   ;;  %v2300_v5 = vld [vmem:[%s2379_s29 + $0x1d4] ss:$8 sps:$4 sm:$0xff]   ;;  %v2272_v6 = vld [vmem:[%s2379_s29 + $0xd0] ss:$8 sps:$4 sm:$0xff]  }
  0x22   : > { %799 = vmatprep.subr.bf16.mxu0 %v2317_v1  ;;  %2168 = vmatprep.subr.bf16.mxu1 %v2317_v1  ;;  %v2302_v7 = vld [vmem:[%s2379_s29 + $0x1d0] ss:$8 sps:$4 sm:$0xff]   ;;  %v2303_v9 = vld [vmem:[%s2379_s29 + $0x1e4] ss:$8 sps:$4 sm:$0xff]   ;;  %v2305_v11 = vld [vmem:[%s2379_s29 + $0x1e0] ss:$8 sps:$4 sm:$0xff]  }
  0x25   : > { %800 = vmatpush1.bf16.msra.mxu0 %v2205_v8  ;;  %2182 = vmatpush1.bf16.msra.mxu1 %v2205_v8  ;;  %v2276_v8 = vld [vmem:[%s2379_s29 + $0xe4] ss:$8 sps:$4 sm:$0xff]  }
  0x26   : > { %801 = vmatprep.subr.bf16.mxu0 %v2317_v1  ;;  %2169 = vmatprep.subr.bf16.mxu1 %v2317_v1 }
  0x29   : > { %802 = vmatpush1.bf16.msra.mxu0 %v2206_v10  ;;  %2183 = vmatpush1.bf16.msra.mxu1 %v2206_v10  ;;  %v2278_v10 = vld [vmem:[%s2379_s29 + $0xe0] ss:$8 sps:$4 sm:$0xff]  }
  0x2a   : > { %807 = vmatprep.subr.bf16.mxu0 %v2317_v1  ;;  %2170 = vmatprep.subr.bf16.mxu1 %v2317_v1 }
  0x2d   : > { %808 = vmatpush2.bf16.msra.mxu0 %v785_v12  ;;  %2184 = vmatpush2.bf16.msra.mxu1 %v785_v12  ;;  %v2282_v12 = vld [vmem:[%s2379_s29 + $0xf4] ss:$8 sps:$4 sm:$0xff]  }
  0x2e   : > { %809 = vmatprep.subr.bf16.mxu0 %v2317_v1  ;;  %2171 = vmatprep.subr.bf16.mxu1 %v2317_v1 }
  0x31   : > { %810 = vmatpush2.bf16.msra.mxu0 %v2208_v13  ;;  %2185 = vmatpush2.bf16.msra.mxu1 %v2208_v13  ;;  %v2306_v13 = vld [vmem:[%s2379_s29 + $0x1f4] ss:$8 sps:$4 sm:$0xff]  }
  0x32   : > { %811 = vmatprep.subr.bf16.mxu0 %v2317_v1  ;;  %2172 = vmatprep.subr.bf16.mxu1 %v2317_v1 }
  0x35   : > { %812 = vmatpush2.bf16.msra.mxu0 %v2209_v14  ;;  %2186 = vmatpush2.bf16.msra.mxu1 %v2209_v14  ;;  %v2284_v14 = vld [vmem:[%s2379_s29 + $0xf0] ss:$8 sps:$4 sm:$0xff]  }
  0x36   : > { %813 = vmatprep.subr.bf16.mxu0 %v2317_v1  ;;  %2173 = vmatprep.subr.bf16.mxu1 %v2317_v1 }
  0x39   : > { %814 = vmatpush2.bf16.msra.mxu0 %v2210_v15  ;;  %2187 = vmatpush2.bf16.msra.mxu1 %v2210_v15  ;;  %v2308_v15 = vld [vmem:[%s2379_s29 + $0x1f0] ss:$8 sps:$4 sm:$0xff]  }
  0x3a   : > { %815 = vmatprep.subr.bf16.mxu0 %v2317_v1  ;;  %2174 = vmatprep.subr.bf16.mxu1 %v2317_v1 }
  0x3d   : > { %816 = vmatpush2.bf16.msra.mxu0 %v2211_v16  ;;  %2188 = vmatpush2.bf16.msra.mxu1 %v2211_v16 }
  0x3e   : > { %817 = vmatprep.subr.bf16.mxu0 %v2317_v1  ;;  %2175 = vmatprep.subr.bf16.mxu1 %v2317_v1  ;;  %v2297_v1 = vld [vmem:[%s2379_s29 + $0x1c4] ss:$8 sps:$4 sm:$0xff]  }
  0x41   : > { %818 = vmatpush2.bf16.msra.mxu0 %v2212_v17  ;;  %2189 = vmatpush2.bf16.msra.mxu1 %v2212_v17 }
  0x44   : > { %820 = vmatmul.mubr.bf16.vlgmr.msra.gmra.mxu0 %v2213_v18  ;;  %948 = vmatmul.mubr.bf16.vlgmr.msra.gmra.mxu1 %v2237_v19 }
  0x45   : > { %1809 = vmatprep.mubr.msk.bf16.mxu0 %vm686_vm0, %v2216_v20  ;;  %1825 = vmatprep.mubr.msk.bf16.mxu1 %vm686_vm0, %v2243_v21 }
  0x4c   : > { %828 = vmatmul.mubr.bf16.gmra.mxu0 %v2218_v22  ;;  %956 = vmatmul.mubr.bf16.gmra.mxu1 %v2245_v23 }
  0x4d   : > { %1810 = vmatprep.mubr.msk.bf16.mxu0 %vm686_vm0, %v2219_v24  ;;  %1826 = vmatprep.mubr.msk.bf16.mxu1 %vm686_vm0, %v2249_v25 }
  0x54   : > { %836 = vmatmul.mubr.bf16.gmra.mxu0 %v2221_v26  ;;  %964 = vmatmul.mubr.bf16.gmra.mxu1 %v2251_v27 }
  0x55   : > { %1811 = vmatprep.mubr.msk.bf16.mxu0 %vm686_vm0, %v2222_v28  ;;  %1827 = vmatprep.mubr.msk.bf16.mxu1 %vm686_vm0, %v2255_v29 }
  0x5c   : > { %844 = vmatmul.mubr.bf16.gmra.mxu0 %v2224_v30  ;;  %972 = vmatmul.mubr.bf16.gmra.mxu1 %v2257_v31 }
  0x5d   : > { %1812 = vmatprep.mubr.msk.bf16.mxu0 %vm686_vm0, %v2225_v32  ;;  %1828 = vmatprep.mubr.msk.bf16.mxu1 %vm686_vm0, %v2261_v33 }
  0x64   : > { %852 = vmatmul.mubr.bf16.gmra.mxu0 %v2227_v34  ;;  %980 = vmatmul.mubr.bf16.gmra.mxu1 %v2263_v35 }
  0x65   : > { %1813 = vmatprep.mubr.msk.bf16.mxu0 %vm686_vm0, %v2228_v36  ;;  %1829 = vmatprep.mubr.msk.bf16.mxu1 %vm686_vm0, %v2267_v37 }
  0x6c   : > { %860 = vmatmul.mubr.bf16.gmra.mxu0 %v2230_v38  ;;  %988 = vmatmul.mubr.bf16.gmra.mxu1 %v2269_v39 }
  0x6d   : > { %1814 = vmatprep.mubr.msk.bf16.mxu0 %vm686_vm0, %v2231_v40  ;;  %1830 = vmatprep.mubr.msk.bf16.mxu1 %vm686_vm0, %v2273_v41 }
  0x74   : > { %868 = vmatmul.mubr.bf16.gmra.mxu0 %v2233_v42  ;;  %996 = vmatmul.mubr.bf16.gmra.mxu1 %v2275_v43 }
  0x75   : > { %1815 = vmatprep.mubr.msk.bf16.mxu0 %vm686_vm0, %v2234_v44  ;;  %1831 = vmatprep.mubr.msk.bf16.mxu1 %vm686_vm0, %v2279_v45 }
  0x7c   : > { %876 = vmatmul.mubr.bf16.gmra.mxu0 %v2236_v46  ;;  %1004 = vmatmul.mubr.bf16.gmra.mxu1 %v2281_v47 }
  0x7d   : > { %1816 = vmatprep.mubr.msk.bf16.mxu0 %vm686_vm0, %v2240_v48  ;;  %1832 = vmatprep.mubr.msk.bf16.mxu1 %vm686_vm0, %v2285_v49 }
  0x84   : > { %884 = vmatmul.mubr.bf16.gmra.mxu0 %v2242_v50  ;;  %1012 = vmatmul.mubr.bf16.gmra.mxu1 %v2287_v51 }
  0x85   : > { %1817 = vmatprep.mubr.msk.bf16.mxu0 %vm686_vm0, %v2246_v52  ;;  %1833 = vmatprep.mubr.msk.bf16.mxu1 %vm686_vm0, %v2288_v53 }
  0x8c   : > { %892 = vmatmul.mubr.bf16.gmra.mxu0 %v2248_v54  ;;  %1020 = vmatmul.mubr.bf16.gmra.mxu1 %v2290_v55 }
  0x8d   : > { %1818 = vmatprep.mubr.msk.bf16.mxu0 %vm686_vm0, %v2252_v56  ;;  %1834 = vmatprep.mubr.msk.bf16.mxu1 %vm686_vm0, %v2291_v57 }
  0x94   : > { %900 = vmatmul.mubr.bf16.gmra.mxu0 %v2254_v58  ;;  %1028 = vmatmul.mubr.bf16.gmra.mxu1 %v2293_v59 }
  0x95   : > { %1819 = vmatprep.mubr.msk.bf16.mxu0 %vm686_vm0, %v2258_v60  ;;  %1835 = vmatprep.mubr.msk.bf16.mxu1 %vm686_vm0, %v2294_v61 }
  0x9c   : > { %908 = vmatmul.mubr.bf16.gmra.mxu0 %v2260_v62  ;;  %1036 = vmatmul.mubr.bf16.gmra.mxu1 %v2296_v63 }
  0x9d   : > { %1820 = vmatprep.mubr.msk.bf16.mxu0 %vm686_vm0, %v2264_v0  ;;  %1836 = vmatprep.mubr.msk.bf16.mxu1 %vm686_vm0, %v2297_v1 }
  0xa4   : > { %916 = vmatmul.mubr.bf16.gmra.mxu0 %v2266_v2  ;;  %1044 = vmatmul.mubr.bf16.gmra.mxu1 %v2299_v3 }
  0xa5   : > { %1821 = vmatprep.mubr.msk.bf16.mxu0 %vm686_vm0, %v2270_v4  ;;  %1837 = vmatprep.mubr.msk.bf16.mxu1 %vm686_vm0, %v2300_v5 }
  0xac   : > { %924 = vmatmul.mubr.bf16.gmra.mxu0 %v2272_v6  ;;  %1052 = vmatmul.mubr.bf16.gmra.mxu1 %v2302_v7 }
  0xad   : > { %1822 = vmatprep.mubr.msk.bf16.mxu0 %vm686_vm0, %v2276_v8  ;;  %1838 = vmatprep.mubr.msk.bf16.mxu1 %vm686_vm0, %v2303_v9 }
  0xb4   : > { %932 = vmatmul.mubr.bf16.gmra.mxu0 %v2278_v10  ;;  %1060 = vmatmul.mubr.bf16.gmra.mxu1 %v2305_v11 }
  0xb5   : > { %1823 = vmatprep.mubr.msk.bf16.mxu0 %vm686_vm0, %v2282_v12  ;;  %1839 = vmatprep.mubr.msk.bf16.mxu1 %vm686_vm0, %v2306_v13 }
  0xbc   : > { %940 = vmatmul.mubr.bf16.gmra.mxu0 %v2284_v14  ;;  %1068 = vmatmul.mubr.bf16.gmra.mxu1 %v2308_v15 }
 0x104   : > { %v2528_v16 = vpop.f32.mrf.mxu0  ;;  %v2530_v17 = vpop.f32.mrf.mxu1 }
 0x106   : > { %v823_v18 = vpop.f32.mrf.mxu0  ;;  %v951_v19 = vpop.f32.mrf.mxu1 }
 0x108   : > { %v2538_v20 = vpop.f32.mrf.mxu0  ;;  %v2540_v21 = vpop.f32.mrf.mxu1 }
 0x109   : > { %v1974_v22 = vpack.c.bf16 %v2538_v20, %v2528_v16  ;;  %v2054_v23 = vpack.c.bf16 %v2540_v21, %v2530_v17 }
 0x10a   : > { %v826_v24 = vpop.f32.mrf.mxu0  ;;  %v954_v25 = vpop.f32.mrf.mxu1 }
 0x10b   : > { %1975 = vst [vmem:[%s2536_s5] sm:$0xff] %v1974_v22   ;;  %2146 = vst [vmem:[%s2536_s5 + $0x80] sm:$0xff] %v2054_v23  }
 0x10c   : > { %v2548_v26 = vpop.f32.mrf.mxu0  ;;  %v2550_v27 = vpop.f32.mrf.mxu1 }
 0x10e   : > { %v831_v28 = vpop.f32.mrf.mxu0  ;;  %v959_v29 = vpop.f32.mrf.mxu1 }
 0x110   : > { %v2552_v30 = vpop.f32.mrf.mxu0  ;;  %v2554_v31 = vpop.f32.mrf.mxu1 }
 0x111   : > { %v1979_v32 = vpack.c.bf16 %v2552_v30, %v2548_v26  ;;  %v2059_v33 = vpack.c.bf16 %v2554_v31, %v2550_v27 }
 0x112   : > { %v834_v34 = vpop.f32.mrf.mxu0  ;;  %v962_v35 = vpop.f32.mrf.mxu1 }
 0x113   : > { %2131 = vst [vmem:[%s2536_s5 + $0x8] sm:$0xff] %v1979_v32   ;;  %2147 = vst [vmem:[%s2536_s5 + $0x88] sm:$0xff] %v2059_v33  }
 0x114   : > { %v2562_v36 = vpop.f32.mrf.mxu0  ;;  %v2564_v37 = vpop.f32.mrf.mxu1 }
 0x116   : > { %v839_v38 = vpop.f32.mrf.mxu0  ;;  %v967_v39 = vpop.f32.mrf.mxu1 }
 0x118   : > { %v2566_v40 = vpop.f32.mrf.mxu0  ;;  %v2568_v41 = vpop.f32.mrf.mxu1 }
 0x119   : > { %v1984_v42 = vpack.c.bf16 %v2566_v40, %v2562_v36  ;;  %v2064_v43 = vpack.c.bf16 %v2568_v41, %v2564_v37 }
 0x11a   : > { %v842_v44 = vpop.f32.mrf.mxu0  ;;  %v970_v45 = vpop.f32.mrf.mxu1 }
 0x11b   : > { %2132 = vst [vmem:[%s2536_s5 + $0x10] sm:$0xff] %v1984_v42   ;;  %2148 = vst [vmem:[%s2536_s5 + $0x90] sm:$0xff] %v2064_v43   ;;  %v1466_v42 = vmul.f32 %v2538_v20, %v2538_v20  ;;  %v1465_v45 = vmul.f32 %v2528_v16, %v2528_v16 }
 0x11c   : > { %v2576_v46 = vpop.f32.mrf.mxu0  ;;  %v2578_v47 = vpop.f32.mrf.mxu1 }
 0x11e   : > { %v847_v48 = vpop.f32.mrf.mxu0  ;;  %v975_v49 = vpop.f32.mrf.mxu1 }
 0x11f   : > { %v1467_v48 = vmul.f32 %v2548_v26, %v2548_v26 }
 0x120   : > { %v2580_v50 = vpop.f32.mrf.mxu0  ;;  %v2582_v51 = vpop.f32.mrf.mxu1 }
 0x121   : > { %v1989_v52 = vpack.c.bf16 %v2580_v50, %v2576_v46  ;;  %v2069_v53 = vpack.c.bf16 %v2582_v51, %v2578_v47 }
 0x122   : > { %v850_v54 = vpop.f32.mrf.mxu0  ;;  %v978_v55 = vpop.f32.mrf.mxu1 }
 0x123   : > { %2133 = vst [vmem:[%s2536_s5 + $0x18] sm:$0xff] %v1989_v52   ;;  %2149 = vst [vmem:[%s2536_s5 + $0x98] sm:$0xff] %v2069_v53   ;;  %v1396_v53 = vadd.f32 %v2538_v20, %v2528_v16  ;;  %v1529_v54 = vadd.f32 %v1466_v42, %v1465_v45  ;;  %v1468_v55 = vmul.f32 %v2552_v30, %v2552_v30 }
 0x124   : > { %v2590_v56 = vpop.f32.mrf.mxu0  ;;  %v2592_v57 = vpop.f32.mrf.mxu1 }
 0x126   : > { %v855_v58 = vpop.f32.mrf.mxu0  ;;  %v983_v59 = vpop.f32.mrf.mxu1 }
 0x128   : > { %v2594_v60 = vpop.f32.mrf.mxu0  ;;  %v2596_v61 = vpop.f32.mrf.mxu1 }
 0x129   : > { %v1994_v62 = vpack.c.bf16 %v2594_v60, %v2590_v56  ;;  %v2074_v63 = vpack.c.bf16 %v2596_v61, %v2592_v57 }
 0x12a   : > { %v858_v0 = vpop.f32.mrf.mxu0  ;;  %v986_v1 = vpop.f32.mrf.mxu1 }
 0x12b   : > { %2134 = vst [vmem:[%s2536_s5 + $0x20] sm:$0xff] %v1994_v62   ;;  %2150 = vst [vmem:[%s2536_s5 + $0xa0] sm:$0xff] %v2074_v63   ;;  %v1397_v62 = vadd.f32 %v1396_v53, %v2548_v26  ;;  %v1530_v63 = vadd.f32 %v1529_v54, %v1467_v48  ;;  %v1469_v0 = vmul.f32 %v2562_v36, %v2562_v36 }
 0x12c   : > { %v2604_v2 = vpop.f32.mrf.mxu0  ;;  %v2606_v3 = vpop.f32.mrf.mxu1  ;;  %v1470_v26 = vmul.f32 %v2566_v40, %v2566_v40 }
 0x12d   : > { %v1398_v16 = vadd.f32 %v1397_v62, %v2552_v30  ;;  %v1471_v30 = vmul.f32 %v2576_v46, %v2576_v46 }
 0x12e   : > { %v863_v4 = vpop.f32.mrf.mxu0  ;;  %v991_v5 = vpop.f32.mrf.mxu1 }
 0x130   : > { %v2608_v6 = vpop.f32.mrf.mxu0  ;;  %v2610_v7 = vpop.f32.mrf.mxu1 }
 0x131   : > { %v1999_v8 = vpack.c.bf16 %v2608_v6, %v2604_v2  ;;  %v2079_v9 = vpack.c.bf16 %v2610_v7, %v2606_v3 }
 0x132   : > { %v866_v10 = vpop.f32.mrf.mxu0  ;;  %v994_v11 = vpop.f32.mrf.mxu1 }
 0x133   : > { %2135 = vst [vmem:[%s2536_s5 + $0x28] sm:$0xff] %v1999_v8   ;;  %2151 = vst [vmem:[%s2536_s5 + $0xa8] sm:$0xff] %v2079_v9   ;;  %v1531_v8 = vadd.f32 %v1530_v63, %v1468_v55  ;;  %v1399_v11 = vadd.f32 %v1398_v16, %v2562_v36  ;;  %v1476_v16 = vmul.f32 %v2608_v6, %v2608_v6 }
 0x134   : > { %v2618_v12 = vpop.f32.mrf.mxu0  ;;  %v2620_v13 = vpop.f32.mrf.mxu1 }
 0x136   : > { %v871_v14 = vpop.f32.mrf.mxu0  ;;  %v999_v15 = vpop.f32.mrf.mxu1 }
 0x137   : > { %v1532_v14 = vadd.f32 %v1531_v8, %v1469_v0 }
 0x138   : > { %v2622_v18 = vpop.f32.mrf.mxu0  ;;  %v2624_v19 = vpop.f32.mrf.mxu1 }
 0x139   : > { %v2004_v22 = vpack.c.bf16 %v2622_v18, %v2618_v12  ;;  %v2084_v23 = vpack.c.bf16 %v2624_v19, %v2620_v13 }
 0x13a   : > { %v874_v24 = vpop.f32.mrf.mxu0  ;;  %v1002_v25 = vpop.f32.mrf.mxu1 }
 0x13b   : > { %2136 = vst [vmem:[%s2536_s5 + $0x30] sm:$0xff] %v2004_v22   ;;  %2152 = vst [vmem:[%s2536_s5 + $0xb0] sm:$0xff] %v2084_v23   ;;  %v1400_v23 = vadd.f32 %v1399_v11, %v2566_v40  ;;  %v1533_v24 = vadd.f32 %v1532_v14, %v1470_v26  ;;  %v1472_v25 = vmul.f32 %v2580_v50, %v2580_v50 }
 0x13c   : > { %v2632_v28 = vpop.f32.mrf.mxu0  ;;  %v2634_v29 = vpop.f32.mrf.mxu1  ;;  %v1477_v26 = vmul.f32 %v2618_v12, %v2618_v12 }
 0x13e   : > { %v879_v32 = vpop.f32.mrf.mxu0  ;;  %v1007_v33 = vpop.f32.mrf.mxu1 }
 0x13f   : > { %v1401_v33 = vadd.f32 %v1400_v23, %v2576_v46  ;;  %v1474_v46 = vmul.f32 %v2594_v60, %v2594_v60 }
 0x140   : > { %v2636_v34 = vpop.f32.mrf.mxu0  ;;  %v2638_v35 = vpop.f32.mrf.mxu1 }
 0x141   : > { %v2009_v38 = vpack.c.bf16 %v2636_v34, %v2632_v28  ;;  %v2089_v39 = vpack.c.bf16 %v2638_v35, %v2634_v29  ;;  %v1402_v40 = vadd.f32 %v1401_v33, %v2580_v50  ;;  %v1475_v50 = vmul.f32 %v2604_v2, %v2604_v2 }
 0x142   : > { %v882_v43 = vpop.f32.mrf.mxu0  ;;  %v1010_v44 = vpop.f32.mrf.mxu1 }
 0x143   : > { %2137 = vst [vmem:[%s2536_s5 + $0x38] sm:$0xff] %v2009_v38   ;;  %2153 = vst [vmem:[%s2536_s5 + $0xb8] sm:$0xff] %v2089_v39   ;;  %v1534_v38 = vadd.f32 %v1533_v24, %v1471_v30  ;;  %v1473_v39 = vmul.f32 %v2590_v56, %v2590_v56  ;;  %v1403_v55 = vadd.f32 %v1402_v40, %v2590_v56 }
 0x144   : > { %v2652_v49 = vpop.f32.mrf.mxu0  ;;  %v2654_v52 = vpop.f32.mrf.mxu1  ;;  %v1480_v40 = vmul.f32 %v2636_v34, %v2636_v34 }
 0x145   : > { %v1535_v48 = vadd.f32 %v1534_v38, %v1472_v25  ;;  %v1404_v63 = vadd.f32 %v1403_v55, %v2594_v60 }
 0x146   : > { %v887_v58 = vpop.f32.mrf.mxu0  ;;  %v1015_v59 = vpop.f32.mrf.mxu1 }
 0x147   : > { %v1536_v58 = vadd.f32 %v1535_v48, %v1473_v39 }
 0x148   : > { %v2663_v1 = vpop.f32.mrf.mxu0  ;;  %v2665_v4 = vpop.f32.mrf.mxu1 }
 0x149   : > { %v2014_v20 = vpack.c.bf16 %v2663_v1, %v2652_v49  ;;  %v2094_v5 = vpack.c.bf16 %v2665_v4, %v2654_v52  ;;  %v1537_v0 = vadd.f32 %v1536_v58, %v1474_v46  ;;  %v1481_v46 = vmul.f32 %v2652_v49, %v2652_v49 }
 0x14a   : > { %v890_v9 = vpop.f32.mrf.mxu0  ;;  %v1018_v10 = vpop.f32.mrf.mxu1 }
 0x14b   : > { %2138 = vst [vmem:[%s2536_s5 + $0x40] sm:$0xff] %v2014_v20   ;;  %2154 = vst [vmem:[%s2536_s5 + $0xc0] sm:$0xff] %v2094_v5   ;;  %v1405_v5 = vadd.f32 %v1404_v63, %v2604_v2  ;;  %v1538_v8 = vadd.f32 %v1537_v0, %v1475_v50  ;;  %v1478_v2 = vmul.f32 %v2622_v18, %v2622_v18 }
 0x14c   : > { %v2679_v15 = vpop.f32.mrf.mxu0  ;;  %v2681_v22 = vpop.f32.mrf.mxu1  ;;  %v1482_v63 = vmul.f32 %v2663_v1, %v2663_v1 }
 0x14d   : > { %v1406_v60 = vadd.f32 %v1405_v5, %v2608_v6  ;;  %v1539_v30 = vadd.f32 %v1538_v8, %v1476_v16  ;;  %v1479_v6 = vmul.f32 %v2632_v28, %v2632_v28 }
 0x14e   : > { %v895_v32 = vpop.f32.mrf.mxu0  ;;  %v1023_v36 = vpop.f32.mrf.mxu1 }
 0x14f   : > { %v1407_v25 = vadd.f32 %v1406_v60, %v2618_v12  ;;  %v1540_v32 = vadd.f32 %v1539_v30, %v1477_v26 }
 0x150   : > { %v2689_v42 = vpop.f32.mrf.mxu0  ;;  %v2691_v43 = vpop.f32.mrf.mxu1 }
 0x151   : > { %v2019_v44 = vpack.c.bf16 %v2689_v42, %v2679_v15  ;;  %v2099_v45 = vpack.c.bf16 %v2691_v43, %v2681_v22  ;;  %v1408_v38 = vadd.f32 %v1407_v25, %v2622_v18  ;;  %v1541_v39 = vadd.f32 %v1540_v32, %v1478_v2 }
 0x152   : > { %v898_v53 = vpop.f32.mrf.mxu0  ;;  %v1026_v54 = vpop.f32.mrf.mxu1  ;;  %v1484_v60 = vmul.f32 %v2689_v42, %v2689_v42 }
 0x153   : > { %2139 = vst [vmem:[%s2536_s5 + $0x48] sm:$0xff] %v2019_v44   ;;  %2155 = vst [vmem:[%s2536_s5 + $0xc8] sm:$0xff] %v2099_v45   ;;  %v1409_v12 = vadd.f32 %v1408_v38, %v2632_v28  ;;  %v1542_v48 = vadd.f32 %v1541_v39, %v1479_v6 }
 0x154   : > { %v2705_v59 = vpop.f32.mrf.mxu0  ;;  %v2707_v62 = vpop.f32.mrf.mxu1 }
 0x155   : > { %v1410_v55 = vadd.f32 %v1409_v12, %v2636_v34  ;;  %v1543_v50 = vadd.f32 %v1542_v48, %v1480_v40  ;;  %v1485_v2 = vmul.f32 %v2705_v59, %v2705_v59 }
 0x156   : > { %v903_v20 = vpop.f32.mrf.mxu0  ;;  %v1031_v56 = vpop.f32.mrf.mxu1 }
 0x157   : > { %v1411_v28 = vadd.f32 %v1410_v55, %v2652_v49  ;;  %v1544_v20 = vadd.f32 %v1543_v50, %v1481_v46  ;;  %v1483_v56 = vmul.f32 %v2679_v15, %v2679_v15 }
 0x158   : > { %v2715_v9 = vpop.f32.mrf.mxu0  ;;  %v2717_v10 = vpop.f32.mrf.mxu1 }
 0x159   : > { %v2024_v11 = vpack.c.bf16 %v2715_v9, %v2705_v59  ;;  %v2104_v14 = vpack.c.bf16 %v2717_v10, %v2707_v62  ;;  %v1412_v8 = vadd.f32 %v1411_v28, %v2663_v1  ;;  %v1545_v26 = vadd.f32 %v1544_v20, %v1482_v63 }
 0x15a   : > { %v906_v23 = vpop.f32.mrf.mxu0  ;;  %v1034_v24 = vpop.f32.mrf.mxu1  ;;  %v1486_v38 = vmul.f32 %v2715_v9, %v2715_v9 }
 0x15b   : > { %2140 = vst [vmem:[%s2536_s5 + $0x50] sm:$0xff] %v2024_v11   ;;  %2156 = vst [vmem:[%s2536_s5 + $0xd0] sm:$0xff] %v2104_v14   ;;  %v1413_v49 = vadd.f32 %v1412_v8, %v2679_v15  ;;  %v1546_v30 = vadd.f32 %v1545_v26, %v1483_v56 }
 0x15c   : > { %v909_v36 = vpop.f32.mrf.mxu0  ;;  %v2731_v33 = vpop.f32.mrf.mxu1 }
 0x15d   : > { %v1414_v25 = vadd.f32 %v1413_v49, %v2689_v42  ;;  %v1547_v6 = vadd.f32 %v1546_v30, %v1484_v60 }
 0x15e   : > { %v911_v44 = vpop.f32.mrf.mxu0  ;;  %v1039_v45 = vpop.f32.mrf.mxu1 }
 0x15f   : > { %v1415_v15 = vadd.f32 %v1414_v25, %v2705_v59  ;;  %v1548_v44 = vadd.f32 %v1547_v6, %v1485_v2  ;;  %v1487_v45 = vmul.f32 %v909_v36, %v909_v36 }
 0x160   : > { %v912_v53 = vpop.f32.mrf.mxu0  ;;  %v2739_v54 = vpop.f32.mrf.mxu1 }
 0x161   : > { %v2029_v18 = vpack.c.bf16 %v912_v53, %v909_v36  ;;  %v2109_v58 = vpack.c.bf16 %v2739_v54, %v2731_v33  ;;  %v1416_v42 = vadd.f32 %v1415_v15, %v2715_v9  ;;  %v1549_v46 = vadd.f32 %v1548_v44, %v1486_v38 }
 0x162   : > { %v914_v0 = vpop.f32.mrf.mxu0  ;;  %v1042_v16 = vpop.f32.mrf.mxu1  ;;  %v1488_v55 = vmul.f32 %v912_v53, %v912_v53 }
 0x163   : > { %2141 = vst [vmem:[%s2536_s5 + $0x58] sm:$0xff] %v2029_v18   ;;  %2157 = vst [vmem:[%s2536_s5 + $0xd8] sm:$0xff] %v2109_v58   ;;  %v1417_v50 = vadd.f32 %v1416_v42, %v909_v36  ;;  %v1550_v63 = vadd.f32 %v1549_v46, %v1487_v45 }
 0x164   : > { %v917_v5 = vpop.f32.mrf.mxu0  ;;  %v2751_v34 = vpop.f32.mrf.mxu1 }
 0x165   : > { %v1489_v0 = vmul.f32 %v917_v5, %v917_v5  ;;  %v1418_v28 = vadd.f32 %v1417_v50, %v912_v53  ;;  %v1551_v8 = vadd.f32 %v1550_v63, %v1488_v55 }
 0x166   : > { %v919_v11 = vpop.f32.mrf.mxu0  ;;  %v1047_v14 = vpop.f32.mrf.mxu1 }
 0x167   : > { %v1419_v11 = vadd.f32 %v1418_v28, %v917_v5  ;;  %v1552_v14 = vadd.f32 %v1551_v8, %v1489_v0 }
 0x168   : > { %v920_v23 = vpop.f32.mrf.mxu0  ;;  %v2759_v24 = vpop.f32.mrf.mxu1 }
 0x169   : > { %v2034_v1 = vpack.c.bf16 %v920_v23, %v917_v5  ;;  %v2114_v32 = vpack.c.bf16 %v2759_v24, %v2751_v34  ;;  %v1490_v26 = vmul.f32 %v920_v23, %v920_v23  ;;  %v1420_v2 = vadd.f32 %v1419_v11, %v920_v23 }
 0x16a   : > { %v922_v39 = vpop.f32.mrf.mxu0  ;;  %v1050_v40 = vpop.f32.mrf.mxu1 }
 0x16b   : > { %2142 = vst [vmem:[%s2536_s5 + $0x60] sm:$0xff] %v2034_v1   ;;  %2158 = vst [vmem:[%s2536_s5 + $0xe0] sm:$0xff] %v2114_v32   ;;  %v1553_v25 = vadd.f32 %v1552_v14, %v1490_v26 }
 0x16c   : > { %v925_v12 = vpop.f32.mrf.mxu0  ;;  %v2769_v48 = vpop.f32.mrf.mxu1 }
 0x16d   : > { %v1491_v49 = vmul.f32 %v925_v12, %v925_v12  ;;  %v1421_v6 = vadd.f32 %v1420_v2, %v925_v12 }
 0x16e   : > { %v927_v18 = vpop.f32.mrf.mxu0  ;;  %v1055_v58 = vpop.f32.mrf.mxu1 }
 0x16f   : > { %v1554_v38 = vadd.f32 %v1553_v25, %v1491_v49  ;;  %v1497_v25 = vmul.f32 %v2530_v17, %v2530_v17 }
 0x170   : > { %v928_v16 = vpop.f32.mrf.mxu0  ;;  %v2772_v59 = vpop.f32.mrf.mxu1 }
 0x171   : > { %v2039_v20 = vpack.c.bf16 %v928_v16, %v925_v12  ;;  %v2119_v56 = vpack.c.bf16 %v2772_v59, %v2769_v48  ;;  %v1492_v1 = vmul.f32 %v928_v16, %v928_v16  ;;  %v1422_v5 = vadd.f32 %v1421_v6, %v928_v16 }
 0x172   : > { %v930_v9 = vpop.f32.mrf.mxu0  ;;  %v1058_v60 = vpop.f32.mrf.mxu1 }
 0x173   : > { %2143 = vst [vmem:[%s2536_s5 + $0x68] sm:$0xff] %v2039_v20   ;;  %2159 = vst [vmem:[%s2536_s5 + $0xe8] sm:$0xff] %v2119_v56   ;;  %v1555_v42 = vadd.f32 %v1554_v38, %v1492_v1 }
 0x174   : > { %v933_v36 = vpop.f32.mrf.mxu0  ;;  %v2778_v30 = vpop.f32.mrf.mxu1 }
 0x175   : > { %v1493_v39 = vmul.f32 %v933_v36, %v933_v36  ;;  %v1423_v18 = vadd.f32 %v1422_v5, %v933_v36 }
 0x176   : > { %v935_v53 = vpop.f32.mrf.mxu0  ;;  %v1063_v32 = vpop.f32.mrf.mxu1 }
 0x177   : > { %v1556_v58 = vadd.f32 %v1555_v42, %v1493_v39  ;;  %v1498_v32 = vmul.f32 %v2540_v21, %v2540_v21  ;;  %v1499_v39 = vmul.f32 %v2550_v27, %v2550_v27  ;;  %v1501_v42 = vmul.f32 %v2564_v37, %v2564_v37 }
 0x178   : > { %v936_v40 = vpop.f32.mrf.mxu0  ;;  %v2780_v15 = vpop.f32.mrf.mxu1 }
 0x179   : > { %v2044_v44 = vpack.c.bf16 %v936_v40, %v933_v36  ;;  %v2124_v45 = vpack.c.bf16 %v2780_v15, %v2778_v30  ;;  %v1494_v46 = vmul.f32 %v936_v40, %v936_v40  ;;  %v1424_v63 = vadd.f32 %v1423_v18, %v936_v40 }
 0x17a   : > { %v938_v23 = vpop.f32.mrf.mxu0  ;;  %v1066_v55 = vpop.f32.mrf.mxu1 }
 0x17b   : > { %2144 = vst [vmem:[%s2536_s5 + $0x70] sm:$0xff] %v2044_v44   ;;  %2160 = vst [vmem:[%s2536_s5 + $0xf0] sm:$0xff] %v2124_v45   ;;  %v1557_v28 = vadd.f32 %v1556_v58, %v1494_v46  ;;  %v1500_v44 = vmul.f32 %v2554_v31, %v2554_v31 }
 0x17c   : > { %v941_v50 = vpop.f32.mrf.mxu0  ;;  %v2786_v12 = vpop.f32.mrf.mxu1 }
 0x17d   : > { %v1495_v0 = vmul.f32 %v941_v50, %v941_v50  ;;  %v1425_v56 = vadd.f32 %v1424_v63, %v941_v50 }
 0x17e   : > { %v943_v16 = vpop.f32.mrf.mxu0  ;;  %v1071_v20 = vpop.f32.mrf.mxu1 }
 0x17f   : > { %v1558_v8 = vadd.f32 %v1557_v28, %v1495_v0 }
 0x180   : > { %v944_v26 = vpop.f32.mrf.mxu0  ;;  %v2788_v9 = vpop.f32.mrf.mxu1 }
 0x181   : > { %v2049_v60 = vpack.c.bf16 %v944_v26, %v941_v50  ;;  %v1426_v11 = vadd.f32 %v1425_v56, %v944_v26  ;;  %v1496_v14 = vmul.f32 %v944_v26, %v944_v26  ;;  %v2129_v49 = vpack.c.bf16 %v2788_v9, %v2786_v12 }
 0x182   : > { %v946_v36 = vpop.f32.mrf.mxu0  ;;  %v1074_v2 = vpop.f32.mrf.mxu1 }
 0x183   : > { %2145 = vst [vmem:[%s2536_s5 + $0x78] sm:$0xff] %v2049_v60   ;;  %v1427_v1 = vadd.f32 %v1426_v11, %v2530_v17  ;;  %v1559_v53 = vadd.f32 %v1558_v8, %v1496_v14  ;;  %2161 = vst [vmem:[%s2536_s5 + $0xf8] sm:$0xff] %v2129_v49  }
 0x185   : > { %v1428_v6 = vadd.f32 %v1427_v1, %v2540_v21  ;;  %v1560_v38 = vadd.f32 %v1559_v53, %v1497_v25  ;;  %v1502_v21 = vmul.f32 %v2568_v41, %v2568_v41 }
 0x187   : > { %v1429_v40 = vadd.f32 %v1428_v6, %v2550_v27  ;;  %v1561_v5 = vadd.f32 %v1560_v38, %v1498_v32  ;;  %v1503_v27 = vmul.f32 %v2578_v47, %v2578_v47 }
 0x189   : > { %v1430_v45 = vadd.f32 %v1429_v40, %v2554_v31  ;;  %v1562_v17 = vadd.f32 %v1561_v5, %v1499_v39  ;;  %v1504_v31 = vmul.f32 %v2582_v51, %v2582_v51  ;;  %v1514_v39 = vmul.f32 %v2665_v4, %v2665_v4 }
 0x18b   : > { %v1431_v46 = vadd.f32 %v1430_v45, %v2564_v37  ;;  %v1563_v23 = vadd.f32 %v1562_v17, %v1500_v44  ;;  %v1505_v37 = vmul.f32 %v2592_v57, %v2592_v57  ;;  %v1515_v44 = vmul.f32 %v2681_v22, %v2681_v22 }
 0x18c   : > { %v1516_v17 = vmul.f32 %v2691_v43, %v2691_v43 }
 0x18d   : > { %v1432_v55 = vadd.f32 %v1431_v46, %v2568_v41  ;;  %v1564_v18 = vadd.f32 %v1563_v23, %v1501_v42  ;;  %v1506_v41 = vmul.f32 %v2596_v61, %v2596_v61  ;;  %v1517_v46 = vmul.f32 %v2707_v62, %v2707_v62 }
 0x18f   : > { %v1433_v58 = vadd.f32 %v1432_v55, %v2578_v47  ;;  %v1565_v50 = vadd.f32 %v1564_v18, %v1502_v21  ;;  %v1507_v47 = vmul.f32 %v2606_v3, %v2606_v3  ;;  %v1518_v21 = vmul.f32 %v2717_v10, %v2717_v10 }
 0x190   : > { %v1519_v18 = vmul.f32 %v2731_v33, %v2731_v33 }
 0x191   : > { %v1434_v63 = vadd.f32 %v1433_v58, %v2582_v51  ;;  %v1566_v0 = vadd.f32 %v1565_v50, %v1503_v27  ;;  %v1508_v51 = vmul.f32 %v2610_v7, %v2610_v7  ;;  %v1520_v58 = vmul.f32 %v2739_v54, %v2739_v54 }
 0x193   : > { %v1567_v28 = vadd.f32 %v1566_v0, %v1504_v31  ;;  %v1435_v16 = vadd.f32 %v1434_v63, %v2592_v57  ;;  %v1509_v57 = vmul.f32 %v2620_v13, %v2620_v13  ;;  %v1521_v31 = vmul.f32 %v2751_v34, %v2751_v34 }
 0x194   : > { %v1522_v0 = vmul.f32 %v2759_v24, %v2759_v24 }
 0x195   : > { %v1436_v20 = vadd.f32 %v1435_v16, %v2596_v61  ;;  %v1568_v56 = vadd.f32 %v1567_v28, %v1505_v37  ;;  %v1510_v61 = vmul.f32 %v2624_v19, %v2624_v19  ;;  %v1523_v28 = vmul.f32 %v2769_v48, %v2769_v48 }
 0x197   : > { %v1437_v8 = vadd.f32 %v1436_v20, %v2606_v3  ;;  %v1569_v26 = vadd.f32 %v1568_v56, %v1506_v41  ;;  %v1511_v3 = vmul.f32 %v2634_v29, %v2634_v29  ;;  %v1524_v41 = vmul.f32 %v2772_v59, %v2772_v59 }
 0x199   : > { %v1438_v60 = vadd.f32 %v1437_v8, %v2610_v7  ;;  %v1570_v11 = vadd.f32 %v1569_v26, %v1507_v47  ;;  %v1512_v7 = vmul.f32 %v2638_v35, %v2638_v35  ;;  %v1526_v8 = vmul.f32 %v2780_v15, %v2780_v15 }
 0x19b   : > { %v1439_v14 = vadd.f32 %v1438_v60, %v2620_v13  ;;  %v1571_v49 = vadd.f32 %v1570_v11, %v1508_v51  ;;  %v1513_v13 = vmul.f32 %v2654_v52, %v2654_v52  ;;  %v1527_v51 = vmul.f32 %v2786_v12, %v2786_v12 }
 0x19c   : > { %v1528_v11 = vmul.f32 %v2788_v9, %v2788_v9 }
 0x19d   : > { %v1440_v36 = vadd.f32 %v1439_v14, %v2624_v19  ;;  %v1572_v2 = vadd.f32 %v1571_v49, %v1509_v57 }
 0x19f   : > { %v1441_v25 = vadd.f32 %v1440_v36, %v2634_v29  ;;  %v1573_v1 = vadd.f32 %v1572_v2, %v1510_v61 }
 0x1a1   : > { %v1442_v53 = vadd.f32 %v1441_v25, %v2638_v35  ;;  %v1574_v32 = vadd.f32 %v1573_v1, %v1511_v3 }
 0x1a3   : > { %v1443_v6 = vadd.f32 %v1442_v53, %v2654_v52  ;;  %v1575_v38 = vadd.f32 %v1574_v32, %v1512_v7 }
 0x1a5   : > { %v1444_v19 = vadd.f32 %v1443_v6, %v2665_v4  ;;  %v1576_v40 = vadd.f32 %v1575_v38, %v1513_v13 }
 0x1a7   : > { %v1577_v29 = vadd.f32 %v1576_v40, %v1514_v39  ;;  %v1445_v5 = vadd.f32 %v1444_v19, %v2681_v22 }
 0x1a9   : > { %v1578_v35 = vadd.f32 %v1577_v29, %v1515_v44  ;;  %v1446_v45 = vadd.f32 %v1445_v5, %v2691_v43 }
 0x1ab   : > { %v1579_v52 = vadd.f32 %v1578_v35, %v1516_v17  ;;  %v1447_v42 = vadd.f32 %v1446_v45, %v2707_v62 }
 0x1ad   : > { %v1580_v4 = vadd.f32 %v1579_v52, %v1517_v46  ;;  %v1448_v23 = vadd.f32 %v1447_v42, %v2717_v10 }
 0x1af   : > { %v1581_v55 = vadd.f32 %v1580_v4, %v1518_v21  ;;  %v1449_v22 = vadd.f32 %v1448_v23, %v2731_v33 }
 0x1b1   : > { %v1582_v27 = vadd.f32 %v1581_v55, %v1519_v18  ;;  %v1450_v43 = vadd.f32 %v1449_v22, %v2739_v54 }
 0x1b3   : > { %v1583_v50 = vadd.f32 %v1582_v27, %v1520_v58  ;;  %v1451_v62 = vadd.f32 %v1450_v43, %v2751_v34 }
 0x1b5   : > { %v1584_v63 = vadd.f32 %v1583_v50, %v1521_v31  ;;  %v1452_v10 = vadd.f32 %v1451_v62, %v2759_v24  ;;  %v1525_v24 = vmul.f32 %v2778_v30, %v2778_v30 }
 0x1b7   : > { %v1585_v37 = vadd.f32 %v1584_v63, %v1522_v0  ;;  %v1453_v33 = vadd.f32 %v1452_v10, %v2769_v48 }
 0x1b9   : > { %v1586_v54 = vadd.f32 %v1585_v37, %v1523_v28  ;;  %v1454_v16 = vadd.f32 %v1453_v33, %v2772_v59 }
 0x1bb   : > { %v1587_v34 = vadd.f32 %v1586_v54, %v1524_v41  ;;  %v1455_v20 = vadd.f32 %v1454_v16, %v2778_v30 }
 0x1bd   : > { %v1588_v56 = vadd.f32 %v1587_v34, %v1525_v24  ;;  %v1456_v47 = vadd.f32 %v1455_v20, %v2780_v15 }
 0x1bf   : > { %v1589_v48 = vadd.f32 %v1588_v56, %v1526_v8  ;;  %v1457_v26 = vadd.f32 %v1456_v47, %v2786_v12 }
 0x1c1   : > { %v1590_v59 = vadd.f32 %v1589_v48, %v1527_v51  ;;  %v1458_v60 = vadd.f32 %v1457_v26, %v2788_v9 }
 0x1c3   : > { %v1459_v30 = vrot.slane %v1458_v60, 4  ;;  %v1591_v57 = vadd.f32 %v1590_v59, %v1528_v11 }
 0x1c5   : > { %v1460_v14 = vadd.f32 %v1459_v30, %v1458_v60  ;;  %v1592_v49 = vrot.slane %v1591_v57, 4 }
 0x1c7   : > { %v1461_v61 = vrot.slane %v1460_v14, 2  ;;  %v1593_v15 = vadd.f32 %v1592_v49, %v1591_v57 }
 0x1c9   : > { %v1462_v36 = vadd.f32 %v1461_v61, %v1460_v14  ;;  %v1594_v2 = vrot.slane %v1593_v15, 2 }
 0x1cb   : > { %v1463_v3 = vrot.slane %v1462_v36, 1  ;;  %v1595_v25 = vadd.f32 %v1594_v2, %v1593_v15 }
 0x1cd   : > { %v1464_v12 = vadd.f32 %v1463_v3, %v1462_v36  ;;  %v1596_v1 = vrot.slane %v1595_v25, 1 }
 0x1cf   : > { %v1597_v9 = vadd.f32 %v1596_v1, %v1595_v25  ;;  %1598 = vst [vmem:[%s220_s7] sm:$0xff] %v1464_v12 }
 0x1d1   : > { %1599 = vst [vmem:[%s224_s10] sm:$0xff] %v1597_v9 }
 0x1d2 PF: > { %s15_s15 = sadd.s32 1, %s2315_s15  }
 0x1d3   : > { %p12_p5 = scmp.ge.s32.totalorder %s15_s15, 4  }
 0x1d5   :  { %14 = sbr.rel (!%p12_p5) target bundleno = 1 (0x1), region = 82 }

// kernel: double_conv_forward.7
= control target key start
LH: loop header
LB: loop body
LE: loop exit
PB: predicated region body
PF: predicated region fallthrough
CT: control target
= control target key end

     0   :  { %s836_s12 = smov 0   ;;  %s1095_s0 = inlined_call_operand.vmem [shape: bf16[1024,128], index: 0, kind: input, shape index: {}]   ;;  %s1096_s1 = inlined_call_operand.vmem [shape: f32[1,128], index: 1, kind: input, shape index: {}]   ;;  %s1097_s2 = inlined_call_operand.vmem [shape: f32[1,128], index: 2, kind: input, shape index: {}]   ;;  %s1098_s3 = inlined_call_operand.vmem [shape: f32[1024,128], index: 3, kind: output, shape index: {}]  }
   0x1 LB: > { %s628_s13 = sadd.s32 4294967295, %s814_s12   ;;  %p632_p0 = scmp.ge.s32.totalorder %s814_s12, 1  ;;  %s814_s12 = sphi %s836_s12, %s13_s12  }
   0x2   : > { %p138_p1 = scmp.lt.s32.totalorder %s814_s12, 3 }
   0x4   : > { %p139_p2 = pnand %p632_p0, %p138_p1 }
   0x5   : > { %s633_s14 = sshll.u32 (!%p139_p2), %s628_s13, 6 }
   0x6   : > { %142 = sbr.rel (%p139_p2) target bundleno = 83 (0x53), region = 32  ;;  %p163_p3 = scmp.lt.s32.totalorder (!%p139_p2), %s633_s14, 127 }
   0xb   : > { %s1100_s14 = smov (!%p163_p3, %s633_s14), 127  ;;  %v855_v0 = vld [vmem:[%s1096_s1] ss:$0 sm:$0xff] }
   0xc   : > { %s634_s15 = sshll.u32 %s1100_s14, 2  ;;  %v864_v9 = vld [vmem:[%s1097_s2] ss:$0 sm:$0xff]  ;;  %s636_s23 = sshll.u32 %s1100_s14, 3 }
   0xd   : > { %s850_s18 = scalar_lea.vmem %s1095_s0, %s634_s15  ;;  %s882_s26 = scalar_lea.vmem %s1098_s3, %s636_s23 }
   0xe   : > { %v642_v1 = vld [vmem:[%s850_s18] sm:$0xff]   ;;  %v769_v2 = vld [vmem:[%s850_s18 + $0x8] sm:$0xff]   ;;  %v770_v3 = vld [vmem:[%s850_s18 + $0x10] sm:$0xff]  }
   0xf   : > { %v643_v4 = vunpack.c.l.bf16 %v642_v1  ;;  %v644_v5 = vunpack.c.h.bf16 %v642_v1  ;;  %v647_v6 = vunpack.c.l.bf16 %v769_v2  ;;  %v648_v7 = vunpack.c.h.bf16 %v769_v2  ;;  %v771_v8 = vld [vmem:[%s850_s18 + $0x18] sm:$0xff]   ;;  %v772_v30 = vld [vmem:[%s850_s18 + $0x20] sm:$0xff]   ;;  %v773_v31 = vld [vmem:[%s850_s18 + $0x28] sm:$0xff]  }
  0x10   : > { %v651_v10 = vunpack.c.l.bf16 %v770_v3  ;;  %v652_v11 = vunpack.c.h.bf16 %v770_v3  ;;  %v655_v12 = vunpack.c.l.bf16 %v771_v8  ;;  %v656_v13 = vunpack.c.h.bf16 %v771_v8  ;;  %v774_v36 = vld [vmem:[%s850_s18 + $0x30] sm:$0xff]   ;;  %v775_v37 = vld [vmem:[%s850_s18 + $0x38] sm:$0xff]   ;;  %v776_v3 = vld [vmem:[%s850_s18 + $0x40] sm:$0xff]  }
  0x11   : > { %v309_v14 = vmul.f32 %v643_v4, %v855_v0  ;;  %v310_v15 = vmul.f32 %v644_v5, %v855_v0  ;;  %v311_v16 = vmul.f32 %v647_v6, %v855_v0  ;;  %v312_v17 = vmul.f32 %v648_v7, %v855_v0  ;;  %v777_v4 = vld [vmem:[%s850_s18 + $0x48] sm:$0xff]  }
  0x12   : > { %v313_v18 = vmul.f32 %v651_v10, %v855_v0  ;;  %v314_v19 = vmul.f32 %v652_v11, %v855_v0  ;;  %v315_v20 = vmul.f32 %v655_v12, %v855_v0  ;;  %v316_v21 = vmul.f32 %v656_v13, %v855_v0  ;;  %v778_v10 = vld [vmem:[%s850_s18 + $0x50] sm:$0xff]   ;;  %v779_v11 = vld [vmem:[%s850_s18 + $0x58] sm:$0xff]  }
  0x13   : > { %v380_v22 = vadd.f32 %v864_v9, %v309_v14  ;;  %v381_v23 = vadd.f32 %v864_v9, %v310_v15  ;;  %v382_v24 = vadd.f32 %v864_v9, %v311_v16  ;;  %v383_v25 = vadd.f32 %v864_v9, %v312_v17 }
  0x14   : > { %v384_v26 = vadd.f32 %v864_v9, %v313_v18  ;;  %v385_v27 = vadd.f32 %v864_v9, %v314_v19  ;;  %v386_v28 = vadd.f32 %v864_v9, %v315_v20  ;;  %v387_v29 = vadd.f32 %v864_v9, %v316_v21 }
  0x15   : > { %v444_v32 = vmax.f32 %v380_v22, 0.0  ;;  %v445_v33 = vmax.f32 %v381_v23, 0.0  ;;  %v446_v34 = vmax.f32 %v382_v24, 0.0  ;;  %v447_v35 = vmax.f32 %v383_v25, 0.0 }
  0x16   : > { %v448_v38 = vmax.f32 %v384_v26, 0.0  ;;  %v449_v39 = vmax.f32 %v385_v27, 0.0  ;;  %v450_v40 = vmax.f32 %v386_v28, 0.0  ;;  %v451_v41 = vmax.f32 %v387_v29, 0.0 }
  0x17   : > { %508 = vst [vmem:[%s882_s26] sm:$0xff] %v444_v32  ;;  %509 = vst [vmem:[%s882_s26 + $0x8] sm:$0xff] %v445_v33  ;;  %v659_v42 = vunpack.c.l.bf16 %v772_v30  ;;  %v660_v43 = vunpack.c.h.bf16 %v772_v30  ;;  %v663_v44 = vunpack.c.l.bf16 %v773_v31  ;;  %v664_v45 = vunpack.c.h.bf16 %v773_v31 }
  0x18   : > { %510 = vst [vmem:[%s882_s26 + $0x10] sm:$0xff] %v446_v34  ;;  %511 = vst [vmem:[%s882_s26 + $0x18] sm:$0xff] %v447_v35  ;;  %v667_v46 = vunpack.c.l.bf16 %v774_v36  ;;  %v668_v47 = vunpack.c.h.bf16 %v774_v36  ;;  %v671_v48 = vunpack.c.l.bf16 %v775_v37  ;;  %v672_v49 = vunpack.c.h.bf16 %v775_v37 }
  0x19   : > { %512 = vst [vmem:[%s882_s26 + $0x20] sm:$0xff] %v448_v38  ;;  %513 = vst [vmem:[%s882_s26 + $0x28] sm:$0xff] %v449_v39  ;;  %v317_v50 = vmul.f32 %v659_v42, %v855_v0  ;;  %v318_v51 = vmul.f32 %v660_v43, %v855_v0  ;;  %v319_v52 = vmul.f32 %v663_v44, %v855_v0  ;;  %v675_v16 = vunpack.c.l.bf16 %v776_v3 }
  0x1a   : > { %514 = vst [vmem:[%s882_s26 + $0x30] sm:$0xff] %v450_v40  ;;  %515 = vst [vmem:[%s882_s26 + $0x38] sm:$0xff] %v451_v41  ;;  %v320_v53 = vmul.f32 %v664_v45, %v855_v0  ;;  %v321_v54 = vmul.f32 %v667_v46, %v855_v0  ;;  %v322_v55 = vmul.f32 %v668_v47, %v855_v0  ;;  %v676_v17 = vunpack.c.h.bf16 %v776_v3  ;;  %v780_v40 = vld [vmem:[%s850_s18 + $0x60] sm:$0xff]   ;;  %v781_v41 = vld [vmem:[%s850_s18 + $0x68] sm:$0xff]  }
  0x1b   : > { %v323_v56 = vmul.f32 %v671_v48, %v855_v0  ;;  %v324_v57 = vmul.f32 %v672_v49, %v855_v0  ;;  %v388_v58 = vadd.f32 %v864_v9, %v317_v50  ;;  %v389_v59 = vadd.f32 %v864_v9, %v318_v51  ;;  %v782_v46 = vld [vmem:[%s850_s18 + $0x70] sm:$0xff]   ;;  %v783_v47 = vld [vmem:[%s850_s18 + $0x78] sm:$0xff]  }
  0x1c   : > { %v390_v60 = vadd.f32 %v864_v9, %v319_v52  ;;  %v391_v61 = vadd.f32 %v864_v9, %v320_v53  ;;  %v392_v62 = vadd.f32 %v864_v9, %v321_v54  ;;  %v393_v63 = vadd.f32 %v864_v9, %v322_v55 }
  0x1d   : > { %v394_v1 = vadd.f32 %v864_v9, %v323_v56  ;;  %v395_v2 = vadd.f32 %v864_v9, %v324_v57  ;;  %v452_v5 = vmax.f32 %v388_v58, 0.0  ;;  %v453_v6 = vmax.f32 %v389_v59, 0.0 }
  0x1e   : > { %v454_v7 = vmax.f32 %v390_v60, 0.0  ;;  %v455_v8 = vmax.f32 %v391_v61, 0.0  ;;  %v456_v12 = vmax.f32 %v392_v62, 0.0  ;;  %v457_v13 = vmax.f32 %v393_v63, 0.0 }
  0x1f   : > { %v458_v14 = vmax.f32 %v394_v1, 0.0  ;;  %v459_v15 = vmax.f32 %v395_v2, 0.0  ;;  %516 = vst [vmem:[%s882_s26 + $0x40] sm:$0xff] %v452_v5  ;;  %517 = vst [vmem:[%s882_s26 + $0x48] sm:$0xff] %v453_v6  ;;  %v679_v18 = vunpack.c.l.bf16 %v777_v4  ;;  %v680_v19 = vunpack.c.h.bf16 %v777_v4 }
  0x20   : > { %518 = vst [vmem:[%s882_s26 + $0x50] sm:$0xff] %v454_v7  ;;  %519 = vst [vmem:[%s882_s26 + $0x58] sm:$0xff] %v455_v8  ;;  %v683_v20 = vunpack.c.l.bf16 %v778_v10  ;;  %v684_v21 = vunpack.c.h.bf16 %v778_v10  ;;  %v687_v22 = vunpack.c.l.bf16 %v779_v11  ;;  %v688_v23 = vunpack.c.h.bf16 %v779_v11 }
  0x21   : > { %520 = vst [vmem:[%s882_s26 + $0x60] sm:$0xff] %v456_v12  ;;  %521 = vst [vmem:[%s882_s26 + $0x68] sm:$0xff] %v457_v13  ;;  %v325_v24 = vmul.f32 %v675_v16, %v855_v0  ;;  %v326_v25 = vmul.f32 %v676_v17, %v855_v0  ;;  %v327_v26 = vmul.f32 %v679_v18, %v855_v0  ;;  %v691_v52 = vunpack.c.l.bf16 %v780_v40 }
  0x22   : > { %522 = vst [vmem:[%s882_s26 + $0x70] sm:$0xff] %v458_v14  ;;  %523 = vst [vmem:[%s882_s26 + $0x78] sm:$0xff] %v459_v15  ;;  %v328_v27 = vmul.f32 %v680_v19, %v855_v0  ;;  %v329_v28 = vmul.f32 %v683_v20, %v855_v0  ;;  %v330_v29 = vmul.f32 %v684_v21, %v855_v0  ;;  %v692_v53 = vunpack.c.h.bf16 %v780_v40  ;;  %v784_v14 = vld [vmem:[%s850_s18 + $0x80] sm:$0xff]   ;;  %v785_v15 = vld [vmem:[%s850_s18 + $0x88] sm:$0xff]  }
  0x23   : > { %v331_v30 = vmul.f32 %v687_v22, %v855_v0  ;;  %v332_v31 = vmul.f32 %v688_v23, %v855_v0  ;;  %v396_v32 = vadd.f32 %v864_v9, %v325_v24  ;;  %v397_v33 = vadd.f32 %v864_v9, %v326_v25  ;;  %v786_v20 = vld [vmem:[%s850_s18 + $0x90] sm:$0xff]   ;;  %v787_v21 = vld [vmem:[%s850_s18 + $0x98] sm:$0xff]  }
  0x24   : > { %v398_v34 = vadd.f32 %v864_v9, %v327_v26  ;;  %v399_v35 = vadd.f32 %v864_v9, %v328_v27  ;;  %v400_v36 = vadd.f32 %v864_v9, %v329_v28  ;;  %v401_v37 = vadd.f32 %v864_v9, %v330_v29 }
  0x25   : > { %v402_v38 = vadd.f32 %v864_v9, %v331_v30  ;;  %v403_v39 = vadd.f32 %v864_v9, %v332_v31  ;;  %v460_v42 = vmax.f32 %v396_v32, 0.0  ;;  %v461_v43 = vmax.f32 %v397_v33, 0.0 }
  0x26   : > { %v462_v44 = vmax.f32 %v398_v34, 0.0  ;;  %v463_v45 = vmax.f32 %v399_v35, 0.0  ;;  %v464_v48 = vmax.f32 %v400_v36, 0.0  ;;  %v465_v49 = vmax.f32 %v401_v37, 0.0 }
  0x27   : > { %v466_v50 = vmax.f32 %v402_v38, 0.0  ;;  %v467_v51 = vmax.f32 %v403_v39, 0.0  ;;  %524 = vst [vmem:[%s882_s26 + $0x80] sm:$0xff] %v460_v42  ;;  %525 = vst [vmem:[%s882_s26 + $0x88] sm:$0xff] %v461_v43  ;;  %v695_v54 = vunpack.c.l.bf16 %v781_v41  ;;  %v696_v55 = vunpack.c.h.bf16 %v781_v41 }
  0x28   : > { %526 = vst [vmem:[%s882_s26 + $0x90] sm:$0xff] %v462_v44  ;;  %527 = vst [vmem:[%s882_s26 + $0x98] sm:$0xff] %v463_v45  ;;  %v699_v56 = vunpack.c.l.bf16 %v782_v46  ;;  %v700_v57 = vunpack.c.h.bf16 %v782_v46  ;;  %v703_v58 = vunpack.c.l.bf16 %v783_v47  ;;  %v704_v59 = vunpack.c.h.bf16 %v783_v47 }
  0x29   : > { %528 = vst [vmem:[%s882_s26 + $0xa0] sm:$0xff] %v464_v48  ;;  %529 = vst [vmem:[%s882_s26 + $0xa8] sm:$0xff] %v465_v49  ;;  %v333_v60 = vmul.f32 %v691_v52, %v855_v0  ;;  %v334_v61 = vmul.f32 %v692_v53, %v855_v0  ;;  %v335_v62 = vmul.f32 %v695_v54, %v855_v0  ;;  %v707_v26 = vunpack.c.l.bf16 %v784_v14 }
  0x2a   : > { %530 = vst [vmem:[%s882_s26 + $0xb0] sm:$0xff] %v466_v50  ;;  %531 = vst [vmem:[%s882_s26 + $0xb8] sm:$0xff] %v467_v51  ;;  %v336_v63 = vmul.f32 %v696_v55, %v855_v0  ;;  %v337_v1 = vmul.f32 %v699_v56, %v855_v0  ;;  %v338_v2 = vmul.f32 %v700_v57, %v855_v0  ;;  %v708_v27 = vunpack.c.h.bf16 %v784_v14  ;;  %v788_v50 = vld [vmem:[%s850_s18 + $0xa0] sm:$0xff]   ;;  %v789_v51 = vld [vmem:[%s850_s18 + $0xa8] sm:$0xff]  }
  0x2b   : > { %v339_v3 = vmul.f32 %v703_v58, %v855_v0  ;;  %v340_v4 = vmul.f32 %v704_v59, %v855_v0  ;;  %v404_v5 = vadd.f32 %v864_v9, %v333_v60  ;;  %v405_v6 = vadd.f32 %v864_v9, %v334_v61  ;;  %v790_v56 = vld [vmem:[%s850_s18 + $0xb0] sm:$0xff]   ;;  %v791_v57 = vld [vmem:[%s850_s18 + $0xb8] sm:$0xff]  }
  0x2c   : > { %v406_v7 = vadd.f32 %v864_v9, %v335_v62  ;;  %v407_v8 = vadd.f32 %v864_v9, %v336_v63  ;;  %v408_v10 = vadd.f32 %v864_v9, %v337_v1  ;;  %v409_v11 = vadd.f32 %v864_v9, %v338_v2 }
  0x2d   : > { %v410_v12 = vadd.f32 %v864_v9, %v339_v3  ;;  %v411_v13 = vadd.f32 %v864_v9, %v340_v4  ;;  %v468_v16 = vmax.f32 %v404_v5, 0.0  ;;  %v469_v17 = vmax.f32 %v405_v6, 0.0 }
  0x2e   : > { %v470_v18 = vmax.f32 %v406_v7, 0.0  ;;  %v471_v19 = vmax.f32 %v407_v8, 0.0  ;;  %v472_v22 = vmax.f32 %v408_v10, 0.0  ;;  %v473_v23 = vmax.f32 %v409_v11, 0.0 }
  0x2f   : > { %v474_v24 = vmax.f32 %v410_v12, 0.0  ;;  %v475_v25 = vmax.f32 %v411_v13, 0.0  ;;  %532 = vst [vmem:[%s882_s26 + $0xc0] sm:$0xff] %v468_v16  ;;  %533 = vst [vmem:[%s882_s26 + $0xc8] sm:$0xff] %v469_v17  ;;  %v711_v28 = vunpack.c.l.bf16 %v785_v15  ;;  %v712_v29 = vunpack.c.h.bf16 %v785_v15 }
  0x30   : > { %534 = vst [vmem:[%s882_s26 + $0xd0] sm:$0xff] %v470_v18  ;;  %535 = vst [vmem:[%s882_s26 + $0xd8] sm:$0xff] %v471_v19  ;;  %v715_v30 = vunpack.c.l.bf16 %v786_v20  ;;  %v716_v31 = vunpack.c.h.bf16 %v786_v20  ;;  %v719_v32 = vunpack.c.l.bf16 %v787_v21  ;;  %v720_v33 = vunpack.c.h.bf16 %v787_v21 }
  0x31   : > { %536 = vst [vmem:[%s882_s26 + $0xe0] sm:$0xff] %v472_v22  ;;  %537 = vst [vmem:[%s882_s26 + $0xe8] sm:$0xff] %v473_v23  ;;  %v341_v34 = vmul.f32 %v707_v26, %v855_v0  ;;  %v342_v35 = vmul.f32 %v708_v27, %v855_v0  ;;  %v343_v36 = vmul.f32 %v711_v28, %v855_v0  ;;  %v723_v62 = vunpack.c.l.bf16 %v788_v50 }
  0x32   : > { %538 = vst [vmem:[%s882_s26 + $0xf0] sm:$0xff] %v474_v24  ;;  %539 = vst [vmem:[%s882_s26 + $0xf8] sm:$0xff] %v475_v25  ;;  %v344_v37 = vmul.f32 %v712_v29, %v855_v0  ;;  %v345_v38 = vmul.f32 %v715_v30, %v855_v0  ;;  %v346_v39 = vmul.f32 %v716_v31, %v855_v0  ;;  %v724_v63 = vunpack.c.h.bf16 %v788_v50  ;;  %v792_v24 = vld [vmem:[%s850_s18 + $0xc0] sm:$0xff]   ;;  %v793_v25 = vld [vmem:[%s850_s18 + $0xc8] sm:$0xff]  }
  0x33   : > { %v347_v40 = vmul.f32 %v719_v32, %v855_v0  ;;  %v348_v41 = vmul.f32 %v720_v33, %v855_v0  ;;  %v412_v42 = vadd.f32 %v864_v9, %v341_v34  ;;  %v413_v43 = vadd.f32 %v864_v9, %v342_v35  ;;  %v794_v30 = vld [vmem:[%s850_s18 + $0xd0] sm:$0xff]   ;;  %v795_v31 = vld [vmem:[%s850_s18 + $0xd8] sm:$0xff]  }
  0x34   : > { %v414_v44 = vadd.f32 %v864_v9, %v343_v36  ;;  %v415_v45 = vadd.f32 %v864_v9, %v344_v37  ;;  %v416_v46 = vadd.f32 %v864_v9, %v345_v38  ;;  %v417_v47 = vadd.f32 %v864_v9, %v346_v39 }
  0x35   : > { %v418_v48 = vadd.f32 %v864_v9, %v347_v40  ;;  %v419_v49 = vadd.f32 %v864_v9, %v348_v41  ;;  %v476_v52 = vmax.f32 %v412_v42, 0.0  ;;  %v477_v53 = vmax.f32 %v413_v43, 0.0 }
  0x36   : > { %v478_v54 = vmax.f32 %v414_v44, 0.0  ;;  %v479_v55 = vmax.f32 %v415_v45, 0.0  ;;  %v480_v58 = vmax.f32 %v416_v46, 0.0  ;;  %v481_v59 = vmax.f32 %v417_v47, 0.0 }
  0x37   : > { %v482_v60 = vmax.f32 %v418_v48, 0.0  ;;  %v483_v61 = vmax.f32 %v419_v49, 0.0  ;;  %540 = vst [vmem:[%s882_s26 + $0x100] sm:$0xff] %v476_v52  ;;  %541 = vst [vmem:[%s882_s26 + $0x108] sm:$0xff] %v477_v53  ;;  %v727_v1 = vunpack.c.l.bf16 %v789_v51  ;;  %v728_v2 = vunpack.c.h.bf16 %v789_v51 }
  0x38   : > { %542 = vst [vmem:[%s882_s26 + $0x110] sm:$0xff] %v478_v54  ;;  %543 = vst [vmem:[%s882_s26 + $0x118] sm:$0xff] %v479_v55  ;;  %v731_v3 = vunpack.c.l.bf16 %v790_v56  ;;  %v732_v4 = vunpack.c.h.bf16 %v790_v56  ;;  %v735_v5 = vunpack.c.l.bf16 %v791_v57  ;;  %v736_v6 = vunpack.c.h.bf16 %v791_v57 }
  0x39   : > { %544 = vst [vmem:[%s882_s26 + $0x120] sm:$0xff] %v480_v58  ;;  %545 = vst [vmem:[%s882_s26 + $0x128] sm:$0xff] %v481_v59  ;;  %v349_v7 = vmul.f32 %v723_v62, %v855_v0  ;;  %v350_v8 = vmul.f32 %v724_v63, %v855_v0  ;;  %v351_v10 = vmul.f32 %v727_v1, %v855_v0  ;;  %v739_v36 = vunpack.c.l.bf16 %v792_v24 }
  0x3a   : > { %546 = vst [vmem:[%s882_s26 + $0x130] sm:$0xff] %v482_v60  ;;  %547 = vst [vmem:[%s882_s26 + $0x138] sm:$0xff] %v483_v61  ;;  %v352_v11 = vmul.f32 %v728_v2, %v855_v0  ;;  %v353_v12 = vmul.f32 %v731_v3, %v855_v0  ;;  %v354_v13 = vmul.f32 %v732_v4, %v855_v0  ;;  %v740_v37 = vunpack.c.h.bf16 %v792_v24  ;;  %v796_v60 = vld [vmem:[%s850_s18 + $0xe0] sm:$0xff]   ;;  %v797_v61 = vld [vmem:[%s850_s18 + $0xe8] sm:$0xff]  }
  0x3b   : > { %v355_v14 = vmul.f32 %v735_v5, %v855_v0  ;;  %v356_v15 = vmul.f32 %v736_v6, %v855_v0  ;;  %v420_v16 = vadd.f32 %v864_v9, %v349_v7  ;;  %v421_v17 = vadd.f32 %v864_v9, %v350_v8  ;;  %v798_v3 = vld [vmem:[%s850_s18 + $0xf0] sm:$0xff]   ;;  %v799_v4 = vld [vmem:[%s850_s18 + $0xf8] sm:$0xff]  }
  0x3c   : > { %v422_v18 = vadd.f32 %v864_v9, %v351_v10  ;;  %v423_v19 = vadd.f32 %v864_v9, %v352_v11  ;;  %v424_v20 = vadd.f32 %v864_v9, %v353_v12  ;;  %v425_v21 = vadd.f32 %v864_v9, %v354_v13 }
  0x3d   : > { %v426_v22 = vadd.f32 %v864_v9, %v355_v14  ;;  %v427_v23 = vadd.f32 %v864_v9, %v356_v15  ;;  %v484_v26 = vmax.f32 %v420_v16, 0.0  ;;  %v485_v27 = vmax.f32 %v421_v17, 0.0 }
  0x3e   : > { %v486_v28 = vmax.f32 %v422_v18, 0.0  ;;  %v487_v29 = vmax.f32 %v423_v19, 0.0  ;;  %v488_v32 = vmax.f32 %v424_v20, 0.0  ;;  %v489_v33 = vmax.f32 %v425_v21, 0.0 }
  0x3f   : > { %v490_v34 = vmax.f32 %v426_v22, 0.0  ;;  %v491_v35 = vmax.f32 %v427_v23, 0.0  ;;  %548 = vst [vmem:[%s882_s26 + $0x140] sm:$0xff] %v484_v26  ;;  %549 = vst [vmem:[%s882_s26 + $0x148] sm:$0xff] %v485_v27  ;;  %v743_v38 = vunpack.c.l.bf16 %v793_v25  ;;  %v744_v39 = vunpack.c.h.bf16 %v793_v25 }
  0x40   : > { %550 = vst [vmem:[%s882_s26 + $0x150] sm:$0xff] %v486_v28  ;;  %551 = vst [vmem:[%s882_s26 + $0x158] sm:$0xff] %v487_v29  ;;  %v747_v40 = vunpack.c.l.bf16 %v794_v30  ;;  %v748_v41 = vunpack.c.h.bf16 %v794_v30  ;;  %v751_v42 = vunpack.c.l.bf16 %v795_v31  ;;  %v752_v43 = vunpack.c.h.bf16 %v795_v31 }
  0x41   : > { %552 = vst [vmem:[%s882_s26 + $0x160] sm:$0xff] %v488_v32  ;;  %553 = vst [vmem:[%s882_s26 + $0x168] sm:$0xff] %v489_v33  ;;  %v357_v44 = vmul.f32 %v739_v36, %v855_v0  ;;  %v358_v45 = vmul.f32 %v740_v37, %v855_v0  ;;  %v359_v46 = vmul.f32 %v743_v38, %v855_v0  ;;  %v755_v10 = vunpack.c.l.bf16 %v796_v60 }
  0x42   : > { %554 = vst [vmem:[%s882_s26 + $0x170] sm:$0xff] %v490_v34  ;;  %555 = vst [vmem:[%s882_s26 + $0x178] sm:$0xff] %v491_v35  ;;  %v360_v47 = vmul.f32 %v744_v39, %v855_v0  ;;  %v361_v48 = vmul.f32 %v747_v40, %v855_v0  ;;  %v362_v49 = vmul.f32 %v748_v41, %v855_v0  ;;  %v756_v11 = vunpack.c.h.bf16 %v796_v60 }
  0x43   : > { %v363_v50 = vmul.f32 %v751_v42, %v855_v0  ;;  %v364_v51 = vmul.f32 %v752_v43, %v855_v0  ;;  %v428_v52 = vadd.f32 %v864_v9, %v357_v44  ;;  %v429_v53 = vadd.f32 %v864_v9, %v358_v45 }
  0x44   : > { %v430_v54 = vadd.f32 %v864_v9, %v359_v46  ;;  %v431_v55 = vadd.f32 %v864_v9, %v360_v47  ;;  %v432_v56 = vadd.f32 %v864_v9, %v361_v48  ;;  %v433_v57 = vadd.f32 %v864_v9, %v362_v49 }
  0x45   : > { %v434_v58 = vadd.f32 %v864_v9, %v363_v50  ;;  %v435_v59 = vadd.f32 %v864_v9, %v364_v51  ;;  %v492_v62 = vmax.f32 %v428_v52, 0.0  ;;  %v493_v63 = vmax.f32 %v429_v53, 0.0 }
  0x46   : > { %v494_v1 = vmax.f32 %v430_v54, 0.0  ;;  %v495_v2 = vmax.f32 %v431_v55, 0.0  ;;  %v496_v5 = vmax.f32 %v432_v56, 0.0  ;;  %v497_v6 = vmax.f32 %v433_v57, 0.0 }
  0x47   : > { %v498_v7 = vmax.f32 %v434_v58, 0.0  ;;  %v499_v8 = vmax.f32 %v435_v59, 0.0  ;;  %556 = vst [vmem:[%s882_s26 + $0x180] sm:$0xff] %v492_v62  ;;  %557 = vst [vmem:[%s882_s26 + $0x188] sm:$0xff] %v493_v63  ;;  %v759_v12 = vunpack.c.l.bf16 %v797_v61  ;;  %v760_v13 = vunpack.c.h.bf16 %v797_v61 }
  0x48   : > { %558 = vst [vmem:[%s882_s26 + $0x190] sm:$0xff] %v494_v1  ;;  %559 = vst [vmem:[%s882_s26 + $0x198] sm:$0xff] %v495_v2  ;;  %v763_v14 = vunpack.c.l.bf16 %v798_v3  ;;  %v764_v15 = vunpack.c.h.bf16 %v798_v3  ;;  %v767_v16 = vunpack.c.l.bf16 %v799_v4  ;;  %v768_v17 = vunpack.c.h.bf16 %v799_v4 }
  0x49   : > { %560 = vst [vmem:[%s882_s26 + $0x1a0] sm:$0xff] %v496_v5  ;;  %561 = vst [vmem:[%s882_s26 + $0x1a8] sm:$0xff] %v497_v6  ;;  %v365_v18 = vmul.f32 %v755_v10, %v855_v0  ;;  %v366_v19 = vmul.f32 %v756_v11, %v855_v0  ;;  %v367_v20 = vmul.f32 %v759_v12, %v855_v0 }
  0x4a   : > { %562 = vst [vmem:[%s882_s26 + $0x1b0] sm:$0xff] %v498_v7  ;;  %563 = vst [vmem:[%s882_s26 + $0x1b8] sm:$0xff] %v499_v8  ;;  %v368_v21 = vmul.f32 %v760_v13, %v855_v0  ;;  %v369_v22 = vmul.f32 %v763_v14, %v855_v0  ;;  %v370_v23 = vmul.f32 %v764_v15, %v855_v0 }
  0x4b   : > { %v371_v24 = vmul.f32 %v767_v16, %v855_v0  ;;  %v372_v25 = vmul.f32 %v768_v17, %v855_v0  ;;  %v436_v26 = vadd.f32 %v864_v9, %v365_v18  ;;  %v437_v27 = vadd.f32 %v864_v9, %v366_v19 }
  0x4c   : > { %v438_v28 = vadd.f32 %v864_v9, %v367_v20  ;;  %v439_v29 = vadd.f32 %v864_v9, %v368_v21  ;;  %v440_v30 = vadd.f32 %v864_v9, %v369_v22  ;;  %v441_v31 = vadd.f32 %v864_v9, %v370_v23 }
  0x4d   : > { %v442_v0 = vadd.f32 %v864_v9, %v371_v24  ;;  %v443_v32 = vadd.f32 %v864_v9, %v372_v25  ;;  %v500_v33 = vmax.f32 %v436_v26, 0.0  ;;  %v501_v34 = vmax.f32 %v437_v27, 0.0 }
  0x4e   : > { %v502_v35 = vmax.f32 %v438_v28, 0.0  ;;  %v503_v36 = vmax.f32 %v439_v29, 0.0  ;;  %v504_v37 = vmax.f32 %v440_v30, 0.0  ;;  %v505_v38 = vmax.f32 %v441_v31, 0.0 }
  0x4f   : > { %v506_v39 = vmax.f32 %v442_v0, 0.0  ;;  %v507_v40 = vmax.f32 %v443_v32, 0.0  ;;  %564 = vst [vmem:[%s882_s26 + $0x1c0] sm:$0xff] %v500_v33  ;;  %565 = vst [vmem:[%s882_s26 + $0x1c8] sm:$0xff] %v501_v34 }
  0x50   : > { %566 = vst [vmem:[%s882_s26 + $0x1d0] sm:$0xff] %v502_v35  ;;  %567 = vst [vmem:[%s882_s26 + $0x1d8] sm:$0xff] %v503_v36 }
  0x51   : > { %568 = vst [vmem:[%s882_s26 + $0x1e0] sm:$0xff] %v504_v37  ;;  %569 = vst [vmem:[%s882_s26 + $0x1e8] sm:$0xff] %v505_v38 }
  0x52   : > { %570 = vst [vmem:[%s882_s26 + $0x1f0] sm:$0xff] %v506_v39  ;;  %571 = vst [vmem:[%s882_s26 + $0x1f8] sm:$0xff] %v507_v40 }
  0x53 PF: > { %s13_s12 = sadd.s32 1, %s814_s12  }
  0x54   : > { %p10_p4 = scmp.ge.s32.totalorder %s13_s12, 4  }
  0x56   :  { %12 = sbr.rel (!%p10_p4) target bundleno = 1 (0x1), region = 62 }

</bundles_post_ra>
